<compile_context>
chip_gen: v7x
topology: tpu7x:2x2x1
jax: 0.10.0
libtpu: 0.0.40
codegen_flags: <defaults>
</compile_context>

<pallas_src>
import jax
import jax.numpy as jnp
from jax import lax
from jax.experimental import pallas as pl
from jax.experimental.pallas import tpu as pltpu

LATENT = 256      # GRU hidden size (latent_dim)
MLP_H1 = 256
MLP_H2 = 128
OUT_DIM = 32
OUT_PAD = 128     # lane-dense padded width of the last Linear (sliced back to 32)


def _round_up(x, m):
    return ((x + m - 1) // m) * m


def _discriminator_kernel(max_end_ref,                         # scalar prefetch (SMEM)
                          end_ref, s_ref,                      # inputs
                          wih_ref, bih_ref, whh_ref, bhh_ref,
                          w1_ref, b1_ref, w2_ref, b2_ref, w3_ref, b3_ref,
                          out_ref,                             # output
                          gi_scr, h_scr, sel_scr):             # VMEM scratch
    """Fused (folded-norm) GRU recurrence + end-frame gather + 3-layer MLP head."""
    c = pl.program_id(1)                  # sequence-chunk index (serial axis)
    n_chunks = pl.num_programs(1)
    Tc, Nb, D = s_ref.shape
    H = whh_ref.shape[0]
    cd = wih_ref.dtype                    # matmul compute dtype (bf16 or f32)
    t_base = c * Tc
    max_end = max_end_ref[0]

    @pl.when(c == 0)
    def _init():
        h_scr[...] = jnp.zeros_like(h_scr)      # GRU hidden state h_0 = 0
        sel_scr[...] = jnp.zeros_like(sel_scr)  # gathered hidden at seq_end_frame

    # Skip chunks that lie entirely past the last selected frame (dead work).
    @pl.when(t_base <= max_end)
    def _recurrence():
        # Hoisted input projection: one (Tc*Nb, D) x (D, 3H) matmul per chunk
        # (RunningMeanStd already folded into wih/bih in the wrapper).
        x = s_ref[...].reshape(Tc * Nb, D).astype(cd)
        gi_scr[...] = (
            jnp.dot(x, wih_ref[...], preferred_element_type=jnp.float32) + bih_ref[...])

        end = end_ref[...]                # (Nb, 1) int32, padded rows are -1
        whh = whh_ref[...]                # (H, 3H) compute dtype
        bhh = bhh_ref[...]                # (1, 3H) f32

        def step(i, carry):
            t = t_base + i
            row = pl.multiple_of(i * Nb, Nb)
            gi_t = gi_scr[pl.ds(row, Nb), :]                        # (Nb, 3H) f32
            h = h_scr[...]                                          # (Nb, H)  f32 carry
            gh = jnp.dot(h.astype(cd), whh,
                         preferred_element_type=jnp.float32) + bhh  # (Nb, 3H)
            r = jax.nn.sigmoid(gi_t[:, :H] + gh[:, :H])
            z = jax.nn.sigmoid(gi_t[:, H:2 * H] + gh[:, H:2 * H])
            n = jnp.tanh(gi_t[:, 2 * H:] + r * gh[:, 2 * H:])
            h_new = (1.0 - z) * n + z * h
            h_scr[...] = h_new
            # Gather: keep h_t for rows whose (clipped) seq_end_frame == t.
            sel_scr[...] = jnp.where(end == t, h_new, sel_scr[...])
            return carry

        lax.fori_loop(0, Tc, step, 0, unroll=min(Tc, 8))

    # Final chunk: MLP head on the gathered features, lane-dense (Nb, 128) store.
    @pl.when(c == n_chunks - 1)
    def _mlp():
        feat = sel_scr[...]
        h1 = jnp.maximum(
            jnp.dot(feat.astype(cd), w1_ref[...],
                    preferred_element_type=jnp.float32) + b1_ref[...], 0.0)
        h2 = jnp.maximum(
            jnp.dot(h1.astype(cd), w2_ref[...],
                    preferred_element_type=jnp.float32) + b2_ref[...], 0.0)
        out_ref[...] = (
            jnp.dot(h2.astype(cd), w3_ref[...],
                    preferred_element_type=jnp.float32) + b3_ref[...])


def discriminator_forward(params, s, seq_end_frame, normalize=True,
                          compute_dtype=jnp.bfloat16, t_chunk=64, block_n=256):
    """Discriminator.forward: s (N, T, D) f32, seq_end_frame (N,) i32 -> (N, 32) f32."""
    N, T, D = s.shape
    H = LATENT
    cd = compute_dtype

    # End-frame handling: clip(max=T-1) like PyTorch; negatives wrap like tensor indexing.
    e = jnp.minimum(seq_end_frame.astype(jnp.int32), T - 1)
    e = jnp.where(e < 0, e + T, e)
    max_end = jnp.max(e).reshape(1).astype(jnp.int32)

    # Fold RunningMeanStd into the GRU input projection (zero numerical cost).
    wih = params["w_ih"].astype(jnp.float32).T                   # (D, 3H), gates [r,z,n]
    bih = params["b_ih"].astype(jnp.float32).reshape(1, 3 * H)
    if normalize:
        invstd = lax.rsqrt(params["ob_var"].astype(jnp.float32) + 1e-5)
        mean = params["ob_mean"].astype(jnp.float32)
        bih = bih - ((mean * invstd) @ wih)[None, :]
        wih = wih * invstd[:, None]
    whh = params["w_hh"].astype(jnp.float32).T                   # (H, 3H)
    bhh = params["b_hh"].astype(jnp.float32).reshape(1, 3 * H)
    w1 = params["mlp_w1"].astype(jnp.float32).T                  # (256, 256)
    b1 = params["mlp_b1"].astype(jnp.float32).reshape(1, MLP_H1)
    w2 = params["mlp_w2"].astype(jnp.float32).T                  # (256, 128)
    b2 = params["mlp_b2"].astype(jnp.float32).reshape(1, MLP_H2)
    # Lane-dense (128-wide) padded last Linear -> unmasked vector stores.
    w3 = jnp.zeros((MLP_H2, OUT_PAD), jnp.float32).at[:, :OUT_DIM].set(
        params["mlp_w3"].astype(jnp.float32).T)
    b3 = jnp.zeros((1, OUT_PAD), jnp.float32).at[:, :OUT_DIM].set(
        params["mlp_b3"].astype(jnp.float32))

    wih_c = wih.astype(cd)
    whh_c = whh.astype(cd)
    w1_c = w1.astype(cd)
    w2_c = w2.astype(cd)
    w3_c = w3.astype(cd)

    # Tiling: batch blocks (parallel / megacore) x sequence chunks (serial recurrence).
    Nb = _round_up(min(block_n, N), 8)            # sublane aligned, MXU-row friendly
    n_blocks = pl.cdiv(N, Nb)
    N_pad = n_blocks * Nb
    # Cap the chunk length so the gi scratch stays modest (fits v7x's 64 MiB VMEM easily).
    gi_row_bytes = Nb * 3 * H * 4
    Tc = max(1, min(t_chunk, T, (8 * 1024 * 1024) // gi_row_bytes))
    n_chunks = pl.cdiv(T, Tc)
    T_pad = n_chunks * Tc

    s_tnd = jnp.transpose(s.astype(jnp.float32), (1, 0, 2))      # (T, N, D)
    if (T_pad, N_pad) != (T, N):
        s_tnd = jnp.pad(s_tnd, ((0, T_pad - T), (0, N_pad - N), (0, 0)))
    end = e.reshape(N, 1)
    if N_pad != N:
        end = jnp.pad(end, ((0, N_pad - N), (0, 0)), constant_values=-1)

    grid_spec = pltpu.PrefetchScalarGridSpec(
        num_scalar_prefetch=1,                    # max_end -> SMEM
        grid=(n_blocks, n_chunks),
        in_specs=[
            pl.BlockSpec((Nb, 1), lambda b, c, me: (b, 0)),            # end frames
            pl.BlockSpec((Tc, Nb, D), lambda b, c, me: (c, b, 0)),     # s as (T, N, D)
            pl.BlockSpec((D, 3 * H), lambda b, c, me: (0, 0)),         # wih (norm folded)
            pl.BlockSpec((1, 3 * H), lambda b, c, me: (0, 0)),         # bih (norm folded)
            pl.BlockSpec((H, 3 * H), lambda b, c, me: (0, 0)),         # whh
            pl.BlockSpec((1, 3 * H), lambda b, c, me: (0, 0)),         # bhh
            pl.BlockSpec((H, MLP_H1), lambda b, c, me: (0, 0)),        # w1
            pl.BlockSpec((1, MLP_H1), lambda b, c, me: (0, 0)),        # b1
            pl.BlockSpec((MLP_H1, MLP_H2), lambda b, c, me: (0, 0)),   # w2
            pl.BlockSpec((1, MLP_H2), lambda b, c, me: (0, 0)),        # b2
            pl.BlockSpec((MLP_H2, OUT_PAD), lambda b, c, me: (0, 0)),  # w3 (padded)
            pl.BlockSpec((1, OUT_PAD), lambda b, c, me: (0, 0)),       # b3 (padded)
        ],
        out_specs=pl.BlockSpec((Nb, OUT_PAD), lambda b, c, me: (b, 0)),
        scratch_shapes=[
            pltpu.VMEM((Tc * Nb, 3 * H), jnp.float32),   # hoisted input projection gi
            pltpu.VMEM((Nb, H), jnp.float32),            # GRU hidden state (f32 carry)
            pltpu.VMEM((Nb, H), jnp.float32),            # gathered end-frame features
        ],
    )

    out = pl.pallas_call(
        _discriminator_kernel,
        out_shape=jax.ShapeDtypeStruct((N_pad, OUT_PAD), jnp.float32),
        grid_spec=grid_spec,
        compiler_params=pltpu.CompilerParams(
            dimension_semantics=("parallel", "arbitrary"),
            vmem_limit_bytes=48 * 1024 * 1024),
    )(max_end, end, s_tnd, wih_c, bih, whh_c, bhh, w1_c, b1, w2_c, b2, w3_c, b3)
    return out[:N, :OUT_DIM]


def init_params(key, disc_dim, latent_dim=LATENT):
    """Deterministic synthetic parameters matching the PyTorch module's init scheme."""
    ks = jax.random.split(key, 7)
    bound = 1.0 / (latent_dim ** 0.5)
    u = lambda k, shape: jax.random.uniform(k, shape, jnp.float32, -bound, bound)
    orth = jax.nn.initializers.orthogonal
    return dict(
        # GRU params (PyTorch layout: (3H, in) / (3H, H) / (3H,), gate order r,z,n)
        w_ih=u(ks[0], (3 * latent_dim, disc_dim)),
        w_hh=u(ks[1], (3 * latent_dim, latent_dim)),
        b_ih=u(ks[2], (3 * latent_dim,)),
        b_hh=u(ks[3], (3 * latent_dim,)),
        # MLP: orthogonal(gain=sqrt(2), sqrt(2), 1), zero biases
        mlp_w1=orth(scale=2.0 ** 0.5)(ks[4], (MLP_H1, latent_dim), jnp.float32),
        mlp_b1=jnp.zeros((MLP_H1,), jnp.float32),
        mlp_w2=orth(scale=2.0 ** 0.5)(ks[5], (MLP_H2, MLP_H1), jnp.float32),
        mlp_b2=jnp.zeros((MLP_H2,), jnp.float32),
        mlp_w3=orth(scale=1.0)(ks[6], (OUT_DIM, MLP_H2), jnp.float32),
        mlp_b3=jnp.zeros((OUT_DIM,), jnp.float32),
        # RunningMeanStd buffers (fresh: mean=0, var=1)
        ob_mean=jnp.zeros((disc_dim,), jnp.float32),
        ob_var=jnp.ones((disc_dim,), jnp.float32),
    )


def reference_forward(params, s, seq_end_frame, normalize=True):
    """Pure-JAX reference mirroring the PyTorch forward (for correctness check)."""
    N, T, D = s.shape
    H = LATENT
    x = s.astype(jnp.float32)
    if normalize:
        x = (x - params["ob_mean"]) * lax.rsqrt(params["ob_var"] + 1e-5)
    wih, whh = params["w_ih"], params["w_hh"]
    bih, bhh = params["b_ih"], params["b_hh"]

    def step(h, x_t):
        gi = x_t @ wih.T + bih
        gh = h @ whh.T + bhh
        r = jax.nn.sigmoid(gi[:, :H] + gh[:, :H])
        z = jax.nn.sigmoid(gi[:, H:2 * H] + gh[:, H:2 * H])
        n = jnp.tanh(gi[:, 2 * H:] + r * gh[:, 2 * H:])
        h_new = (1.0 - z) * n + z * h
        return h_new, h_new

    _, hs = lax.scan(step, jnp.zeros((N, H), jnp.float32), jnp.transpose(x, (1, 0, 2)))
    end = jnp.minimum(seq_end_frame.astype(jnp.int32), T - 1)
    end = jnp.where(end < 0, end + T, end)
    feat = hs[end, jnp.arange(N)]
    h1 = jax.nn.relu(feat @ params["mlp_w1"].T + params["mlp_b1"])
    h2 = jax.nn.relu(h1 @ params["mlp_w2"].T + params["mlp_b2"])
    return h2 @ params["mlp_w3"].T + params["mlp_b3"]


if __name__ == "__main__":
    N, T, D = 2, 8, 32   # batch, sequence length, disc_dim

    key = jax.random.PRNGKey(0)
    k_param, k_s, k_end = jax.random.split(key, 3)
    params = init_params(k_param, disc_dim=D)

    s = jax.random.normal(k_s, (N, T, D), jnp.float32)
    # includes out-of-range indices to exercise clip(seq_end_frame, max=T-1)
    seq_end_frame = jax.random.randint(k_end, (N,), 0, T + 3, jnp.int32)

    ref = jax.block_until_ready(reference_forward(params, s, seq_end_frame))

    # Exact-math path (f32 matmuls) — strict check of the kernel structure.
    out_f32 = jax.block_until_ready(
        discriminator_forward(params, s, seq_end_frame, compute_dtype=jnp.float32))
    assert out_f32.shape == (N, OUT_DIM)
    assert jnp.allclose(out_f32, ref, atol=1e-3, rtol=1e-3), (out_f32, ref)

    # Fast path (bf16 matmul operands, f32 accumulation / carry) — looser tolerance.
    out_bf16 = jax.block_until_ready(
        discriminator_forward(params, s, seq_end_frame, compute_dtype=jnp.bfloat16))
    assert out_bf16.shape == (N, OUT_DIM)
    assert jnp.allclose(out_bf16, ref, atol=1e-1, rtol=1e-1), (out_bf16, ref)

    print("KERNEL_OK")
</pallas_src>

<mosaic_0001>
module attributes {stable_mosaic.version = 11 : i64} {
  func.func @_discriminator_kernel(%arg0: i32, %arg1: i32, %arg2: memref<1xi32, #tpu.memory_space<smem>>, %arg3: memref<8x1xi32, #tpu.memory_space<vmem>>, %arg4: memref<8x8x32xf32, #tpu.memory_space<vmem>>, %arg5: memref<32x768xf32, #tpu.memory_space<vmem>>, %arg6: memref<1x768xf32, #tpu.memory_space<vmem>>, %arg7: memref<256x768xf32, #tpu.memory_space<vmem>>, %arg8: memref<1x768xf32, #tpu.memory_space<vmem>>, %arg9: memref<256x256xf32, #tpu.memory_space<vmem>>, %arg10: memref<1x256xf32, #tpu.memory_space<vmem>>, %arg11: memref<256x128xf32, #tpu.memory_space<vmem>>, %arg12: memref<1x128xf32, #tpu.memory_space<vmem>>, %arg13: memref<128x128xf32, #tpu.memory_space<vmem>>, %arg14: memref<1x128xf32, #tpu.memory_space<vmem>>, %arg15: memref<8x128xf32, #tpu.memory_space<vmem>>, %arg16: memref<64x768xf32, #tpu.memory_space<vmem>>, %arg17: memref<8x256xf32, #tpu.memory_space<vmem>>, %arg18: memref<8x256xf32, #tpu.memory_space<vmem>>) attributes {dimension_semantics = [#tpu.dimension_semantics<parallel>, #tpu.dimension_semantics<arbitrary>], iteration_bounds = array<i64: 1, 1>, scalar_prefetch = 1 : i64, scratch_operands = 3 : i64, tpu.core_type = #tpu.core_type<tc>, window_params = [{transform_indices = @transform_0, window_bounds = array<i64: 8, 1>}, {transform_indices = @transform_1, window_bounds = array<i64: 8, 8, 32>}, {pipeline_mode = #tpu.pipeline_mode<synchronous>, transform_indices = @transform_2, window_bounds = array<i64: 32, 768>}, {pipeline_mode = #tpu.pipeline_mode<synchronous>, transform_indices = @transform_3, window_bounds = array<i64: 1, 768>}, {pipeline_mode = #tpu.pipeline_mode<synchronous>, transform_indices = @transform_4, window_bounds = array<i64: 256, 768>}, {pipeline_mode = #tpu.pipeline_mode<synchronous>, transform_indices = @transform_5, window_bounds = array<i64: 1, 768>}, {pipeline_mode = #tpu.pipeline_mode<synchronous>, transform_indices = @transform_6, window_bounds = array<i64: 256, 256>}, {pipeline_mode = #tpu.pipeline_mode<synchronous>, transform_indices = @transform_7, window_bounds = array<i64: 1, 256>}, {pipeline_mode = #tpu.pipeline_mode<synchronous>, transform_indices = @transform_8, window_bounds = array<i64: 256, 128>}, {pipeline_mode = #tpu.pipeline_mode<synchronous>, transform_indices = @transform_9, window_bounds = array<i64: 1, 128>}, {pipeline_mode = #tpu.pipeline_mode<synchronous>, transform_indices = @transform_10, window_bounds = array<i64: 128, 128>}, {pipeline_mode = #tpu.pipeline_mode<synchronous>, transform_indices = @transform_11, window_bounds = array<i64: 1, 128>}, {transform_indices = @transform_12, window_bounds = array<i64: 8, 128>}]} {
    %c8_i32 = arith.constant 8 : i32
    %0 = arith.muli %arg1, %c8_i32 : i32
    %c0 = arith.constant 0 : index
    %1 = memref.load %arg2[%c0] : memref<1xi32, #tpu.memory_space<smem>>
    %c0_i32 = arith.constant 0 : i32
    %2 = arith.cmpi eq, %arg1, %c0_i32 : i32
    %3 = arith.extui %2 : i1 to i32
    %c0_i32_0 = arith.constant 0 : i32
    %4 = arith.cmpi ne, %3, %c0_i32_0 : i32
    scf.if %4 {
      %cst = arith.constant 0.000000e+00 : f32
      %11 = vector.broadcast %cst : f32 to vector<8x256xf32>
      %c0_4 = arith.constant 0 : index
      %c0_5 = arith.constant 0 : index
      %12 = vector.load %arg17[%c0_4, %c0_5] : memref<8x256xf32, #tpu.memory_space<vmem>>, vector<8x256xf32>
      tpu.vector_store %arg17[%c0_4, %c0_5], %11 {strides = array<i32>} : memref<8x256xf32, #tpu.memory_space<vmem>>, vector<8x256xf32>,
      %cst_6 = arith.constant 0.000000e+00 : f32
      %13 = vector.broadcast %cst_6 : f32 to vector<8x256xf32>
      %c0_7 = arith.constant 0 : index
      %c0_8 = arith.constant 0 : index
      %14 = vector.load %arg18[%c0_7, %c0_8] : memref<8x256xf32, #tpu.memory_space<vmem>>, vector<8x256xf32>
      tpu.vector_store %arg18[%c0_7, %c0_8], %13 {strides = array<i32>} : memref<8x256xf32, #tpu.memory_space<vmem>>, vector<8x256xf32>,
    } else {
    }
    %5 = arith.cmpi sle, %0, %1 : i32
    %6 = arith.extui %5 : i1 to i32
    %c0_i32_1 = arith.constant 0 : i32
    %7 = arith.cmpi ne, %6, %c0_i32_1 : i32
    scf.if %7 {
      %c0_4 = arith.constant 0 : index
      %c0_5 = arith.constant 0 : index
      %c0_6 = arith.constant 0 : index
      %11 = vector.load %arg4[%c0_4, %c0_5, %c0_6] : memref<8x8x32xf32, #tpu.memory_space<vmem>>, vector<8x8x32xf32>
      %12 = vector.shape_cast %11 : vector<8x8x32xf32> to vector<64x32xf32>
      %c0_7 = arith.constant 0 : index
      %c0_8 = arith.constant 0 : index
      %13 = vector.load %arg5[%c0_7, %c0_8] : memref<32x768xf32, #tpu.memory_space<vmem>>, vector<32x768xf32>
      %cst = arith.constant dense<0.000000e+00> : vector<64x768xf32>
      %14 = tpu.matmul %12, %13, %cst {dimension_numbers = #tpu.dot_dimension_numbers<[1], [0], [0], [1], [0, 0, 1, 1], [], []>} : vector<64x32xf32>, vector<32x768xf32>, vector<64x768xf32> -> vector<64x768xf32>
      %c0_9 = arith.constant 0 : index
      %c0_10 = arith.constant 0 : index
      %15 = vector.load %arg6[%c0_9, %c0_10] : memref<1x768xf32, #tpu.memory_space<vmem>>, vector<1x768xf32>
      %16 = vector.broadcast %15 : vector<1x768xf32> to vector<64x768xf32>
      %17 = arith.addf %14, %16 : vector<64x768xf32>
      %c0_11 = arith.constant 0 : index
      %c0_12 = arith.constant 0 : index
      %18 = vector.load %arg16[%c0_11, %c0_12] : memref<64x768xf32, #tpu.memory_space<vmem>>, vector<64x768xf32>
      tpu.vector_store %arg16[%c0_11, %c0_12], %17 {strides = array<i32>} : memref<64x768xf32, #tpu.memory_space<vmem>>, vector<64x768xf32>,
      %c0_13 = arith.constant 0 : index
      %c0_14 = arith.constant 0 : index
      %19 = vector.load %arg3[%c0_13, %c0_14] : memref<8x1xi32, #tpu.memory_space<vmem>>, vector<8x1xi32>
      %c0_15 = arith.constant 0 : index
      %c0_16 = arith.constant 0 : index
      %20 = vector.load %arg7[%c0_15, %c0_16] : memref<256x768xf32, #tpu.memory_space<vmem>>, vector<256x768xf32>
      %c0_17 = arith.constant 0 : index
      %c0_18 = arith.constant 0 : index
      %21 = vector.load %arg8[%c0_17, %c0_18] : memref<1x768xf32, #tpu.memory_space<vmem>>, vector<1x768xf32>
      %c0_i32_19 = arith.constant 0 : i32
      %22 = arith.addi %0, %c0_i32_19 : i32
      %c8_i32_20 = arith.constant 8 : i32
      %23 = arith.muli %c0_i32_19, %c8_i32_20 : i32
      %24 = tpu.assume_multiple %23, 8 : i32
      %25 = arith.index_cast %24 : i32 to index
      %c0_21 = arith.constant 0 : index
      %26 = vector.load %arg16[%25, %c0_21] : memref<64x768xf32, #tpu.memory_space<vmem>>, vector<8x768xf32>
      %c0_22 = arith.constant 0 : index
      %c0_23 = arith.constant 0 : index
      %27 = vector.load %arg17[%c0_22, %c0_23] : memref<8x256xf32, #tpu.memory_space<vmem>>, vector<8x256xf32>
      %cst_24 = arith.constant dense<0.000000e+00> : vector<8x768xf32>
      %28 = tpu.matmul %27, %20, %cst_24 {dimension_numbers = #tpu.dot_dimension_numbers<[1], [0], [0], [1], [0, 0, 1, 1], [], []>} : vector<8x256xf32>, vector<256x768xf32>, vector<8x768xf32> -> vector<8x768xf32>
      %29 = vector.broadcast %21 : vector<1x768xf32> to vector<8x768xf32>
      %30 = arith.addf %28, %29 : vector<8x768xf32>
      %31 = vector.extract_strided_slice %26 {offsets = [0, 0], sizes = [8, 256], strides = [1, 1]} : vector<8x768xf32> to vector<8x256xf32>
      %32 = vector.extract_strided_slice %30 {offsets = [0, 0], sizes = [8, 256], strides = [1, 1]} : vector<8x768xf32> to vector<8x256xf32>
      %33 = arith.addf %31, %32 : vector<8x256xf32>
      %34 = arith.negf %33 : vector<8x256xf32>
      %35 = math.exp %34 : vector<8x256xf32>
      %cst_25 = arith.constant 1.000000e+00 : f32
      %36 = vector.broadcast %cst_25 : f32 to vector<8x256xf32>
      %37 = arith.addf %36, %35 : vector<8x256xf32>
      %38 = arith.divf %36, %37 : vector<8x256xf32>
      %39 = vector.extract_strided_slice %26 {offsets = [0, 256], sizes = [8, 256], strides = [1, 1]} : vector<8x768xf32> to vector<8x256xf32>
      %40 = vector.extract_strided_slice %30 {offsets = [0, 256], sizes = [8, 256], strides = [1, 1]} : vector<8x768xf32> to vector<8x256xf32>
      %41 = arith.addf %39, %40 : vector<8x256xf32>
      %42 = arith.negf %41 : vector<8x256xf32>
      %43 = math.exp %42 : vector<8x256xf32>
      %cst_26 = arith.constant 1.000000e+00 : f32
      %44 = vector.broadcast %cst_26 : f32 to vector<8x256xf32>
      %45 = arith.addf %44, %43 : vector<8x256xf32>
      %46 = arith.divf %44, %45 : vector<8x256xf32>
      %47 = vector.extract_strided_slice %26 {offsets = [0, 512], sizes = [8, 256], strides = [1, 1]} : vector<8x768xf32> to vector<8x256xf32>
      %48 = vector.extract_strided_slice %30 {offsets = [0, 512], sizes = [8, 256], strides = [1, 1]} : vector<8x768xf32> to vector<8x256xf32>
      %49 = arith.mulf %38, %48 : vector<8x256xf32>
      %50 = arith.addf %47, %49 : vector<8x256xf32>
      %51 = math.tanh %50 : vector<8x256xf32>
      %cst_27 = arith.constant 1.000000e+00 : f32
      %52 = vector.broadcast %cst_27 : f32 to vector<8x256xf32>
      %53 = arith.subf %52, %46 : vector<8x256xf32>
      %54 = arith.mulf %53, %51 : vector<8x256xf32>
      %55 = arith.mulf %46, %27 : vector<8x256xf32>
      %56 = arith.addf %54, %55 : vector<8x256xf32>
      %c0_28 = arith.constant 0 : index
      %c0_29 = arith.constant 0 : index
      %57 = vector.load %arg17[%c0_28, %c0_29] : memref<8x256xf32, #tpu.memory_space<vmem>>, vector<8x256xf32>
      tpu.vector_store %arg17[%c0_28, %c0_29], %56 {strides = array<i32>} : memref<8x256xf32, #tpu.memory_space<vmem>>, vector<8x256xf32>,
      %58 = vector.broadcast %22 : i32 to vector<8x1xi32>
      %59 = arith.cmpi eq, %19, %58 : vector<8x1xi32>
      %c0_30 = arith.constant 0 : index
      %c0_31 = arith.constant 0 : index
      %60 = vector.load %arg18[%c0_30, %c0_31] : memref<8x256xf32, #tpu.memory_space<vmem>>, vector<8x256xf32>
      %61 = vector.shape_cast %59 : vector<8x1xi1> to vector<8x1xi1>
      %62 = vector.broadcast %61 : vector<8x1xi1> to vector<8x256xi1>
      %63 = arith.select %62, %56, %60 : vector<8x256xi1>, vector<8x256xf32>
      %c0_32 = arith.constant 0 : index
      %c0_33 = arith.constant 0 : index
      %64 = vector.load %arg18[%c0_32, %c0_33] : memref<8x256xf32, #tpu.memory_space<vmem>>, vector<8x256xf32>
      tpu.vector_store %arg18[%c0_32, %c0_33], %63 {strides = array<i32>} : memref<8x256xf32, #tpu.memory_space<vmem>>, vector<8x256xf32>,
      %c1_i32 = arith.constant 1 : i32
      %65 = arith.addi %0, %c1_i32 : i32
      %c8_i32_34 = arith.constant 8 : i32
      %66 = arith.muli %c1_i32, %c8_i32_34 : i32
      %67 = tpu.assume_multiple %66, 8 : i32
      %68 = arith.index_cast %67 : i32 to index
      %c0_35 = arith.constant 0 : index
      %69 = vector.load %arg16[%68, %c0_35] : memref<64x768xf32, #tpu.memory_space<vmem>>, vector<8x768xf32>
      %c0_36 = arith.constant 0 : index
      %c0_37 = arith.constant 0 : index
      %70 = vector.load %arg17[%c0_36, %c0_37] : memref<8x256xf32, #tpu.memory_space<vmem>>, vector<8x256xf32>
      %cst_38 = arith.constant dense<0.000000e+00> : vector<8x768xf32>
      %71 = tpu.matmul %70, %20, %cst_38 {dimension_numbers = #tpu.dot_dimension_numbers<[1], [0], [0], [1], [0, 0, 1, 1], [], []>} : vector<8x256xf32>, vector<256x768xf32>, vector<8x768xf32> -> vector<8x768xf32>
      %72 = vector.broadcast %21 : vector<1x768xf32> to vector<8x768xf32>
      %73 = arith.addf %71, %72 : vector<8x768xf32>
      %74 = vector.extract_strided_slice %69 {offsets = [0, 0], sizes = [8, 256], strides = [1, 1]} : vector<8x768xf32> to vector<8x256xf32>
      %75 = vector.extract_strided_slice %73 {offsets = [0, 0], sizes = [8, 256], strides = [1, 1]} : vector<8x768xf32> to vector<8x256xf32>
      %76 = arith.addf %74, %75 : vector<8x256xf32>
      %77 = arith.negf %76 : vector<8x256xf32>
      %78 = math.exp %77 : vector<8x256xf32>
      %cst_39 = arith.constant 1.000000e+00 : f32
      %79 = vector.broadcast %cst_39 : f32 to vector<8x256xf32>
      %80 = arith.addf %79, %78 : vector<8x256xf32>
      %81 = arith.divf %79, %80 : vector<8x256xf32>
      %82 = vector.extract_strided_slice %69 {offsets = [0, 256], sizes = [8, 256], strides = [1, 1]} : vector<8x768xf32> to vector<8x256xf32>
      %83 = vector.extract_strided_slice %73 {offsets = [0, 256], sizes = [8, 256], strides = [1, 1]} : vector<8x768xf32> to vector<8x256xf32>
      %84 = arith.addf %82, %83 : vector<8x256xf32>
      %85 = arith.negf %84 : vector<8x256xf32>
      %86 = math.exp %85 : vector<8x256xf32>
      %cst_40 = arith.constant 1.000000e+00 : f32
      %87 = vector.broadcast %cst_40 : f32 to vector<8x256xf32>
      %88 = arith.addf %87, %86 : vector<8x256xf32>
      %89 = arith.divf %87, %88 : vector<8x256xf32>
      %90 = vector.extract_strided_slice %69 {offsets = [0, 512], sizes = [8, 256], strides = [1, 1]} : vector<8x768xf32> to vector<8x256xf32>
      %91 = vector.extract_strided_slice %73 {offsets = [0, 512], sizes = [8, 256], strides = [1, 1]} : vector<8x768xf32> to vector<8x256xf32>
      %92 = arith.mulf %81, %91 : vector<8x256xf32>
      %93 = arith.addf %90, %92 : vector<8x256xf32>
      %94 = math.tanh %93 : vector<8x256xf32>
      %cst_41 = arith.constant 1.000000e+00 : f32
      %95 = vector.broadcast %cst_41 : f32 to vector<8x256xf32>
      %96 = arith.subf %95, %89 : vector<8x256xf32>
      %97 = arith.mulf %96, %94 : vector<8x256xf32>
      %98 = arith.mulf %89, %70 : vector<8x256xf32>
      %99 = arith.addf %97, %98 : vector<8x256xf32>
      %c0_42 = arith.constant 0 : index
      %c0_43 = arith.constant 0 : index
      %100 = vector.load %arg17[%c0_42, %c0_43] : memref<8x256xf32, #tpu.memory_space<vmem>>, vector<8x256xf32>
      tpu.vector_store %arg17[%c0_42, %c0_43], %99 {strides = array<i32>} : memref<8x256xf32, #tpu.memory_space<vmem>>, vector<8x256xf32>,
      %101 = vector.broadcast %65 : i32 to vector<8x1xi32>
      %102 = arith.cmpi eq, %19, %101 : vector<8x1xi32>
      %c0_44 = arith.constant 0 : index
      %c0_45 = arith.constant 0 : index
      %103 = vector.load %arg18[%c0_44, %c0_45] : memref<8x256xf32, #tpu.memory_space<vmem>>, vector<8x256xf32>
      %104 = vector.shape_cast %102 : vector<8x1xi1> to vector<8x1xi1>
      %105 = vector.broadcast %104 : vector<8x1xi1> to vector<8x256xi1>
      %106 = arith.select %105, %99, %103 : vector<8x256xi1>, vector<8x256xf32>
      %c0_46 = arith.constant 0 : index
      %c0_47 = arith.constant 0 : index
      %107 = vector.load %arg18[%c0_46, %c0_47] : memref<8x256xf32, #tpu.memory_space<vmem>>, vector<8x256xf32>
      tpu.vector_store %arg18[%c0_46, %c0_47], %106 {strides = array<i32>} : memref<8x256xf32, #tpu.memory_space<vmem>>, vector<8x256xf32>,
      %c2_i32 = arith.constant 2 : i32
      %108 = arith.addi %0, %c2_i32 : i32
      %c8_i32_48 = arith.constant 8 : i32
      %109 = arith.muli %c2_i32, %c8_i32_48 : i32
      %110 = tpu.assume_multiple %109, 8 : i32
      %111 = arith.index_cast %110 : i32 to index
      %c0_49 = arith.constant 0 : index
      %112 = vector.load %arg16[%111, %c0_49] : memref<64x768xf32, #tpu.memory_space<vmem>>, vector<8x768xf32>
      %c0_50 = arith.constant 0 : index
      %c0_51 = arith.constant 0 : index
      %113 = vector.load %arg17[%c0_50, %c0_51] : memref<8x256xf32, #tpu.memory_space<vmem>>, vector<8x256xf32>
      %cst_52 = arith.constant dense<0.000000e+00> : vector<8x768xf32>
      %114 = tpu.matmul %113, %20, %cst_52 {dimension_numbers = #tpu.dot_dimension_numbers<[1], [0], [0], [1], [0, 0, 1, 1], [], []>} : vector<8x256xf32>, vector<256x768xf32>, vector<8x768xf32> -> vector<8x768xf32>
      %115 = vector.broadcast %21 : vector<1x768xf32> to vector<8x768xf32>
      %116 = arith.addf %114, %115 : vector<8x768xf32>
      %117 = vector.extract_strided_slice %112 {offsets = [0, 0], sizes = [8, 256], strides = [1, 1]} : vector<8x768xf32> to vector<8x256xf32>
      %118 = vector.extract_strided_slice %116 {offsets = [0, 0], sizes = [8, 256], strides = [1, 1]} : vector<8x768xf32> to vector<8x256xf32>
      %119 = arith.addf %117, %118 : vector<8x256xf32>
      %120 = arith.negf %119 : vector<8x256xf32>
      %121 = math.exp %120 : vector<8x256xf32>
      %cst_53 = arith.constant 1.000000e+00 : f32
      %122 = vector.broadcast %cst_53 : f32 to vector<8x256xf32>
      %123 = arith.addf %122, %121 : vector<8x256xf32>
      %124 = arith.divf %122, %123 : vector<8x256xf32>
      %125 = vector.extract_strided_slice %112 {offsets = [0, 256], sizes = [8, 256], strides = [1, 1]} : vector<8x768xf32> to vector<8x256xf32>
      %126 = vector.extract_strided_slice %116 {offsets = [0, 256], sizes = [8, 256], strides = [1, 1]} : vector<8x768xf32> to vector<8x256xf32>
      %127 = arith.addf %125, %126 : vector<8x256xf32>
      %128 = arith.negf %127 : vector<8x256xf32>
      %129 = math.exp %128 : vector<8x256xf32>
      %cst_54 = arith.constant 1.000000e+00 : f32
      %130 = vector.broadcast %cst_54 : f32 to vector<8x256xf32>
      %131 = arith.addf %130, %129 : vector<8x256xf32>
      %132 = arith.divf %130, %131 : vector<8x256xf32>
      %133 = vector.extract_strided_slice %112 {offsets = [0, 512], sizes = [8, 256], strides = [1, 1]} : vector<8x768xf32> to vector<8x256xf32>
      %134 = vector.extract_strided_slice %116 {offsets = [0, 512], sizes = [8, 256], strides = [1, 1]} : vector<8x768xf32> to vector<8x256xf32>
      %135 = arith.mulf %124, %134 : vector<8x256xf32>
      %136 = arith.addf %133, %135 : vector<8x256xf32>
      %137 = math.tanh %136 : vector<8x256xf32>
      %cst_55 = arith.constant 1.000000e+00 : f32
      %138 = vector.broadcast %cst_55 : f32 to vector<8x256xf32>
      %139 = arith.subf %138, %132 : vector<8x256xf32>
      %140 = arith.mulf %139, %137 : vector<8x256xf32>
      %141 = arith.mulf %132, %113 : vector<8x256xf32>
      %142 = arith.addf %140, %141 : vector<8x256xf32>
      %c0_56 = arith.constant 0 : index
      %c0_57 = arith.constant 0 : index
      %143 = vector.load %arg17[%c0_56, %c0_57] : memref<8x256xf32, #tpu.memory_space<vmem>>, vector<8x256xf32>
      tpu.vector_store %arg17[%c0_56, %c0_57], %142 {strides = array<i32>} : memref<8x256xf32, #tpu.memory_space<vmem>>, vector<8x256xf32>,
      %144 = vector.broadcast %108 : i32 to vector<8x1xi32>
      %145 = arith.cmpi eq, %19, %144 : vector<8x1xi32>
      %c0_58 = arith.constant 0 : index
      %c0_59 = arith.constant 0 : index
      %146 = vector.load %arg18[%c0_58, %c0_59] : memref<8x256xf32, #tpu.memory_space<vmem>>, vector<8x256xf32>
      %147 = vector.shape_cast %145 : vector<8x1xi1> to vector<8x1xi1>
      %148 = vector.broadcast %147 : vector<8x1xi1> to vector<8x256xi1>
      %149 = arith.select %148, %142, %146 : vector<8x256xi1>, vector<8x256xf32>
      %c0_60 = arith.constant 0 : index
      %c0_61 = arith.constant 0 : index
      %150 = vector.load %arg18[%c0_60, %c0_61] : memref<8x256xf32, #tpu.memory_space<vmem>>, vector<8x256xf32>
      tpu.vector_store %arg18[%c0_60, %c0_61], %149 {strides = array<i32>} : memref<8x256xf32, #tpu.memory_space<vmem>>, vector<8x256xf32>,
      %c3_i32 = arith.constant 3 : i32
      %151 = arith.addi %0, %c3_i32 : i32
      %c8_i32_62 = arith.constant 8 : i32
      %152 = arith.muli %c3_i32, %c8_i32_62 : i32
      %153 = tpu.assume_multiple %152, 8 : i32
      %154 = arith.index_cast %153 : i32 to index
      %c0_63 = arith.constant 0 : index
      %155 = vector.load %arg16[%154, %c0_63] : memref<64x768xf32, #tpu.memory_space<vmem>>, vector<8x768xf32>
      %c0_64 = arith.constant 0 : index
      %c0_65 = arith.constant 0 : index
      %156 = vector.load %arg17[%c0_64, %c0_65] : memref<8x256xf32, #tpu.memory_space<vmem>>, vector<8x256xf32>
      %cst_66 = arith.constant dense<0.000000e+00> : vector<8x768xf32>
      %157 = tpu.matmul %156, %20, %cst_66 {dimension_numbers = #tpu.dot_dimension_numbers<[1], [0], [0], [1], [0, 0, 1, 1], [], []>} : vector<8x256xf32>, vector<256x768xf32>, vector<8x768xf32> -> vector<8x768xf32>
      %158 = vector.broadcast %21 : vector<1x768xf32> to vector<8x768xf32>
      %159 = arith.addf %157, %158 : vector<8x768xf32>
      %160 = vector.extract_strided_slice %155 {offsets = [0, 0], sizes = [8, 256], strides = [1, 1]} : vector<8x768xf32> to vector<8x256xf32>
      %161 = vector.extract_strided_slice %159 {offsets = [0, 0], sizes = [8, 256], strides = [1, 1]} : vector<8x768xf32> to vector<8x256xf32>
      %162 = arith.addf %160, %161 : vector<8x256xf32>
      %163 = arith.negf %162 : vector<8x256xf32>
      %164 = math.exp %163 : vector<8x256xf32>
      %cst_67 = arith.constant 1.000000e+00 : f32
      %165 = vector.broadcast %cst_67 : f32 to vector<8x256xf32>
      %166 = arith.addf %165, %164 : vector<8x256xf32>
      %167 = arith.divf %165, %166 : vector<8x256xf32>
      %168 = vector.extract_strided_slice %155 {offsets = [0, 256], sizes = [8, 256], strides = [1, 1]} : vector<8x768xf32> to vector<8x256xf32>
      %169 = vector.extract_strided_slice %159 {offsets = [0, 256], sizes = [8, 256], strides = [1, 1]} : vector<8x768xf32> to vector<8x256xf32>
      %170 = arith.addf %168, %169 : vector<8x256xf32>
      %171 = arith.negf %170 : vector<8x256xf32>
      %172 = math.exp %171 : vector<8x256xf32>
      %cst_68 = arith.constant 1.000000e+00 : f32
      %173 = vector.broadcast %cst_68 : f32 to vector<8x256xf32>
      %174 = arith.addf %173, %172 : vector<8x256xf32>
      %175 = arith.divf %173, %174 : vector<8x256xf32>
      %176 = vector.extract_strided_slice %155 {offsets = [0, 512], sizes = [8, 256], strides = [1, 1]} : vector<8x768xf32> to vector<8x256xf32>
      %177 = vector.extract_strided_slice %159 {offsets = [0, 512], sizes = [8, 256], strides = [1, 1]} : vector<8x768xf32> to vector<8x256xf32>
      %178 = arith.mulf %167, %177 : vector<8x256xf32>
      %179 = arith.addf %176, %178 : vector<8x256xf32>
      %180 = math.tanh %179 : vector<8x256xf32>
      %cst_69 = arith.constant 1.000000e+00 : f32
      %181 = vector.broadcast %cst_69 : f32 to vector<8x256xf32>
      %182 = arith.subf %181, %175 : vector<8x256xf32>
      %183 = arith.mulf %182, %180 : vector<8x256xf32>
      %184 = arith.mulf %175, %156 : vector<8x256xf32>
      %185 = arith.addf %183, %184 : vector<8x256xf32>
      %c0_70 = arith.constant 0 : index
      %c0_71 = arith.constant 0 : index
      %186 = vector.load %arg17[%c0_70, %c0_71] : memref<8x256xf32, #tpu.memory_space<vmem>>, vector<8x256xf32>
      tpu.vector_store %arg17[%c0_70, %c0_71], %185 {strides = array<i32>} : memref<8x256xf32, #tpu.memory_space<vmem>>, vector<8x256xf32>,
      %187 = vector.broadcast %151 : i32 to vector<8x1xi32>
      %188 = arith.cmpi eq, %19, %187 : vector<8x1xi32>
      %c0_72 = arith.constant 0 : index
      %c0_73 = arith.constant 0 : index
      %189 = vector.load %arg18[%c0_72, %c0_73] : memref<8x256xf32, #tpu.memory_space<vmem>>, vector<8x256xf32>
      %190 = vector.shape_cast %188 : vector<8x1xi1> to vector<8x1xi1>
      %191 = vector.broadcast %190 : vector<8x1xi1> to vector<8x256xi1>
      %192 = arith.select %191, %185, %189 : vector<8x256xi1>, vector<8x256xf32>
      %c0_74 = arith.constant 0 : index
      %c0_75 = arith.constant 0 : index
      %193 = vector.load %arg18[%c0_74, %c0_75] : memref<8x256xf32, #tpu.memory_space<vmem>>, vector<8x256xf32>
      tpu.vector_store %arg18[%c0_74, %c0_75], %192 {strides = array<i32>} : memref<8x256xf32, #tpu.memory_space<vmem>>, vector<8x256xf32>,
      %c4_i32 = arith.constant 4 : i32
      %194 = arith.addi %0, %c4_i32 : i32
      %c8_i32_76 = arith.constant 8 : i32
      %195 = arith.muli %c4_i32, %c8_i32_76 : i32
      %196 = tpu.assume_multiple %195, 8 : i32
      %197 = arith.index_cast %196 : i32 to index
      %c0_77 = arith.constant 0 : index
      %198 = vector.load %arg16[%197, %c0_77] : memref<64x768xf32, #tpu.memory_space<vmem>>, vector<8x768xf32>
      %c0_78 = arith.constant 0 : index
      %c0_79 = arith.constant 0 : index
      %199 = vector.load %arg17[%c0_78, %c0_79] : memref<8x256xf32, #tpu.memory_space<vmem>>, vector<8x256xf32>
      %cst_80 = arith.constant dense<0.000000e+00> : vector<8x768xf32>
      %200 = tpu.matmul %199, %20, %cst_80 {dimension_numbers = #tpu.dot_dimension_numbers<[1], [0], [0], [1], [0, 0, 1, 1], [], []>} : vector<8x256xf32>, vector<256x768xf32>, vector<8x768xf32> -> vector<8x768xf32>
      %201 = vector.broadcast %21 : vector<1x768xf32> to vector<8x768xf32>
      %202 = arith.addf %200, %201 : vector<8x768xf32>
      %203 = vector.extract_strided_slice %198 {offsets = [0, 0], sizes = [8, 256], strides = [1, 1]} : vector<8x768xf32> to vector<8x256xf32>
      %204 = vector.extract_strided_slice %202 {offsets = [0, 0], sizes = [8, 256], strides = [1, 1]} : vector<8x768xf32> to vector<8x256xf32>
      %205 = arith.addf %203, %204 : vector<8x256xf32>
      %206 = arith.negf %205 : vector<8x256xf32>
      %207 = math.exp %206 : vector<8x256xf32>
      %cst_81 = arith.constant 1.000000e+00 : f32
      %208 = vector.broadcast %cst_81 : f32 to vector<8x256xf32>
      %209 = arith.addf %208, %207 : vector<8x256xf32>
      %210 = arith.divf %208, %209 : vector<8x256xf32>
      %211 = vector.extract_strided_slice %198 {offsets = [0, 256], sizes = [8, 256], strides = [1, 1]} : vector<8x768xf32> to vector<8x256xf32>
      %212 = vector.extract_strided_slice %202 {offsets = [0, 256], sizes = [8, 256], strides = [1, 1]} : vector<8x768xf32> to vector<8x256xf32>
      %213 = arith.addf %211, %212 : vector<8x256xf32>
      %214 = arith.negf %213 : vector<8x256xf32>
      %215 = math.exp %214 : vector<8x256xf32>
      %cst_82 = arith.constant 1.000000e+00 : f32
      %216 = vector.broadcast %cst_82 : f32 to vector<8x256xf32>
      %217 = arith.addf %216, %215 : vector<8x256xf32>
      %218 = arith.divf %216, %217 : vector<8x256xf32>
      %219 = vector.extract_strided_slice %198 {offsets = [0, 512], sizes = [8, 256], strides = [1, 1]} : vector<8x768xf32> to vector<8x256xf32>
      %220 = vector.extract_strided_slice %202 {offsets = [0, 512], sizes = [8, 256], strides = [1, 1]} : vector<8x768xf32> to vector<8x256xf32>
      %221 = arith.mulf %210, %220 : vector<8x256xf32>
      %222 = arith.addf %219, %221 : vector<8x256xf32>
      %223 = math.tanh %222 : vector<8x256xf32>
      %cst_83 = arith.constant 1.000000e+00 : f32
      %224 = vector.broadcast %cst_83 : f32 to vector<8x256xf32>
      %225 = arith.subf %224, %218 : vector<8x256xf32>
      %226 = arith.mulf %225, %223 : vector<8x256xf32>
      %227 = arith.mulf %218, %199 : vector<8x256xf32>
      %228 = arith.addf %226, %227 : vector<8x256xf32>
      %c0_84 = arith.constant 0 : index
      %c0_85 = arith.constant 0 : index
      %229 = vector.load %arg17[%c0_84, %c0_85] : memref<8x256xf32, #tpu.memory_space<vmem>>, vector<8x256xf32>
      tpu.vector_store %arg17[%c0_84, %c0_85], %228 {strides = array<i32>} : memref<8x256xf32, #tpu.memory_space<vmem>>, vector<8x256xf32>,
      %230 = vector.broadcast %194 : i32 to vector<8x1xi32>
      %231 = arith.cmpi eq, %19, %230 : vector<8x1xi32>
      %c0_86 = arith.constant 0 : index
      %c0_87 = arith.constant 0 : index
      %232 = vector.load %arg18[%c0_86, %c0_87] : memref<8x256xf32, #tpu.memory_space<vmem>>, vector<8x256xf32>
      %233 = vector.shape_cast %231 : vector<8x1xi1> to vector<8x1xi1>
      %234 = vector.broadcast %233 : vector<8x1xi1> to vector<8x256xi1>
      %235 = arith.select %234, %228, %232 : vector<8x256xi1>, vector<8x256xf32>
      %c0_88 = arith.constant 0 : index
      %c0_89 = arith.constant 0 : index
      %236 = vector.load %arg18[%c0_88, %c0_89] : memref<8x256xf32, #tpu.memory_space<vmem>>, vector<8x256xf32>
      tpu.vector_store %arg18[%c0_88, %c0_89], %235 {strides = array<i32>} : memref<8x256xf32, #tpu.memory_space<vmem>>, vector<8x256xf32>,
      %c5_i32 = arith.constant 5 : i32
      %237 = arith.addi %0, %c5_i32 : i32
      %c8_i32_90 = arith.constant 8 : i32
      %238 = arith.muli %c5_i32, %c8_i32_90 : i32
      %239 = tpu.assume_multiple %238, 8 : i32
      %240 = arith.index_cast %239 : i32 to index
      %c0_91 = arith.constant 0 : index
      %241 = vector.load %arg16[%240, %c0_91] : memref<64x768xf32, #tpu.memory_space<vmem>>, vector<8x768xf32>
      %c0_92 = arith.constant 0 : index
      %c0_93 = arith.constant 0 : index
      %242 = vector.load %arg17[%c0_92, %c0_93] : memref<8x256xf32, #tpu.memory_space<vmem>>, vector<8x256xf32>
      %cst_94 = arith.constant dense<0.000000e+00> : vector<8x768xf32>
      %243 = tpu.matmul %242, %20, %cst_94 {dimension_numbers = #tpu.dot_dimension_numbers<[1], [0], [0], [1], [0, 0, 1, 1], [], []>} : vector<8x256xf32>, vector<256x768xf32>, vector<8x768xf32> -> vector<8x768xf32>
      %244 = vector.broadcast %21 : vector<1x768xf32> to vector<8x768xf32>
      %245 = arith.addf %243, %244 : vector<8x768xf32>
      %246 = vector.extract_strided_slice %241 {offsets = [0, 0], sizes = [8, 256], strides = [1, 1]} : vector<8x768xf32> to vector<8x256xf32>
      %247 = vector.extract_strided_slice %245 {offsets = [0, 0], sizes = [8, 256], strides = [1, 1]} : vector<8x768xf32> to vector<8x256xf32>
      %248 = arith.addf %246, %247 : vector<8x256xf32>
      %249 = arith.negf %248 : vector<8x256xf32>
      %250 = math.exp %249 : vector<8x256xf32>
      %cst_95 = arith.constant 1.000000e+00 : f32
      %251 = vector.broadcast %cst_95 : f32 to vector<8x256xf32>
      %252 = arith.addf %251, %250 : vector<8x256xf32>
      %253 = arith.divf %251, %252 : vector<8x256xf32>
      %254 = vector.extract_strided_slice %241 {offsets = [0, 256], sizes = [8, 256], strides = [1, 1]} : vector<8x768xf32> to vector<8x256xf32>
      %255 = vector.extract_strided_slice %245 {offsets = [0, 256], sizes = [8, 256], strides = [1, 1]} : vector<8x768xf32> to vector<8x256xf32>
      %256 = arith.addf %254, %255 : vector<8x256xf32>
      %257 = arith.negf %256 : vector<8x256xf32>
      %258 = math.exp %257 : vector<8x256xf32>
      %cst_96 = arith.constant 1.000000e+00 : f32
      %259 = vector.broadcast %cst_96 : f32 to vector<8x256xf32>
      %260 = arith.addf %259, %258 : vector<8x256xf32>
      %261 = arith.divf %259, %260 : vector<8x256xf32>
      %262 = vector.extract_strided_slice %241 {offsets = [0, 512], sizes = [8, 256], strides = [1, 1]} : vector<8x768xf32> to vector<8x256xf32>
      %263 = vector.extract_strided_slice %245 {offsets = [0, 512], sizes = [8, 256], strides = [1, 1]} : vector<8x768xf32> to vector<8x256xf32>
      %264 = arith.mulf %253, %263 : vector<8x256xf32>
      %265 = arith.addf %262, %264 : vector<8x256xf32>
      %266 = math.tanh %265 : vector<8x256xf32>
      %cst_97 = arith.constant 1.000000e+00 : f32
      %267 = vector.broadcast %cst_97 : f32 to vector<8x256xf32>
      %268 = arith.subf %267, %261 : vector<8x256xf32>
      %269 = arith.mulf %268, %266 : vector<8x256xf32>
      %270 = arith.mulf %261, %242 : vector<8x256xf32>
      %271 = arith.addf %269, %270 : vector<8x256xf32>
      %c0_98 = arith.constant 0 : index
      %c0_99 = arith.constant 0 : index
      %272 = vector.load %arg17[%c0_98, %c0_99] : memref<8x256xf32, #tpu.memory_space<vmem>>, vector<8x256xf32>
      tpu.vector_store %arg17[%c0_98, %c0_99], %271 {strides = array<i32>} : memref<8x256xf32, #tpu.memory_space<vmem>>, vector<8x256xf32>,
      %273 = vector.broadcast %237 : i32 to vector<8x1xi32>
      %274 = arith.cmpi eq, %19, %273 : vector<8x1xi32>
      %c0_100 = arith.constant 0 : index
      %c0_101 = arith.constant 0 : index
      %275 = vector.load %arg18[%c0_100, %c0_101] : memref<8x256xf32, #tpu.memory_space<vmem>>, vector<8x256xf32>
      %276 = vector.shape_cast %274 : vector<8x1xi1> to vector<8x1xi1>
      %277 = vector.broadcast %276 : vector<8x1xi1> to vector<8x256xi1>
      %278 = arith.select %277, %271, %275 : vector<8x256xi1>, vector<8x256xf32>
      %c0_102 = arith.constant 0 : index
      %c0_103 = arith.constant 0 : index
      %279 = vector.load %arg18[%c0_102, %c0_103] : memref<8x256xf32, #tpu.memory_space<vmem>>, vector<8x256xf32>
      tpu.vector_store %arg18[%c0_102, %c0_103], %278 {strides = array<i32>} : memref<8x256xf32, #tpu.memory_space<vmem>>, vector<8x256xf32>,
      %c6_i32 = arith.constant 6 : i32
      %280 = arith.addi %0, %c6_i32 : i32
      %c8_i32_104 = arith.constant 8 : i32
      %281 = arith.muli %c6_i32, %c8_i32_104 : i32
      %282 = tpu.assume_multiple %281, 8 : i32
      %283 = arith.index_cast %282 : i32 to index
      %c0_105 = arith.constant 0 : index
      %284 = vector.load %arg16[%283, %c0_105] : memref<64x768xf32, #tpu.memory_space<vmem>>, vector<8x768xf32>
      %c0_106 = arith.constant 0 : index
      %c0_107 = arith.constant 0 : index
      %285 = vector.load %arg17[%c0_106, %c0_107] : memref<8x256xf32, #tpu.memory_space<vmem>>, vector<8x256xf32>
      %cst_108 = arith.constant dense<0.000000e+00> : vector<8x768xf32>
      %286 = tpu.matmul %285, %20, %cst_108 {dimension_numbers = #tpu.dot_dimension_numbers<[1], [0], [0], [1], [0, 0, 1, 1], [], []>} : vector<8x256xf32>, vector<256x768xf32>, vector<8x768xf32> -> vector<8x768xf32>
      %287 = vector.broadcast %21 : vector<1x768xf32> to vector<8x768xf32>
      %288 = arith.addf %286, %287 : vector<8x768xf32>
      %289 = vector.extract_strided_slice %284 {offsets = [0, 0], sizes = [8, 256], strides = [1, 1]} : vector<8x768xf32> to vector<8x256xf32>
      %290 = vector.extract_strided_slice %288 {offsets = [0, 0], sizes = [8, 256], strides = [1, 1]} : vector<8x768xf32> to vector<8x256xf32>
      %291 = arith.addf %289, %290 : vector<8x256xf32>
      %292 = arith.negf %291 : vector<8x256xf32>
      %293 = math.exp %292 : vector<8x256xf32>
      %cst_109 = arith.constant 1.000000e+00 : f32
      %294 = vector.broadcast %cst_109 : f32 to vector<8x256xf32>
      %295 = arith.addf %294, %293 : vector<8x256xf32>
      %296 = arith.divf %294, %295 : vector<8x256xf32>
      %297 = vector.extract_strided_slice %284 {offsets = [0, 256], sizes = [8, 256], strides = [1, 1]} : vector<8x768xf32> to vector<8x256xf32>
      %298 = vector.extract_strided_slice %288 {offsets = [0, 256], sizes = [8, 256], strides = [1, 1]} : vector<8x768xf32> to vector<8x256xf32>
      %299 = arith.addf %297, %298 : vector<8x256xf32>
      %300 = arith.negf %299 : vector<8x256xf32>
      %301 = math.exp %300 : vector<8x256xf32>
      %cst_110 = arith.constant 1.000000e+00 : f32
      %302 = vector.broadcast %cst_110 : f32 to vector<8x256xf32>
      %303 = arith.addf %302, %301 : vector<8x256xf32>
      %304 = arith.divf %302, %303 : vector<8x256xf32>
      %305 = vector.extract_strided_slice %284 {offsets = [0, 512], sizes = [8, 256], strides = [1, 1]} : vector<8x768xf32> to vector<8x256xf32>
      %306 = vector.extract_strided_slice %288 {offsets = [0, 512], sizes = [8, 256], strides = [1, 1]} : vector<8x768xf32> to vector<8x256xf32>
      %307 = arith.mulf %296, %306 : vector<8x256xf32>
      %308 = arith.addf %305, %307 : vector<8x256xf32>
      %309 = math.tanh %308 : vector<8x256xf32>
      %cst_111 = arith.constant 1.000000e+00 : f32
      %310 = vector.broadcast %cst_111 : f32 to vector<8x256xf32>
      %311 = arith.subf %310, %304 : vector<8x256xf32>
      %312 = arith.mulf %311, %309 : vector<8x256xf32>
      %313 = arith.mulf %304, %285 : vector<8x256xf32>
      %314 = arith.addf %312, %313 : vector<8x256xf32>
      %c0_112 = arith.constant 0 : index
      %c0_113 = arith.constant 0 : index
      %315 = vector.load %arg17[%c0_112, %c0_113] : memref<8x256xf32, #tpu.memory_space<vmem>>, vector<8x256xf32>
      tpu.vector_store %arg17[%c0_112, %c0_113], %314 {strides = array<i32>} : memref<8x256xf32, #tpu.memory_space<vmem>>, vector<8x256xf32>,
      %316 = vector.broadcast %280 : i32 to vector<8x1xi32>
      %317 = arith.cmpi eq, %19, %316 : vector<8x1xi32>
      %c0_114 = arith.constant 0 : index
      %c0_115 = arith.constant 0 : index
      %318 = vector.load %arg18[%c0_114, %c0_115] : memref<8x256xf32, #tpu.memory_space<vmem>>, vector<8x256xf32>
      %319 = vector.shape_cast %317 : vector<8x1xi1> to vector<8x1xi1>
      %320 = vector.broadcast %319 : vector<8x1xi1> to vector<8x256xi1>
      %321 = arith.select %320, %314, %318 : vector<8x256xi1>, vector<8x256xf32>
      %c0_116 = arith.constant 0 : index
      %c0_117 = arith.constant 0 : index
      %322 = vector.load %arg18[%c0_116, %c0_117] : memref<8x256xf32, #tpu.memory_space<vmem>>, vector<8x256xf32>
      tpu.vector_store %arg18[%c0_116, %c0_117], %321 {strides = array<i32>} : memref<8x256xf32, #tpu.memory_space<vmem>>, vector<8x256xf32>,
      %c7_i32 = arith.constant 7 : i32
      %323 = arith.addi %0, %c7_i32 : i32
      %c8_i32_118 = arith.constant 8 : i32
      %324 = arith.muli %c7_i32, %c8_i32_118 : i32
      %325 = tpu.assume_multiple %324, 8 : i32
      %326 = arith.index_cast %325 : i32 to index
      %c0_119 = arith.constant 0 : index
      %327 = vector.load %arg16[%326, %c0_119] : memref<64x768xf32, #tpu.memory_space<vmem>>, vector<8x768xf32>
      %c0_120 = arith.constant 0 : index
      %c0_121 = arith.constant 0 : index
      %328 = vector.load %arg17[%c0_120, %c0_121] : memref<8x256xf32, #tpu.memory_space<vmem>>, vector<8x256xf32>
      %cst_122 = arith.constant dense<0.000000e+00> : vector<8x768xf32>
      %329 = tpu.matmul %328, %20, %cst_122 {dimension_numbers = #tpu.dot_dimension_numbers<[1], [0], [0], [1], [0, 0, 1, 1], [], []>} : vector<8x256xf32>, vector<256x768xf32>, vector<8x768xf32> -> vector<8x768xf32>
      %330 = vector.broadcast %21 : vector<1x768xf32> to vector<8x768xf32>
      %331 = arith.addf %329, %330 : vector<8x768xf32>
      %332 = vector.extract_strided_slice %327 {offsets = [0, 0], sizes = [8, 256], strides = [1, 1]} : vector<8x768xf32> to vector<8x256xf32>
      %333 = vector.extract_strided_slice %331 {offsets = [0, 0], sizes = [8, 256], strides = [1, 1]} : vector<8x768xf32> to vector<8x256xf32>
      %334 = arith.addf %332, %333 : vector<8x256xf32>
      %335 = arith.negf %334 : vector<8x256xf32>
      %336 = math.exp %335 : vector<8x256xf32>
      %cst_123 = arith.constant 1.000000e+00 : f32
      %337 = vector.broadcast %cst_123 : f32 to vector<8x256xf32>
      %338 = arith.addf %337, %336 : vector<8x256xf32>
      %339 = arith.divf %337, %338 : vector<8x256xf32>
      %340 = vector.extract_strided_slice %327 {offsets = [0, 256], sizes = [8, 256], strides = [1, 1]} : vector<8x768xf32> to vector<8x256xf32>
      %341 = vector.extract_strided_slice %331 {offsets = [0, 256], sizes = [8, 256], strides = [1, 1]} : vector<8x768xf32> to vector<8x256xf32>
      %342 = arith.addf %340, %341 : vector<8x256xf32>
      %343 = arith.negf %342 : vector<8x256xf32>
      %344 = math.exp %343 : vector<8x256xf32>
      %cst_124 = arith.constant 1.000000e+00 : f32
      %345 = vector.broadcast %cst_124 : f32 to vector<8x256xf32>
      %346 = arith.addf %345, %344 : vector<8x256xf32>
      %347 = arith.divf %345, %346 : vector<8x256xf32>
      %348 = vector.extract_strided_slice %327 {offsets = [0, 512], sizes = [8, 256], strides = [1, 1]} : vector<8x768xf32> to vector<8x256xf32>
      %349 = vector.extract_strided_slice %331 {offsets = [0, 512], sizes = [8, 256], strides = [1, 1]} : vector<8x768xf32> to vector<8x256xf32>
      %350 = arith.mulf %339, %349 : vector<8x256xf32>
      %351 = arith.addf %348, %350 : vector<8x256xf32>
      %352 = math.tanh %351 : vector<8x256xf32>
      %cst_125 = arith.constant 1.000000e+00 : f32
      %353 = vector.broadcast %cst_125 : f32 to vector<8x256xf32>
      %354 = arith.subf %353, %347 : vector<8x256xf32>
      %355 = arith.mulf %354, %352 : vector<8x256xf32>
      %356 = arith.mulf %347, %328 : vector<8x256xf32>
      %357 = arith.addf %355, %356 : vector<8x256xf32>
      %c0_126 = arith.constant 0 : index
      %c0_127 = arith.constant 0 : index
      %358 = vector.load %arg17[%c0_126, %c0_127] : memref<8x256xf32, #tpu.memory_space<vmem>>, vector<8x256xf32>
      tpu.vector_store %arg17[%c0_126, %c0_127], %357 {strides = array<i32>} : memref<8x256xf32, #tpu.memory_space<vmem>>, vector<8x256xf32>,
      %359 = vector.broadcast %323 : i32 to vector<8x1xi32>
      %360 = arith.cmpi eq, %19, %359 : vector<8x1xi32>
      %c0_128 = arith.constant 0 : index
      %c0_129 = arith.constant 0 : index
      %361 = vector.load %arg18[%c0_128, %c0_129] : memref<8x256xf32, #tpu.memory_space<vmem>>, vector<8x256xf32>
      %362 = vector.shape_cast %360 : vector<8x1xi1> to vector<8x1xi1>
      %363 = vector.broadcast %362 : vector<8x1xi1> to vector<8x256xi1>
      %364 = arith.select %363, %357, %361 : vector<8x256xi1>, vector<8x256xf32>
      %c0_130 = arith.constant 0 : index
      %c0_131 = arith.constant 0 : index
      %365 = vector.load %arg18[%c0_130, %c0_131] : memref<8x256xf32, #tpu.memory_space<vmem>>, vector<8x256xf32>
      tpu.vector_store %arg18[%c0_130, %c0_131], %364 {strides = array<i32>} : memref<8x256xf32, #tpu.memory_space<vmem>>, vector<8x256xf32>,
      %c8_i32_132 = arith.constant 8 : i32
    } else {
    }
    %c0_i32_2 = arith.constant 0 : i32
    %8 = arith.cmpi eq, %arg1, %c0_i32_2 : i32
    %9 = arith.extui %8 : i1 to i32
    %c0_i32_3 = arith.constant 0 : i32
    %10 = arith.cmpi ne, %9, %c0_i32_3 : i32
    scf.if %10 {
      %c0_4 = arith.constant 0 : index
      %c0_5 = arith.constant 0 : index
      %11 = vector.load %arg18[%c0_4, %c0_5] : memref<8x256xf32, #tpu.memory_space<vmem>>, vector<8x256xf32>
      %c0_6 = arith.constant 0 : index
      %c0_7 = arith.constant 0 : index
      %12 = vector.load %arg9[%c0_6, %c0_7] : memref<256x256xf32, #tpu.memory_space<vmem>>, vector<256x256xf32>
      %cst = arith.constant dense<0.000000e+00> : vector<8x256xf32>
      %13 = tpu.matmul %11, %12, %cst {dimension_numbers = #tpu.dot_dimension_numbers<[1], [0], [0], [1], [0, 0, 1, 1], [], []>} : vector<8x256xf32>, vector<256x256xf32>, vector<8x256xf32> -> vector<8x256xf32>
      %c0_8 = arith.constant 0 : index
      %c0_9 = arith.constant 0 : index
      %14 = vector.load %arg10[%c0_8, %c0_9] : memref<1x256xf32, #tpu.memory_space<vmem>>, vector<1x256xf32>
      %15 = vector.broadcast %14 : vector<1x256xf32> to vector<8x256xf32>
      %16 = arith.addf %13, %15 : vector<8x256xf32>
      %cst_10 = arith.constant 0.000000e+00 : f32
      %17 = vector.broadcast %cst_10 : f32 to vector<8x256xf32>
      %18 = arith.maximumf %16, %17 : vector<8x256xf32>
      %c0_11 = arith.constant 0 : index
      %c0_12 = arith.constant 0 : index
      %19 = vector.load %arg11[%c0_11, %c0_12] : memref<256x128xf32, #tpu.memory_space<vmem>>, vector<256x128xf32>
      %cst_13 = arith.constant dense<0.000000e+00> : vector<8x128xf32>
      %20 = tpu.matmul %18, %19, %cst_13 {dimension_numbers = #tpu.dot_dimension_numbers<[1], [0], [0], [1], [0, 0, 1, 1], [], []>} : vector<8x256xf32>, vector<256x128xf32>, vector<8x128xf32> -> vector<8x128xf32>
      %c0_14 = arith.constant 0 : index
      %c0_15 = arith.constant 0 : index
      %21 = vector.load %arg12[%c0_14, %c0_15] : memref<1x128xf32, #tpu.memory_space<vmem>>, vector<1x128xf32>
      %22 = vector.broadcast %21 : vector<1x128xf32> to vector<8x128xf32>
      %23 = arith.addf %20, %22 : vector<8x128xf32>
      %cst_16 = arith.constant 0.000000e+00 : f32
      %24 = vector.broadcast %cst_16 : f32 to vector<8x128xf32>
      %25 = arith.maximumf %23, %24 : vector<8x128xf32>
      %c0_17 = arith.constant 0 : index
      %c0_18 = arith.constant 0 : index
      %26 = vector.load %arg13[%c0_17, %c0_18] : memref<128x128xf32, #tpu.memory_space<vmem>>, vector<128x128xf32>
      %cst_19 = arith.constant dense<0.000000e+00> : vector<8x128xf32>
      %27 = tpu.matmul %25, %26, %cst_19 {dimension_numbers = #tpu.dot_dimension_numbers<[1], [0], [0], [1], [0, 0, 1, 1], [], []>} : vector<8x128xf32>, vector<128x128xf32>, vector<8x128xf32> -> vector<8x128xf32>
      %c0_20 = arith.constant 0 : index
      %c0_21 = arith.constant 0 : index
      %28 = vector.load %arg14[%c0_20, %c0_21] : memref<1x128xf32, #tpu.memory_space<vmem>>, vector<1x128xf32>
      %29 = vector.broadcast %28 : vector<1x128xf32> to vector<8x128xf32>
      %30 = arith.addf %27, %29 : vector<8x128xf32>
      %c0_22 = arith.constant 0 : index
      %c0_23 = arith.constant 0 : index
      %31 = vector.load %arg15[%c0_22, %c0_23] : memref<8x128xf32, #tpu.memory_space<vmem>>, vector<8x128xf32>
      tpu.vector_store %arg15[%c0_22, %c0_23], %30 {strides = array<i32>} : memref<8x128xf32, #tpu.memory_space<vmem>>, vector<8x128xf32>,
    } else {
    }
    return
  }
  func.func @transform_0(%arg0: i32, %arg1: i32, %arg2: memref<1xi32, #tpu.memory_space<smem>>) -> (i32, i32) {
    %c0_i32 = arith.constant 0 : i32
    %c0_i32_0 = arith.constant 0 : i32
    return %arg0, %c0_i32 : i32, i32
  }
  func.func @transform_1(%arg0: i32, %arg1: i32, %arg2: memref<1xi32, #tpu.memory_space<smem>>) -> (i32, i32, i32) {
    %c0_i32 = arith.constant 0 : i32
    %c0_i32_0 = arith.constant 0 : i32
    return %arg1, %arg0, %c0_i32 : i32, i32, i32
  }
  func.func @transform_2(%arg0: i32, %arg1: i32, %arg2: memref<1xi32, #tpu.memory_space<smem>>) -> (i32, i32) {
    %c0_i32 = arith.constant 0 : i32
    %c0_i32_0 = arith.constant 0 : i32
    %c0_i32_1 = arith.constant 0 : i32
    return %c0_i32, %c0_i32_0 : i32, i32
  }
  func.func @transform_3(%arg0: i32, %arg1: i32, %arg2: memref<1xi32, #tpu.memory_space<smem>>) -> (i32, i32) {
    %c0_i32 = arith.constant 0 : i32
    %c0_i32_0 = arith.constant 0 : i32
    %c0_i32_1 = arith.constant 0 : i32
    return %c0_i32, %c0_i32_0 : i32, i32
  }
  func.func @transform_4(%arg0: i32, %arg1: i32, %arg2: memref<1xi32, #tpu.memory_space<smem>>) -> (i32, i32) {
    %c0_i32 = arith.constant 0 : i32
    %c0_i32_0 = arith.constant 0 : i32
    %c0_i32_1 = arith.constant 0 : i32
    return %c0_i32, %c0_i32_0 : i32, i32
  }
  func.func @transform_5(%arg0: i32, %arg1: i32, %arg2: memref<1xi32, #tpu.memory_space<smem>>) -> (i32, i32) {
    %c0_i32 = arith.constant 0 : i32
    %c0_i32_0 = arith.constant 0 : i32
    %c0_i32_1 = arith.constant 0 : i32
    return %c0_i32, %c0_i32_0 : i32, i32
  }
  func.func @transform_6(%arg0: i32, %arg1: i32, %arg2: memref<1xi32, #tpu.memory_space<smem>>) -> (i32, i32) {
    %c0_i32 = arith.constant 0 : i32
    %c0_i32_0 = arith.constant 0 : i32
    %c0_i32_1 = arith.constant 0 : i32
    return %c0_i32, %c0_i32_0 : i32, i32
  }
  func.func @transform_7(%arg0: i32, %arg1: i32, %arg2: memref<1xi32, #tpu.memory_space<smem>>) -> (i32, i32) {
    %c0_i32 = arith.constant 0 : i32
    %c0_i32_0 = arith.constant 0 : i32
    %c0_i32_1 = arith.constant 0 : i32
    return %c0_i32, %c0_i32_0 : i32, i32
  }
  func.func @transform_8(%arg0: i32, %arg1: i32, %arg2: memref<1xi32, #tpu.memory_space<smem>>) -> (i32, i32) {
    %c0_i32 = arith.constant 0 : i32
    %c0_i32_0 = arith.constant 0 : i32
    %c0_i32_1 = arith.constant 0 : i32
    return %c0_i32, %c0_i32_0 : i32, i32
  }
  func.func @transform_9(%arg0: i32, %arg1: i32, %arg2: memref<1xi32, #tpu.memory_space<smem>>) -> (i32, i32) {
    %c0_i32 = arith.constant 0 : i32
    %c0_i32_0 = arith.constant 0 : i32
    %c0_i32_1 = arith.constant 0 : i32
    return %c0_i32, %c0_i32_0 : i32, i32
  }
  func.func @transform_10(%arg0: i32, %arg1: i32, %arg2: memref<1xi32, #tpu.memory_space<smem>>) -> (i32, i32) {
    %c0_i32 = arith.constant 0 : i32
    %c0_i32_0 = arith.constant 0 : i32
    %c0_i32_1 = arith.constant 0 : i32
    return %c0_i32, %c0_i32_0 : i32, i32
  }
  func.func @transform_11(%arg0: i32, %arg1: i32, %arg2: memref<1xi32, #tpu.memory_space<smem>>) -> (i32, i32) {
    %c0_i32 = arith.constant 0 : i32
    %c0_i32_0 = arith.constant 0 : i32
    %c0_i32_1 = arith.constant 0 : i32
    return %c0_i32, %c0_i32_0 : i32, i32
  }
  func.func @transform_12(%arg0: i32, %arg1: i32, %arg2: memref<1xi32, #tpu.memory_space<smem>>) -> (i32, i32) {
    %c0_i32 = arith.constant 0 : i32
    %c0_i32_0 = arith.constant 0 : i32
    return %arg0, %c0_i32 : i32, i32
  }
}

</mosaic_0001>

<bundles_post_ra>
// kernel: tpu_custom_call.1
= control target key start
LH: loop header
LB: loop body
LE: loop exit
PB: predicated region body
PF: predicated region fallthrough
CT: control target
= control target key end

     0   :  { %19 = vsyncpa [#allocation8], 0  ;;  %s7358_s0 = inlined_call_operand.<no memory space> [shape: s32[1], index: 0, kind: input, shape index: {}]   ;;  %s7359_s1 = inlined_call_operand.vmem [shape: s32[8,1], index: 1, kind: input, shape index: {}]   ;;  %s7360_s2 = inlined_call_operand.hbm [shape: f32[8,8,32], index: 2, kind: input, shape index: {}]   ;;  %s7361_s3 = inlined_call_operand.hbm [shape: f32[32,768], index: 3, kind: input, shape index: {}]   ;;  %s7362_s4 = inlined_call_operand.vmem [shape: f32[1,768], index: 4, kind: input, shape index: {}]   ;;  %s7363_s5 = inlined_call_operand.hbm [shape: f32[256,768], index: 5, kind: input, shape index: {}]   ;;  %s7364_s6 = inlined_call_operand.vmem [shape: f32[1,768], index: 6, kind: input, shape index: {}]   ;;  %s7365_s7 = inlined_call_operand.hbm [shape: f32[256,256], index: 7, kind: input, shape index: {}]   ;;  %s7366_s8 = inlined_call_operand.vmem [shape: f32[1,256], index: 8, kind: input, shape index: {}]   ;;  %s7367_s9 = inlined_call_operand.hbm [shape: f32[256,128], index: 9, kind: input, shape index: {}]   ;;  %s7368_s10 = inlined_call_operand.vmem [shape: f32[1,128], index: 10, kind: input, shape index: {}]   ;;  %s7369_s11 = inlined_call_operand.hbm [shape: f32[128,128], index: 11, kind: input, shape index: {}]   ;;  %s7370_s12 = inlined_call_operand.vmem [shape: f32[1,128], index: 12, kind: input, shape index: {}]   ;;  %s7371_s13 = inlined_call_operand.hbm [shape: f32[8,128], index: 13, kind: output, shape index: {}]  }
   0x1   :  { %20 = vsyncpa [#allocation11], 0 }
   0x2   :  { %21 = vsyncpa [#allocation14], 0 }
   0x3   :  { %22 = vsyncpa [#allocation17], 0 }
   0x4   :  { %23 = vsyncpa [#allocation9], 0  ;;  %s5752_s25 = smov [#allocation10]   ;;  %s5588_s29 = scalar_lea.hbm %s7361_s3, 3072 }
   0x5   :  { %s43_s26 = sshll.u32 %s5752_s25, 4  ;;  %p5589_p0 = scmp.ne.s32.totalorder %s7361_s3, %s5588_s29  ;;  %s44_s26 = int_to_ptr.vmem [resolvable:$true] %s43_s26 }
   0x6   :  { %p5592_p1 = scmp.lt.u32.totalorder %s5588_s29, %s7361_s3 }
   0x8   :  { %p5594_p2 = pnand %p5592_p1, %p5589_p0 }
   0xa   :  { %5597 = shalt.err (!%p5594_p2)
}
   0xb   :  { %s5598_s17 = scalar_lea.vmem %s44_s26, 3072  ;;  %p5603_p4 = scmp.lt.s32.totalorder %s44_s26, %s44_s26 }
   0xc   :  { %p5599_p3 = scmp.ne.s32.totalorder %s44_s26, %s5598_s17  ;;  %p5604_p5 = scmp.lt.s32.totalorder %s5598_s17, %s5598_s17 }
   0xe   :  { %p5605_p6 = por %p5604_p5, %p5603_p4 }
  0x10   :  { %p5606_p7 = pnand %p5605_p6, %p5599_p3 }
  0x12   :  { %5609 = shalt.err (!%p5606_p7)
}
  0x13   :  { %s5753_s18 = smov 768   ;;  %s5754_s19 = smov 48  }
  0x14   :  { %49 = dma.hbm_to_vmem [thread:$0]  %s7361_s3, 3072, %s44_s26, [#allocation11], %s5753_s18, %s5753_s18, %s5754_s19  }
  0x15   :  { %s5755_s22 = smov [#allocation13]   ;;  %s5610_s27 = scalar_lea.hbm %s7365_s7, 8192 }
  0x16   :  { %s71_s23 = sshll.u32 %s5755_s22, 4  ;;  %p5611_p8 = scmp.ne.s32.totalorder %s7365_s7, %s5610_s27  ;;  %s72_s23 = int_to_ptr.vmem [resolvable:$true] %s71_s23 }
  0x17   :  { %p5614_p9 = scmp.lt.u32.totalorder %s5610_s27, %s7365_s7 }
  0x19   :  { %p5616_p10 = pnand %p5614_p9, %p5611_p8 }
  0x1b   :  { %5619 = shalt.err (!%p5616_p10)
}
  0x1c   :  { %s5620_s15 = scalar_lea.vmem %s72_s23, 8192  ;;  %p5625_p12 = scmp.lt.s32.totalorder %s72_s23, %s72_s23 }
  0x1d   :  { %p5621_p11 = scmp.ne.s32.totalorder %s72_s23, %s5620_s15  ;;  %p5626_p13 = scmp.lt.s32.totalorder %s5620_s15, %s5620_s15 }
  0x1f   :  { %p5627_p0 = por %p5626_p13, %p5625_p12 }
  0x21   :  { %p5628_p1 = pnand %p5627_p0, %p5621_p11 }
  0x23   :  { %5631 = shalt.err (!%p5628_p1)
}
  0x24   :  { %s5756_s3 = smov 256   ;;  %s5757_s26 = smov 16  }
  0x25   :  { %77 = dma.hbm_to_vmem [thread:$0]  %s7365_s7, 8192, %s72_s23, [#allocation14], %s5756_s3, %s5756_s3, %s5757_s26  }
  0x26   :  { %s5758_s20 = smov [#allocation7]   ;;  %s5632_s25 = scalar_lea.hbm %s7360_s2, 1024 }
  0x27   :  { %s31_s21 = sshll.u32 %s5758_s20, 4  ;;  %p5633_p2 = scmp.ne.s32.totalorder %s7360_s2, %s5632_s25  ;;  %s32_s21 = int_to_ptr.vmem [resolvable:$true] %s31_s21 }
  0x28   :  { %p5636_p3 = scmp.lt.u32.totalorder %s5632_s25, %s7360_s2 }
  0x2a   :  { %p5638_p4 = pnand %p5636_p3, %p5633_p2 }
  0x2c   :  { %5641 = shalt.err (!%p5638_p4)
}
  0x2d   :  { %s5642_s14 = scalar_lea.vmem %s32_s21, 1024  ;;  %p5647_p6 = scmp.lt.s32.totalorder %s32_s21, %s32_s21 }
  0x2e   :  { %p5643_p5 = scmp.ne.s32.totalorder %s32_s21, %s5642_s14  ;;  %p5648_p7 = scmp.lt.s32.totalorder %s5642_s14, %s5642_s14 }
  0x30   :  { %p5649_p8 = por %p5648_p7, %p5647_p6 }
  0x32   :  { %p5650_p9 = pnand %p5649_p8, %p5643_p5 }
  0x34   :  { %5653 = shalt.err (!%p5650_p9)
}
  0x35   :  { %s5759_s7 = smov 128   ;;  %s5760_s23 = smov 8  }
  0x36   :  { %37 = dma.hbm_to_vmem [thread:$0]  %s7360_s2, 1024, %s32_s21, [#allocation8], %s5759_s7, %s5759_s7, %s5760_s23  }
  0x37   :  { %s5761_s26 = smov [#allocation12]   ;;  %s5762_s17 = smov [#allocation15]  }
  0x38   :  { %s57_s16 = sshll.u32 %s5761_s26, 4  ;;  %s85_s20 = sshll.u32 %s5762_s17, 4  ;;  %s58_s16 = int_to_ptr.vmem [resolvable:$true] %s57_s16  ;;  %s86_s20 = int_to_ptr.vmem [resolvable:$true] %s85_s20 }
  0x39   :  { %s5654_s25 = scalar_lea.hbm %s7363_s5, 24576 }
  0x3a   :  { %p5655_p10 = scmp.ne.s32.totalorder %s7363_s5, %s5654_s25  ;;  %p5658_p11 = scmp.lt.u32.totalorder %s5654_s25, %s7363_s5 }
  0x3c   :  { %p5660_p12 = pnand %p5658_p11, %p5655_p10 }
  0x3e   :  { %5663 = shalt.err (!%p5660_p12)
}
  0x3f   :  { %s5664_s2 = scalar_lea.vmem %s58_s16, 24576  ;;  %p5669_p0 = scmp.lt.s32.totalorder %s58_s16, %s58_s16 }
  0x40   :  { %p5665_p13 = scmp.ne.s32.totalorder %s58_s16, %s5664_s2  ;;  %p5670_p1 = scmp.lt.s32.totalorder %s5664_s2, %s5664_s2 }
  0x42   :  { %p5671_p2 = por %p5670_p1, %p5669_p0 }
  0x44   :  { %p5672_p3 = pnand %p5671_p2, %p5665_p13 }
  0x46   :  { %5675 = shalt.err (!%p5672_p3)
}
  0x47   :  { %63 = dma.hbm_to_vmem [thread:$0]  %s7363_s5, 24576, %s58_s16, [#allocation11], %s5753_s18, %s5753_s18, %s5754_s19  }
  0x48   :  { %s5676_s26 = scalar_lea.hbm %s7367_s9, 4096 }
  0x49   :  { %p5677_p4 = scmp.ne.s32.totalorder %s7367_s9, %s5676_s26  ;;  %p5680_p5 = scmp.lt.u32.totalorder %s5676_s26, %s7367_s9 }
  0x4b   :  { %p5682_p6 = pnand %p5680_p5, %p5677_p4 }
  0x4d   :  { %5685 = shalt.err (!%p5682_p6)
}
  0x4e   :  { %s5686_s27 = scalar_lea.vmem %s86_s20, 4096  ;;  %p5691_p8 = scmp.lt.s32.totalorder %s86_s20, %s86_s20 }
  0x4f   :  { %p5687_p7 = scmp.ne.s32.totalorder %s86_s20, %s5686_s27  ;;  %p5692_p9 = scmp.lt.s32.totalorder %s5686_s27, %s5686_s27 }
  0x51   :  { %p5693_p10 = por %p5692_p9, %p5691_p8 }
  0x53   :  { %p5694_p11 = pnand %p5693_p10, %p5687_p7 }
  0x55   :  { %5697 = shalt.err (!%p5694_p11)
}
  0x56   :  { %91 = dma.hbm_to_vmem [thread:$0]  %s7367_s9, 4096, %s86_s20, [#allocation14], %s5759_s7, %s5759_s7, %s5760_s23  }
  0x57   :  { %s5763_s19 = smov [#allocation16]   ;;  %s5698_s30 = scalar_lea.hbm %s7369_s11, 2048 }
  0x58   :  { %s99_s16 = sshll.u32 %s5763_s19, 4  ;;  %p5699_p12 = scmp.ne.s32.totalorder %s7369_s11, %s5698_s30  ;;  %s100_s16 = int_to_ptr.vmem [resolvable:$true] %s99_s16 }
  0x59   :  { %p5702_p13 = scmp.lt.u32.totalorder %s5698_s30, %s7369_s11 }
  0x5b   :  { %p5704_p0 = pnand %p5702_p13, %p5699_p12 }
  0x5d   :  { %5707 = shalt.err (!%p5704_p0)
}
  0x5e   :  { %s5708_s3 = scalar_lea.vmem %s100_s16, 2048  ;;  %p5713_p2 = scmp.lt.s32.totalorder %s100_s16, %s100_s16 }
  0x5f   :  { %p5709_p1 = scmp.ne.s32.totalorder %s100_s16, %s5708_s3  ;;  %p5714_p3 = scmp.lt.s32.totalorder %s5708_s3, %s5708_s3 }
  0x61   :  { %p5715_p4 = por %p5714_p3, %p5713_p2 }
  0x63   :  { %p5716_p5 = pnand %p5715_p4, %p5709_p1 }
  0x65   :  { %5719 = shalt.err (!%p5716_p5)
}
  0x66   :  { %105 = dma.hbm_to_vmem [thread:$0]  %s7369_s11, 2048, %s100_s16, [#allocation17], %s5759_s7, %s5759_s7, %s5760_s23  }
  0x67   :  { %5742 = dma.done.wait [#allocation8], 1024  }
  0x68   :  { %5743 = vsyncadd [#allocation8], 4294966272 }
  0x69   :  { %5744 = dma.done.wait [#allocation11], 27648  }
  0x6a   :  { %5745 = vsyncadd [#allocation11], 4294939648 }
  0x6b   :  { %5746 = dma.done.wait [#allocation14], 12288  }
  0x6c   :  { %5747 = vsyncadd [#allocation14], 4294955008 }
  0x6d   :  { %5748 = dma.done.wait [#allocation17], 2048  }
  0x6e   :  { %5749 = vsyncadd [#allocation17], 4294965248  ;;  %v7372_v0 = vmov 0.0   ;;  %p3480_p6 = scmp.lt.s32.totalorder %s7358_s0, 0 }
  0x6f   :  { %132 = vst [vmem:[#allocation3] sm:$0xff] %v7372_v0  ;;  %133 = vst [vmem:[#allocation3 + $0x8] sm:$0xff] %v7372_v0 }
  0x70   :  { %134 = vst [vmem:[#allocation4] sm:$0xff] %v7372_v0  ;;  %135 = vst [vmem:[#allocation4 + $0x8] sm:$0xff] %v7372_v0  ;;  %139 = sbr.rel (%p3480_p6) target bundleno = 2603 (0xa2b), region = 81 }
  0x77   :  { %v149_v1 = vld [vmem:[#allocation10 + $0x8] sm:$0xff]  ;;  %v155_v2 = vld [vmem:[#allocation10 + $0x38] sm:$0xff]  ;;  %v148_v3 = vld [vmem:[#allocation10] sm:$0xff]  ;;  %v5765_v8 = vmov 0.0   ;;  %vm204_vm0 = vcmask 261120  }
  0x78   :  { %v3626_v4 = vpack.c.bf16 %v155_v2, %v149_v1  ;;  %v154_v5 = vld [vmem:[#allocation10 + $0x30] sm:$0xff]  ;;  %v161_v6 = vld [vmem:[#allocation10 + $0x68] sm:$0xff]  ;;  %v167_v7 = vld [vmem:[#allocation10 + $0x98] sm:$0xff]  ;;  %293 = vmatprep.mubr.f32.mxu0 %v5765_v8  ;;  %317 = vmatprep.mubr.f32.mxu1 %v5765_v8 }
  0x79   :  { %v3628_v9 = vpack.c.bf16 %v154_v5, %v148_v3  ;;  %v3630_v10 = vpack.c.bf16 %v167_v7, %v161_v6  ;;  %v160_v11 = vld [vmem:[#allocation10 + $0x60] sm:$0xff]  ;;  %v166_v12 = vld [vmem:[#allocation10 + $0x90] sm:$0xff]  ;;  %v151_v13 = vld [vmem:[#allocation10 + $0x18] sm:$0xff] }
  0x7a   :  { %3627 = vmatprep.subr.bf16.mxu0 %v3626_v4  ;;  %5306 = vmatprep.subr.bf16.mxu1 %v3626_v4  ;;  %v157_v14 = vld [vmem:[#allocation10 + $0x48] sm:$0xff]  ;;  %v3632_v15 = vpack.c.bf16 %v166_v12, %v160_v11  ;;  %v150_v16 = vld [vmem:[#allocation10 + $0x10] sm:$0xff]  ;;  %v156_v18 = vld [vmem:[#allocation10 + $0x40] sm:$0xff] }
  0x7b   :  { %3629 = vmatpush1.bf16.msra.mxu0 %v3628_v9  ;;  %5308 = vmatpush1.bf16.msra.mxu1 %v3628_v9  ;;  %v3634_v17 = vpack.c.bf16 %v157_v14, %v151_v13  ;;  %v153_v19 = vld [vmem:[#allocation10 + $0x28] sm:$0xff]  ;;  %v159_v20 = vld [vmem:[#allocation10 + $0x58] sm:$0xff]  ;;  %v152_v24 = vld [vmem:[#allocation10 + $0x20] sm:$0xff]  ;;  %v3636_v28 = vpack.c.bf16 %v156_v18, %v150_v16 }
  0x7c   :  { %3631 = vmatprep.subr.bf16.mxu0 %v3630_v10  ;;  %5307 = vmatprep.subr.bf16.mxu1 %v3630_v10  ;;  %v3642_v21 = vpack.c.bf16 %v159_v20, %v153_v19  ;;  %v163_v22 = vld [vmem:[#allocation10 + $0x78] sm:$0xff]  ;;  %v169_v23 = vld [vmem:[#allocation10 + $0xa8] sm:$0xff]  ;;  %v158_v25 = vld [vmem:[#allocation10 + $0x50] sm:$0xff] }
  0x7d   :  { %v5936_v26 = vld [vmem:[#allocation7] sm:$0xff]  ;;  %v3638_v29 = vpack.c.bf16 %v169_v23, %v163_v22  ;;  %v162_v30 = vld [vmem:[#allocation10 + $0x70] sm:$0xff]  ;;  %v3644_v32 = vpack.c.bf16 %v158_v25, %v152_v24  ;;  %v165_v33 = vld [vmem:[#allocation10 + $0x88] sm:$0xff] }
  0x7e   :  { %v5938_v27 = vld [vmem:[#allocation7 + $0x20] sm:$0xff]  ;;  %v171_v34 = vld [vmem:[#allocation10 + $0xb8] sm:$0xff]  ;;  %v170_v36 = vld [vmem:[#allocation10 + $0xb0] sm:$0xff] }
  0x7f   :  { %3633 = vmatpush1.bf16.msra.mxu0 %v3632_v15  ;;  %5309 = vmatpush1.bf16.msra.mxu1 %v3632_v15  ;;  %v168_v31 = vld [vmem:[#allocation10 + $0xa0] sm:$0xff]  ;;  %v620_v37 = vld [vmem:[#allocation12 + $0x18] sm:$0xff]  ;;  %v626_v38 = vld [vmem:[#allocation12 + $0x48] sm:$0xff]  ;;  %v3646_v42 = vpack.c.bf16 %v171_v34, %v165_v33 }
  0x80   :  { %3635 = vmatprep.subr.bf16.mxu1 %v3634_v17  ;;  %3643 = vmatprep.subr.bf16.mxu0 %v3642_v21  ;;  %v164_v35 = vld [vmem:[#allocation10 + $0x80] sm:$0xff]  ;;  %v5945_v39 = vld [vmem:[#allocation7 + $0x8] sm:$0xff]  ;;  %v3640_v41 = vpack.c.bf16 %v168_v31, %v162_v30  ;;  %v624_v45 = vld [vmem:[#allocation12 + $0x38] sm:$0xff]  ;;  %v5950_v46 = vpack.c.bf16 %v626_v38, %v620_v37 }
  0x81   :  { %v5947_v40 = vld [vmem:[#allocation7 + $0x28] sm:$0xff]  ;;  %v3648_v43 = vpack.c.bf16 %v170_v36, %v164_v35  ;;  %v5958_v47 = vld [vmem:[#allocation7 + $0x10] sm:$0xff]  ;;  %v5969_v50 = vld [vmem:[#allocation7 + $0x18] sm:$0xff] }
  0x82   :  { %3481 = vmatmul.mubr.msk.f32.vlgmr.msra.gmra.mrb[0].mxu0 %vm204_vm0, %v5936_v26  ;;  %3485 = vmatmul.mubr.msk.f32.vlgmr.msra.gmra.mrb[0].mxu1 %vm204_vm0, %v5938_v27  ;;  %v618_v44 = vld [vmem:[#allocation12 + $0x8] sm:$0xff]  ;;  %7652 = vst [vmem:[#allocation24_spill] sm:$0xff] %v5950_v46  ;;  %v5960_v48 = vld [vmem:[#allocation7 + $0x30] sm:$0xff]  ;;  %v5973_v51 = vld [vmem:[#allocation7 + $0x38] sm:$0xff] }
  0x83   :  { %3637 = vmatpush1.bf16.msra.mxu1 %v3636_v28  ;;  %299 = vmatprep.mubr.f32.mxu0 %v5765_v8  ;;  %v5962_v49 = vpack.c.bf16 %v624_v45, %v618_v44  ;;  %v617_v52 = vld [vmem:[#allocation12] sm:$0xff]  ;;  %v623_v53 = vld [vmem:[#allocation12 + $0x30] sm:$0xff]  ;;  %v630_v56 = vld [vmem:[#allocation12 + $0x68] sm:$0xff] }
  0x84   :  { %323 = vmatprep.mubr.f32.mxu1 %v5765_v8  ;;  %3639 = vmatprep.subr.bf16.mxu1 %v3638_v29  ;;  %v619_v54 = vld [vmem:[#allocation12 + $0x10] sm:$0xff]  ;;  %v625_v55 = vld [vmem:[#allocation12 + $0x40] sm:$0xff]  ;;  %v636_v57 = vld [vmem:[#allocation12 + $0x98] sm:$0xff]  ;;  %v5982_v60 = vpack.c.bf16 %v623_v53, %v617_v52 }
  0x85   :  { %3645 = vmatpush1.bf16.msra.mxu0 %v3644_v32  ;;  %7653 = vst [vmem:[#allocation25_spill] sm:$0xff] %v5962_v49  ;;  %v632_v58 = vld [vmem:[#allocation12 + $0x78] sm:$0xff]  ;;  %v638_v59 = vld [vmem:[#allocation12 + $0xa8] sm:$0xff]  ;;  %v5984_v61 = vpack.c.bf16 %v625_v55, %v619_v54  ;;  %v629_v62 = vld [vmem:[#allocation12 + $0x60] sm:$0xff]  ;;  %v5986_v1 = vpack.c.bf16 %v636_v57, %v630_v56 }
  0x86   :  { %3482 = vmatmul.mubr.msk.f32.gmra.mrb[2].mxu0 %vm204_vm0, %v5945_v39  ;;  %3486 = vmatmul.mubr.msk.f32.gmra.mrb[2].mxu1 %vm204_vm0, %v5947_v40  ;;  %7654 = vst [vmem:[#allocation26_spill] sm:$0xff] %v5982_v60  ;;  %v635_v63 = vld [vmem:[#allocation12 + $0x90] sm:$0xff]  ;;  %v5988_v2 = vpack.c.bf16 %v638_v59, %v632_v58  ;;  %v637_v4 = vld [vmem:[#allocation12 + $0xa0] sm:$0xff]  ;;  %v642_v5 = vld [vmem:[#allocation12 + $0xc8] sm:$0xff] }
  0x87   :  { %305 = vmatprep.mubr.f32.mxu0 %v5765_v8  ;;  %329 = vmatprep.mubr.f32.mxu1 %v5765_v8  ;;  %7655 = vst [vmem:[#allocation27_spill] sm:$0xff] %v5984_v61  ;;  %7656 = vst [vmem:[#allocation28_spill] sm:$0xff] %v5986_v1  ;;  %v631_v3 = vld [vmem:[#allocation12 + $0x70] sm:$0xff]  ;;  %v648_v6 = vld [vmem:[#allocation12 + $0xf8] sm:$0xff]  ;;  %v5996_v10 = vpack.c.bf16 %v635_v63, %v629_v62 }
  0x88   :  { %3641 = vmatpush1.bf16.msra.mxu1 %v3640_v41  ;;  %3647 = vmatprep.subr.bf16.mxu0 %v3646_v42  ;;  %7657 = vst [vmem:[#allocation29_spill] sm:$0xff] %v5988_v2  ;;  %v644_v7 = vld [vmem:[#allocation12 + $0xd8] sm:$0xff]  ;;  %v650_v9 = vld [vmem:[#allocation12 + $0x108] sm:$0xff]  ;;  %v5998_v11 = vpack.c.bf16 %v637_v4, %v631_v3  ;;  %v641_v12 = vld [vmem:[#allocation12 + $0xc0] sm:$0xff]  ;;  %v6002_v14 = vpack.c.bf16 %v648_v6, %v642_v5 }
  0x89   :  { %3649 = vmatpush1.bf16.msra.mxu0 %v3648_v43  ;;  %3715 = vmatprep.subr.bf16.mxu1 %v5950_v46  ;;  %7658 = vst [vmem:[#allocation30_spill] sm:$0xff] %v5996_v10  ;;  %v647_v13 = vld [vmem:[#allocation12 + $0xf0] sm:$0xff]  ;;  %v6004_v15 = vpack.c.bf16 %v650_v9, %v644_v7  ;;  %v649_v17 = vld [vmem:[#allocation12 + $0x100] sm:$0xff]  ;;  %v654_v18 = vld [vmem:[#allocation12 + $0x128] sm:$0xff] }
  0x8a   :  { %3483 = vmatmul.mubr.msk.f32.gmra.mrb[4].mxu0 %vm204_vm0, %v5958_v47  ;;  %3487 = vmatmul.mubr.msk.f32.gmra.mrb[4].mxu1 %vm204_vm0, %v5960_v48  ;;  %7659 = vst [vmem:[#allocation31_spill] sm:$0xff] %v5998_v11  ;;  %7660 = vst [vmem:[#allocation32_spill] sm:$0xff] %v6002_v14  ;;  %v643_v16 = vld [vmem:[#allocation12 + $0xd0] sm:$0xff]  ;;  %v660_v19 = vld [vmem:[#allocation12 + $0x158] sm:$0xff]  ;;  %v6014_v22 = vpack.c.bf16 %v647_v13, %v641_v12 }
  0x8b   :  { %311 = vmatprep.mubr.f32.mxu0 %v5765_v8  ;;  %335 = vmatprep.mubr.f32.mxu1 %v5765_v8  ;;  %7661 = vst [vmem:[#allocation33_spill] sm:$0xff] %v6004_v15  ;;  %v656_v20 = vld [vmem:[#allocation12 + $0x138] sm:$0xff]  ;;  %v662_v21 = vld [vmem:[#allocation12 + $0x168] sm:$0xff]  ;;  %v6016_v23 = vpack.c.bf16 %v649_v17, %v643_v16  ;;  %v653_v24 = vld [vmem:[#allocation12 + $0x120] sm:$0xff] }
  0x8c   :  { %3651 = vmatprep.subr.bf16.mxu0 %v5962_v49  ;;  %7662 = vst [vmem:[#allocation34_spill] sm:$0xff] %v6014_v22  ;;  %v659_v25 = vld [vmem:[#allocation12 + $0x150] sm:$0xff]  ;;  %v6022_v28 = vpack.c.bf16 %v662_v21, %v656_v20  ;;  %v661_v30 = vld [vmem:[#allocation12 + $0x160] sm:$0xff]  ;;  %v666_v31 = vld [vmem:[#allocation12 + $0x188] sm:$0xff] }
  0x8d   :  { %7663 = vst [vmem:[#allocation35_spill] sm:$0xff] %v6016_v23  ;;  %v655_v29 = vld [vmem:[#allocation12 + $0x130] sm:$0xff]  ;;  %v672_v32 = vld [vmem:[#allocation12 + $0x1b8] sm:$0xff]  ;;  %v674_v34 = vld [vmem:[#allocation12 + $0x1c8] sm:$0xff]  ;;  %v6032_v35 = vpack.c.bf16 %v659_v25, %v653_v24 }
  0x8e   :  { %3484 = vmatmul.mubr.msk.f32.gmra.mrb[6].mxu0 %vm204_vm0, %v5969_v50  ;;  %3488 = vmatmul.mubr.msk.f32.gmra.mrb[6].mxu1 %vm204_vm0, %v5973_v51  ;;  %7665 = vst [vmem:[#allocation37_spill] sm:$0xff] %v6022_v28  ;;  %v668_v33 = vld [vmem:[#allocation12 + $0x198] sm:$0xff]  ;;  %v6034_v36 = vpack.c.bf16 %v661_v30, %v655_v29  ;;  %v665_v37 = vld [vmem:[#allocation12 + $0x180] sm:$0xff]  ;;  %v671_v38 = vld [vmem:[#allocation12 + $0x1b0] sm:$0xff] }
  0x8f   :  { %406 = vmatprep.mubr.f32.mxu1 %v5765_v8  ;;  %519 = vmatprep.mubr.f32.mxu0 %v5765_v8  ;;  %7666 = vst [vmem:[#allocation38_spill] sm:$0xff] %v6032_v35  ;;  %v6040_v41 = vpack.c.bf16 %v674_v34, %v668_v33  ;;  %v667_v42 = vld [vmem:[#allocation12 + $0x190] sm:$0xff]  ;;  %v673_v43 = vld [vmem:[#allocation12 + $0x1c0] sm:$0xff]  ;;  %v678_v44 = vld [vmem:[#allocation12 + $0x1e8] sm:$0xff]  ;;  %v6050_v53 = vpack.c.bf16 %v671_v38, %v665_v37 }
  0x90   :  { %7667 = vst [vmem:[#allocation39_spill] sm:$0xff] %v6034_v36  ;;  %v684_v45 = vld [vmem:[#allocation12 + $0x218] sm:$0xff]  ;;  %v686_v52 = vld [vmem:[#allocation12 + $0x228] sm:$0xff]  ;;  %v6052_v54 = vpack.c.bf16 %v673_v43, %v667_v42  ;;  %v677_v55 = vld [vmem:[#allocation12 + $0x1e0] sm:$0xff] }
  0x91   :  { %7669 = vst [vmem:[#allocation41_spill] sm:$0xff] %v6040_v41  ;;  %7670 = vst [vmem:[#allocation42_spill] sm:$0xff] %v6050_v53  ;;  %v683_v56 = vld [vmem:[#allocation12 + $0x210] sm:$0xff]  ;;  %v6056_v57 = vpack.c.bf16 %v684_v45, %v678_v44  ;;  %v690_v62 = vld [vmem:[#allocation12 + $0x248] sm:$0xff] }
  0x92   :  { %3489 = vmatmul.mubr.msk.f32.vlgmr.msra.gmra.mrb[8].mxu1 %vm204_vm0, %v5936_v26  ;;  %3497 = vmatmul.mubr.msk.f32.vlgmr.msra.gmra.mrb[8].mxu0 %vm204_vm0, %v5936_v26  ;;  %v6020_v26 = vpack.c.bf16 %v660_v19, %v654_v18  ;;  %7671 = vst [vmem:[#allocation43_spill] sm:$0xff] %v6052_v54  ;;  %v679_v59 = vld [vmem:[#allocation12 + $0x1f0] sm:$0xff]  ;;  %v696_v63 = vld [vmem:[#allocation12 + $0x278] sm:$0xff]  ;;  %v698_v4 = vld [vmem:[#allocation12 + $0x288] sm:$0xff]  ;;  %v6068_v5 = vpack.c.bf16 %v683_v56, %v677_v55 }
  0x93   :  { %3653 = vmatpush1.bf16.msra.mxu0 %v5982_v60  ;;  %3717 = vmatpush1.bf16.msra.mxu1 %v5984_v61  ;;  %7672 = vst [vmem:[#allocation44_spill] sm:$0xff] %v6056_v57  ;;  %v692_v3 = vld [vmem:[#allocation12 + $0x258] sm:$0xff]  ;;  %v689_v7 = vld [vmem:[#allocation12 + $0x240] sm:$0xff]  ;;  %v695_v9 = vld [vmem:[#allocation12 + $0x270] sm:$0xff]  ;;  %v6074_v12 = vpack.c.bf16 %v696_v63, %v690_v62 }
  0x94   :  { %3655 = vmatprep.subr.bf16.mxu0 %v5986_v1  ;;  %3719 = vmatprep.subr.bf16.mxu1 %v5988_v2  ;;  %7664 = vst [vmem:[#allocation36_spill] sm:$0xff] %v6020_v26  ;;  %7674 = vst [vmem:[#allocation46_spill] sm:$0xff] %v6068_v5  ;;  %v6076_v13 = vpack.c.bf16 %v698_v4, %v692_v3  ;;  %v691_v16 = vld [vmem:[#allocation12 + $0x250] sm:$0xff]  ;;  %v702_v17 = vld [vmem:[#allocation12 + $0x2a8] sm:$0xff]  ;;  %v6086_v21 = vpack.c.bf16 %v695_v9, %v689_v7 }
  0x95   :  { %412 = vmatprep.mubr.f32.mxu1 %v5765_v8  ;;  %525 = vmatprep.mubr.f32.mxu0 %v5765_v8  ;;  %7676 = vst [vmem:[#allocation48_spill] sm:$0xff] %v6074_v12  ;;  %v708_v18 = vld [vmem:[#allocation12 + $0x2d8] sm:$0xff]  ;;  %v710_v20 = vld [vmem:[#allocation12 + $0x2e8] sm:$0xff]  ;;  %v701_v25 = vld [vmem:[#allocation12 + $0x2a0] sm:$0xff] }
  0x96   :  { %3490 = vmatmul.mubr.msk.f32.gmra.mrb[10].mxu1 %vm204_vm0, %v5945_v39  ;;  %3498 = vmatmul.mubr.msk.f32.gmra.mrb[10].mxu0 %vm204_vm0, %v5945_v39  ;;  %v6038_v39 = vpack.c.bf16 %v672_v32, %v666_v31  ;;  %7677 = vst [vmem:[#allocation49_spill] sm:$0xff] %v6076_v13  ;;  %v704_v19 = vld [vmem:[#allocation12 + $0x2b8] sm:$0xff]  ;;  %7678 = vst [vmem:[#allocation50_spill] sm:$0xff] %v6086_v21  ;;  %v707_v29 = vld [vmem:[#allocation12 + $0x2d0] sm:$0xff]  ;;  %v6092_v30 = vpack.c.bf16 %v708_v18, %v702_v17 }
  0x97   :  { %3657 = vmatpush1.bf16.msra.mxu0 %v5996_v10  ;;  %3721 = vmatpush1.bf16.msra.mxu1 %v5998_v11  ;;  %v6094_v31 = vpack.c.bf16 %v710_v20, %v704_v19  ;;  %v703_v32 = vld [vmem:[#allocation12 + $0x2b0] sm:$0xff]  ;;  %v714_v33 = vld [vmem:[#allocation12 + $0x308] sm:$0xff]  ;;  %v720_v34 = vld [vmem:[#allocation12 + $0x338] sm:$0xff]  ;;  %v6104_v42 = vpack.c.bf16 %v707_v29, %v701_v25 }
  0x98   :  { %3659 = vmatprep.subr.bf16.mxu0 %v6002_v14  ;;  %3723 = vmatprep.subr.bf16.mxu1 %v6004_v15  ;;  %7668 = vst [vmem:[#allocation40_spill] sm:$0xff] %v6038_v39  ;;  %7680 = vst [vmem:[#allocation52_spill] sm:$0xff] %v6092_v30  ;;  %v716_v37 = vld [vmem:[#allocation12 + $0x318] sm:$0xff]  ;;  %v722_v38 = vld [vmem:[#allocation12 + $0x348] sm:$0xff] }
  0x99   :  { %418 = vmatprep.mubr.f32.mxu1 %v5765_v8  ;;  %531 = vmatprep.mubr.f32.mxu0 %v5765_v8  ;;  %7681 = vst [vmem:[#allocation53_spill] sm:$0xff] %v6094_v31  ;;  %7682 = vst [vmem:[#allocation54_spill] sm:$0xff] %v6104_v42  ;;  %v713_v44 = vld [vmem:[#allocation12 + $0x300] sm:$0xff]  ;;  %v719_v45 = vld [vmem:[#allocation12 + $0x330] sm:$0xff] }
  0x9a   :  { %3491 = vmatmul.mubr.msk.f32.gmra.mrb[12].mxu1 %vm204_vm0, %v5958_v47  ;;  %3499 = vmatmul.mubr.msk.f32.gmra.mrb[12].mxu0 %vm204_vm0, %v5958_v47  ;;  %v680_v47 = vld [vmem:[#allocation12 + $0x1f8] sm:$0xff]  ;;  %v715_v55 = vld [vmem:[#allocation12 + $0x310] sm:$0xff]  ;;  %v726_v56 = vld [vmem:[#allocation12 + $0x368] sm:$0xff]  ;;  %v6124_v3 = vpack.c.bf16 %v719_v45, %v713_v44 }
  0x9b   :  { %3661 = vmatpush1.bf16.msra.mxu0 %v6014_v22  ;;  %3725 = vmatpush1.bf16.msra.mxu1 %v6016_v23  ;;  %v6058_v58 = vpack.c.bf16 %v686_v52, %v680_v47  ;;  %v6110_v47 = vpack.c.bf16 %v720_v34, %v714_v33  ;;  %v6112_v52 = vpack.c.bf16 %v722_v38, %v716_v37  ;;  %v734_v62 = vld [vmem:[#allocation12 + $0x3a8] sm:$0xff]  ;;  %v725_v7 = vld [vmem:[#allocation12 + $0x360] sm:$0xff]  ;;  %v731_v9 = vld [vmem:[#allocation12 + $0x390] sm:$0xff] }
  0x9c   :  { %3663 = vmatprep.subr.bf16.mxu0 %v6020_v26  ;;  %3727 = vmatprep.subr.bf16.mxu1 %v6022_v28  ;;  %v6120_v63 = vld [vmem:[#allocation3 + $0x8] sm:$0xff]  ;;  %7686 = vst [vmem:[#allocation58_spill] sm:$0xff] %v6124_v3  ;;  %v744_v18 = vld [vmem:[#allocation12 + $0x3f8] sm:$0xff]  ;;  %v6138_v25 = vpack.c.bf16 %v731_v9, %v725_v7  ;;  %v739_v37 = vld [vmem:[#allocation12 + $0x3d0] sm:$0xff] }
  0x9d   :  { %424 = vmatprep.mubr.f32.mxu1 %v5765_v8  ;;  %537 = vmatprep.mubr.f32.mxu0 %v5765_v8  ;;  %7673 = vst [vmem:[#allocation45_spill] sm:$0xff] %v6058_v58  ;;  %7684 = vst [vmem:[#allocation56_spill] sm:$0xff] %v6110_v47  ;;  %v738_v17 = vld [vmem:[#allocation12 + $0x3c8] sm:$0xff]  ;;  %v740_v19 = vld [vmem:[#allocation12 + $0x3d8] sm:$0xff] }
  0x9e   :  { %3492 = vmatmul.mubr.msk.f32.gmra.mrb[14].mxu1 %vm204_vm0, %v5969_v50  ;;  %3500 = vmatmul.mubr.msk.f32.gmra.mrb[14].mxu0 %vm204_vm0, %v5969_v50  ;;  %v685_v50 = vld [vmem:[#allocation12 + $0x220] sm:$0xff]  ;;  %7685 = vst [vmem:[#allocation57_spill] sm:$0xff] %v6112_v52  ;;  %v746_v20 = vld [vmem:[#allocation12 + $0x408] sm:$0xff]  ;;  %7690 = vst [vmem:[#allocation62_spill] sm:$0xff] %v6138_v25  ;;  %v6144_v33 = vpack.c.bf16 %v744_v18, %v738_v17 }
  0x9f   :  { %3665 = vmatpush1.bf16.msra.mxu0 %v6032_v35  ;;  %3729 = vmatpush1.bf16.msra.mxu1 %v6034_v36  ;;  %v6070_v6 = vpack.c.bf16 %v685_v50, %v679_v59  ;;  %v732_v59 = vld [vmem:[#allocation12 + $0x398] sm:$0xff]  ;;  %v6146_v34 = vpack.c.bf16 %v746_v20, %v740_v19  ;;  %v745_v38 = vld [vmem:[#allocation12 + $0x400] sm:$0xff]  ;;  %v750_v44 = vld [vmem:[#allocation12 + $0x428] sm:$0xff] }
  0xa0   :  { %3667 = vmatprep.subr.bf16.mxu0 %v6038_v39  ;;  %3731 = vmatprep.subr.bf16.mxu1 %v6040_v41  ;;  %v728_v50 = vld [vmem:[#allocation12 + $0x378] sm:$0xff]  ;;  %7692 = vst [vmem:[#allocation64_spill] sm:$0xff] %v6144_v33  ;;  %v762_v17 = vld [vmem:[#allocation12 + $0x488] sm:$0xff] }
  0xa1   :  { %430 = vmatprep.mubr.f32.mxu1 %v5765_v8  ;;  %543 = vmatprep.mubr.f32.mxu0 %v5765_v8  ;;  %7675 = vst [vmem:[#allocation47_spill] sm:$0xff] %v6070_v6  ;;  %7693 = vst [vmem:[#allocation65_spill] sm:$0xff] %v6146_v34  ;;  %v756_v45 = vld [vmem:[#allocation12 + $0x458] sm:$0xff]  ;;  %v770_v20 = vld [vmem:[#allocation12 + $0x4c8] sm:$0xff] }
  0xa2   :  { %3493 = vmatmul.mubr.msk.f32.gmra.mrb[16].mxu1 %vm204_vm0, %v5938_v27  ;;  %3501 = vmatmul.mubr.msk.f32.gmra.mrb[16].mxu0 %vm204_vm0, %v5938_v27  ;;  %v697_v27 = vld [vmem:[#allocation12 + $0x280] sm:$0xff]  ;;  %v6156_v7 = vpack.c.bf16 %v756_v45, %v750_v44  ;;  %v768_v18 = vld [vmem:[#allocation12 + $0x4b8] sm:$0xff]  ;;  %v774_v0 = vld [vmem:[#allocation12 + $0x4e8] sm:$0xff] }
  0xa3   :  { %3669 = vmatpush1.bf16.msra.mxu0 %v6050_v53  ;;  %3733 = vmatpush1.bf16.msra.mxu1 %v6052_v54  ;;  %v6088_v24 = vpack.c.bf16 %v697_v27, %v691_v16  ;;  %v6132_v16 = vpack.c.bf16 %v734_v62, %v728_v50  ;;  %v733_v27 = vld [vmem:[#allocation12 + $0x3a0] sm:$0xff]  ;;  %v755_v62 = vld [vmem:[#allocation12 + $0x450] sm:$0xff]  ;;  %v764_v19 = vld [vmem:[#allocation12 + $0x498] sm:$0xff]  ;;  %v6168_v44 = vpack.c.bf16 %v768_v18, %v762_v17 }
  0xa4   :  { %3671 = vmatprep.subr.bf16.mxu0 %v6056_v57  ;;  %3735 = vmatprep.subr.bf16.mxu1 %v6058_v58  ;;  %v749_v50 = vld [vmem:[#allocation12 + $0x420] sm:$0xff]  ;;  %7696 = vst [vmem:[#allocation68_spill] sm:$0xff] %v6156_v7  ;;  %v6170_v45 = vpack.c.bf16 %v770_v20, %v764_v19  ;;  %v775_v19 = vld [vmem:[#allocation12 + $0x4f0] sm:$0xff] }
  0xa5   :  { %436 = vmatprep.mubr.f32.mxu1 %v5765_v8  ;;  %549 = vmatprep.mubr.f32.mxu0 %v5765_v8  ;;  %7679 = vst [vmem:[#allocation51_spill] sm:$0xff] %v6088_v24  ;;  %7689 = vst [vmem:[#allocation61_spill] sm:$0xff] %v6132_v16  ;;  %v781_v20 = vld [vmem:[#allocation12 + $0x520] sm:$0xff] }
  0xa6   :  { %3494 = vmatmul.mubr.msk.f32.gmra.mrb[18].mxu1 %vm204_vm0, %v5947_v40  ;;  %3502 = vmatmul.mubr.msk.f32.gmra.mrb[18].mxu0 %vm204_vm0, %v5947_v40  ;;  %v709_v40 = vld [vmem:[#allocation12 + $0x2e0] sm:$0xff]  ;;  %7700 = vst [vmem:[#allocation72_spill] sm:$0xff] %v6168_v44  ;;  %7701 = vst [vmem:[#allocation73_spill] sm:$0xff] %v6170_v45 }
  0xa7   :  { %3673 = vmatpush1.bf16.msra.mxu0 %v6068_v5  ;;  %3737 = vmatpush1.bf16.msra.mxu1 %v6070_v6  ;;  %v6106_v43 = vpack.c.bf16 %v709_v40, %v703_v32  ;;  %v737_v32 = vld [vmem:[#allocation12 + $0x3c0] sm:$0xff]  ;;  %v743_v40 = vld [vmem:[#allocation12 + $0x3f0] sm:$0xff] }
  0xa8   :  { %3675 = vmatprep.subr.bf16.mxu0 %v6074_v12  ;;  %3739 = vmatprep.subr.bf16.mxu1 %v6076_v13 }
  0xa9   :  { %442 = vmatprep.mubr.f32.mxu1 %v5765_v8  ;;  %555 = vmatprep.mubr.f32.mxu0 %v5765_v8  ;;  %7683 = vst [vmem:[#allocation55_spill] sm:$0xff] %v6106_v43 }
  0xaa   :  { %3495 = vmatmul.mubr.msk.f32.gmra.mrb[20].mxu1 %vm204_vm0, %v5960_v48  ;;  %3503 = vmatmul.mubr.msk.f32.gmra.mrb[20].mxu0 %vm204_vm0, %v5960_v48  ;;  %v721_v48 = vld [vmem:[#allocation12 + $0x340] sm:$0xff] }
  0xab   :  { %3677 = vmatpush1.bf16.msra.mxu0 %v6086_v21  ;;  %3741 = vmatpush1.bf16.msra.mxu1 %v6088_v24  ;;  %v6126_v4 = vpack.c.bf16 %v721_v48, %v715_v55  ;;  %v752_v55 = vld [vmem:[#allocation12 + $0x438] sm:$0xff]  ;;  %v758_v48 = vld [vmem:[#allocation12 + $0x468] sm:$0xff] }
  0xac   :  { %3679 = vmatprep.subr.bf16.mxu0 %v6092_v30  ;;  %3743 = vmatprep.subr.bf16.mxu1 %v6094_v31  ;;  %v6158_v9 = vpack.c.bf16 %v758_v48, %v752_v55  ;;  %v763_v55 = vld [vmem:[#allocation12 + $0x490] sm:$0xff]  ;;  %v769_v48 = vld [vmem:[#allocation12 + $0x4c0] sm:$0xff]  ;;  %v628_v31 = vld [vmem:[#allocation12 + $0x58] sm:$0xff] }
  0xad   :  { %448 = vmatprep.mubr.f32.mxu1 %v5765_v8  ;;  %561 = vmatprep.mubr.f32.mxu0 %v5765_v8  ;;  %7687 = vst [vmem:[#allocation59_spill] sm:$0xff] %v6126_v4  ;;  %v6130_v8 = vpack.c.bf16 %v732_v59, %v726_v56  ;;  %v6150_v56 = vpack.c.bf16 %v743_v40, %v737_v32 }
  0xae   :  { %3496 = vmatmul.mubr.msk.f32.gmra.mrb[22].mxu1 %vm204_vm0, %v5973_v51  ;;  %3504 = vmatmul.mubr.msk.f32.gmra.mrb[22].mxu0 %vm204_vm0, %v5973_v51  ;;  %v727_v51 = vld [vmem:[#allocation12 + $0x370] sm:$0xff]  ;;  %v6152_v59 = vpack.c.bf16 %v745_v38, %v739_v37  ;;  %7697 = vst [vmem:[#allocation69_spill] sm:$0xff] %v6158_v9  ;;  %v6162_v32 = vpack.c.bf16 %v755_v62, %v749_v50  ;;  %v761_v37 = vld [vmem:[#allocation12 + $0x480] sm:$0xff] }
  0xaf   :  { %3681 = vmatpush1.bf16.msra.mxu0 %v6104_v42  ;;  %3745 = vmatpush1.bf16.msra.mxu1 %v6106_v43  ;;  %7688 = vst [vmem:[#allocation60_spill] sm:$0xff] %v6130_v8  ;;  %v6140_v29 = vpack.c.bf16 %v733_v27, %v727_v51  ;;  %7694 = vst [vmem:[#allocation66_spill] sm:$0xff] %v6150_v56  ;;  %v751_v51 = vld [vmem:[#allocation12 + $0x430] sm:$0xff]  ;;  %v757_v27 = vld [vmem:[#allocation12 + $0x460] sm:$0xff]  ;;  %v6176_v62 = vpack.c.bf16 %v769_v48, %v763_v55 }
  0xb0   :  { %3683 = vmatprep.subr.bf16.mxu0 %v6110_v47  ;;  %3747 = vmatprep.subr.bf16.mxu1 %v6112_v52  ;;  %7695 = vst [vmem:[#allocation67_spill] sm:$0xff] %v6152_v59  ;;  %7698 = vst [vmem:[#allocation70_spill] sm:$0xff] %v6162_v32  ;;  %v6164_v40 = vpack.c.bf16 %v757_v27, %v751_v51  ;;  %v767_v38 = vld [vmem:[#allocation12 + $0x4b0] sm:$0xff]  ;;  %v773_v51 = vld [vmem:[#allocation12 + $0x4e0] sm:$0xff] }
  0xb1   :  { %916 = vmatprep.mubr.f32.mxu0 %v6120_v63  ;;  %987 = vmatprep.mubr.f32.mxu1 %v6120_v63  ;;  %7691 = vst [vmem:[#allocation63_spill] sm:$0xff] %v6140_v29  ;;  %v6174_v50 = vpack.c.bf16 %v767_v38, %v761_v37  ;;  %7703 = vst [vmem:[#allocation75_spill] sm:$0xff] %v6176_v62  ;;  %v779_v27 = vld [vmem:[#allocation12 + $0x510] sm:$0xff]  ;;  %v6188_v38 = vpack.c.bf16 %v781_v20, %v775_v19  ;;  %v785_v55 = vld [vmem:[#allocation12 + $0x540] sm:$0xff] }
  0xb2   :  { %7699 = vst [vmem:[#allocation71_spill] sm:$0xff] %v6164_v40  ;;  %v6186_v37 = vpack.c.bf16 %v779_v27, %v773_v51  ;;  %v791_v48 = vld [vmem:[#allocation12 + $0x570] sm:$0xff]  ;;  %v804_v52 = vld [vmem:[#allocation12 + $0x5d8] sm:$0xff]  ;;  %v797_v19 = vld [vmem:[#allocation12 + $0x5a0] sm:$0xff] }
  0xb3   :  { %3685 = vmatpush1.bf16.msra.mxu0 %v6124_v3  ;;  %3749 = vmatpush1.bf16.msra.mxu1 %v6126_v4  ;;  %7702 = vst [vmem:[#allocation74_spill] sm:$0xff] %v6174_v50  ;;  %v788_v4 = vld [vmem:[#allocation12 + $0x558] sm:$0xff]  ;;  %7707 = vst [vmem:[#allocation79_spill] sm:$0xff] %v6188_v38  ;;  %v6198_v51 = vpack.c.bf16 %v791_v48, %v785_v55  ;;  %v805_v20 = vld [vmem:[#allocation12 + $0x5e0] sm:$0xff] }
  0xb4   :  { %3687 = vmatprep.subr.bf16.mxu0 %v6130_v8  ;;  %3751 = vmatprep.subr.bf16.mxu1 %v6132_v16  ;;  %v792_v16 = vld [vmem:[#allocation12 + $0x578] sm:$0xff]  ;;  %7706 = vst [vmem:[#allocation78_spill] sm:$0xff] %v6186_v37 }
  0xb5   :  { %v800_v43 = vld [vmem:[#allocation12 + $0x5b8] sm:$0xff]  ;;  %7710 = vst [vmem:[#allocation82_spill] sm:$0xff] %v6198_v51 }
  0xb7   :  { %3689 = vmatpush1.bf16.msra.mxu0 %v6138_v25  ;;  %3753 = vmatpush1.bf16.msra.mxu1 %v6140_v29  ;;  %v776_v29 = vld [vmem:[#allocation12 + $0x4f8] sm:$0xff] }
  0xb8   :  { %3691 = vmatprep.subr.bf16.mxu0 %v6144_v33  ;;  %3755 = vmatprep.subr.bf16.mxu1 %v6146_v34  ;;  %v780_v34 = vld [vmem:[#allocation12 + $0x518] sm:$0xff] }
  0xb9   :  { %v6180_v17 = vpack.c.bf16 %v780_v34, %v774_v0  ;;  %v787_v34 = vld [vmem:[#allocation12 + $0x550] sm:$0xff] }
  0xbb   :  { %3693 = vmatpush1.bf16.msra.mxu0 %v6150_v56  ;;  %3757 = vmatpush1.bf16.msra.mxu1 %v6152_v59  ;;  %v782_v59 = vld [vmem:[#allocation12 + $0x528] sm:$0xff]  ;;  %7704 = vst [vmem:[#allocation76_spill] sm:$0xff] %v6180_v17 }
  0xbc   :  { %3695 = vmatprep.subr.bf16.mxu0 %v6156_v7  ;;  %3759 = vmatprep.subr.bf16.mxu1 %v6158_v9  ;;  %v6182_v18 = vpack.c.bf16 %v782_v59, %v776_v29  ;;  %v786_v9 = vld [vmem:[#allocation12 + $0x548] sm:$0xff]  ;;  %v793_v59 = vld [vmem:[#allocation12 + $0x580] sm:$0xff] }
  0xbd   :  { %v6192_v0 = vpack.c.bf16 %v792_v16, %v786_v9  ;;  %v6200_v27 = vpack.c.bf16 %v793_v59, %v787_v34  ;;  %v803_v9 = vld [vmem:[#allocation12 + $0x5d0] sm:$0xff]  ;;  %v640_v34 = vld [vmem:[#allocation12 + $0xb8] sm:$0xff]  ;;  %v6220_v59 = vld [vmem:[#allocation3] sm:$0xff] }
  0xbe   :  { %7705 = vst [vmem:[#allocation77_spill] sm:$0xff] %v6182_v18  ;;  %v6210_v55 = vpack.c.bf16 %v803_v9, %v797_v19 }
  0xbf   :  { %3697 = vmatpush1.bf16.msra.mxu0 %v6162_v32  ;;  %3761 = vmatpush1.bf16.msra.mxu1 %v6164_v40  ;;  %v794_v40 = vld [vmem:[#allocation12 + $0x588] sm:$0xff]  ;;  %7708 = vst [vmem:[#allocation80_spill] sm:$0xff] %v6192_v0  ;;  %7711 = vst [vmem:[#allocation83_spill] sm:$0xff] %v6200_v27 }
  0xc0   :  { %3699 = vmatprep.subr.bf16.mxu0 %v6168_v44  ;;  %3763 = vmatprep.subr.bf16.mxu1 %v6170_v45  ;;  %v6194_v29 = vpack.c.bf16 %v794_v40, %v788_v4  ;;  %v798_v45 = vld [vmem:[#allocation12 + $0x5a8] sm:$0xff]  ;;  %v799_v40 = vld [vmem:[#allocation12 + $0x5b0] sm:$0xff]  ;;  %7714 = vst [vmem:[#allocation86_spill] sm:$0xff] %v6210_v55 }
  0xc1   :  { %v6204_v4 = vpack.c.bf16 %v804_v52, %v798_v45  ;;  %v6212_v48 = vpack.c.bf16 %v805_v20, %v799_v40  ;;  %v627_v45 = vld [vmem:[#allocation12 + $0x50] sm:$0xff]  ;;  %v633_v40 = vld [vmem:[#allocation12 + $0x80] sm:$0xff] }
  0xc2   :  { %7709 = vst [vmem:[#allocation81_spill] sm:$0xff] %v6194_v29  ;;  %v639_v20 = vld [vmem:[#allocation12 + $0xb0] sm:$0xff] }
  0xc3   :  { %3701 = vmatpush1.bf16.msra.mxu0 %v6174_v50  ;;  %3765 = vmatpush1.bf16.msra.mxu1 %v6176_v62  ;;  %v806_v62 = vld [vmem:[#allocation12 + $0x5e8] sm:$0xff]  ;;  %7712 = vst [vmem:[#allocation84_spill] sm:$0xff] %v6204_v4  ;;  %7715 = vst [vmem:[#allocation87_spill] sm:$0xff] %v6212_v48 }
  0xc4   :  { %3703 = vmatprep.subr.bf16.mxu0 %v6180_v17  ;;  %3767 = vmatprep.subr.bf16.mxu1 %v6182_v18  ;;  %v6206_v16 = vpack.c.bf16 %v806_v62, %v800_v43  ;;  %v622_v18 = vld [vmem:[#allocation12 + $0x28] sm:$0xff]  ;;  %v621_v43 = vld [vmem:[#allocation12 + $0x20] sm:$0xff] }
  0xc5   :  { %v6216_v52 = vpack.c.bf16 %v628_v31, %v622_v18  ;;  %v634_v62 = vld [vmem:[#allocation12 + $0x88] sm:$0xff]  ;;  %v6222_v19 = vpack.c.bf16 %v627_v45, %v621_v43  ;;  %v652_v18 = vld [vmem:[#allocation12 + $0x118] sm:$0xff]  ;;  %v645_v45 = vld [vmem:[#allocation12 + $0xe0] sm:$0xff] }
  0xc6   :  { %7713 = vst [vmem:[#allocation85_spill] sm:$0xff] %v6206_v16  ;;  %v6225_v9 = vpack.c.bf16 %v640_v34, %v634_v62  ;;  %v646_v31 = vld [vmem:[#allocation12 + $0xe8] sm:$0xff]  ;;  %v651_v62 = vld [vmem:[#allocation12 + $0x110] sm:$0xff] }
  0xc7   :  { %3705 = vmatpush1.bf16.msra.mxu0 %v6186_v37  ;;  %3769 = vmatpush1.bf16.msra.mxu1 %v6188_v38  ;;  %7716 = vst [vmem:[#allocation88_spill] sm:$0xff] %v6216_v52  ;;  %v6235_v43 = vpack.c.bf16 %v652_v18, %v646_v31  ;;  %v658_v34 = vld [vmem:[#allocation12 + $0x148] sm:$0xff]  ;;  %v676_v18 = vld [vmem:[#allocation12 + $0x1d8] sm:$0xff] }
  0xc8   :  { %3707 = vmatprep.subr.bf16.mxu0 %v6192_v0  ;;  %3771 = vmatprep.subr.bf16.mxu1 %v6194_v29  ;;  %7717 = vst [vmem:[#allocation89_spill] sm:$0xff] %v6225_v9  ;;  %v670_v31 = vld [vmem:[#allocation12 + $0x1a8] sm:$0xff] }
  0xcb   :  { %3709 = vmatpush1.bf16.msra.mxu0 %v6198_v51  ;;  %3773 = vmatpush1.bf16.msra.mxu1 %v6200_v27 }
  0xcc   :  { %3711 = vmatprep.subr.bf16.mxu0 %v6204_v4  ;;  %3775 = vmatprep.subr.bf16.mxu1 %v6206_v16  ;;  %v6240_v16 = vpack.c.bf16 %v651_v62, %v645_v45  ;;  %v6251_v45 = vpack.c.bf16 %v676_v18, %v670_v31  ;;  %v669_v62 = vld [vmem:[#allocation12 + $0x1a0] sm:$0xff]  ;;  %v694_v31 = vld [vmem:[#allocation12 + $0x268] sm:$0xff]  ;;  %v700_v18 = vld [vmem:[#allocation12 + $0x298] sm:$0xff] }
  0xce   :  { %7718 = vst [vmem:[#allocation90_spill] sm:$0xff] %v6251_v45 }
  0xcf   :  { %3713 = vmatpush1.bf16.msra.mxu0 %v6210_v55  ;;  %3777 = vmatpush1.bf16.msra.mxu1 %v6212_v48  ;;  %v6231_v48 = vpack.c.bf16 %v639_v20, %v633_v40  ;;  %v657_v20 = vld [vmem:[#allocation12 + $0x140] sm:$0xff] }
  0xd0   :  { %3779 = vmatprep.subr.bf16.mxu1 %v6216_v52  ;;  %3843 = vmatprep.subr.bf16.mxu0 %v5962_v49  ;;  %v664_v49 = vld [vmem:[#allocation12 + $0x178] sm:$0xff] }
  0xd1   :  { %v6243_v40 = vpack.c.bf16 %v664_v49, %v658_v34  ;;  %v682_v49 = vld [vmem:[#allocation12 + $0x208] sm:$0xff]  ;;  %v688_v34 = vld [vmem:[#allocation12 + $0x238] sm:$0xff] }
  0xd2   :  { %917 = vmatmul.mubr.f32.vlgmr.msra.gmra.mrb[0].mxu0 %v6220_v59  ;;  %988 = vmatmul.mubr.f32.vlgmr.msra.gmra.mrb[8].mxu1 %v6220_v59 }
  0xd3   :  { %3781 = vmatpush1.bf16.msra.mxu1 %v6222_v19  ;;  %1058 = vmatprep.mubr.f32.mxu1 %v6120_v63 }
  0xd4   :  { %3783 = vmatprep.subr.bf16.mxu1 %v6225_v9  ;;  %3845 = vmatpush1.bf16.msra.mxu0 %v5982_v60  ;;  %v663_v9 = vld [vmem:[#allocation12 + $0x170] sm:$0xff] }
  0xd5   :  { %3847 = vmatprep.subr.bf16.mxu0 %v5986_v1  ;;  %v6248_v60 = vpack.c.bf16 %v663_v9, %v657_v20  ;;  %v675_v1 = vld [vmem:[#allocation12 + $0x1d0] sm:$0xff]  ;;  %v6259_v9 = vpack.c.bf16 %v688_v34, %v682_v49  ;;  %v681_v20 = vld [vmem:[#allocation12 + $0x200] sm:$0xff] }
  0xd6   :  { %v693_v49 = vld [vmem:[#allocation12 + $0x260] sm:$0xff]  ;;  %v699_v34 = vld [vmem:[#allocation12 + $0x290] sm:$0xff] }
  0xd7   :  { %3785 = vmatpush1.bf16.msra.mxu1 %v6231_v48  ;;  %7720 = vst [vmem:[#allocation92_spill] sm:$0xff] %v6259_v9 }
  0xd8   :  { %3787 = vmatprep.subr.bf16.mxu1 %v6235_v43  ;;  %3849 = vmatpush1.bf16.msra.mxu0 %v5996_v10  ;;  %v6256_v10 = vpack.c.bf16 %v675_v1, %v669_v62  ;;  %v6269_v1 = vld [vmem:[%s7359_s1] sm:$0xff]  ;;  %v6272_v62 = vpack.c.bf16 %v700_v18, %v694_v31 }
  0xd9   :  { %3851 = vmatprep.subr.bf16.mxu0 %v6002_v14  ;;  %v687_v14 = vld [vmem:[#allocation12 + $0x230] sm:$0xff]  ;;  %7721 = vst [vmem:[#allocation93_spill] sm:$0xff] %v6269_v1  ;;  %vm1110_vm1 = vcmp.eq.s32.totalorder %v6269_v1, 0  ;;  %v705_v18 = vld [vmem:[#allocation12 + $0x2c0] sm:$0xff]  ;;  %vm1392_vm2 = vcmp.eq.s32.totalorder %v6269_v1, 1 }
  0xda   :  { %7719 = vst [vmem:[#allocation91_spill] sm:$0xff] %v6256_v10 }
  0xdb   :  { %3789 = vmatpush1.bf16.msra.mxu1 %v6240_v16 }
  0xdc   :  { %3791 = vmatprep.subr.bf16.mxu1 %v6243_v40  ;;  %3853 = vmatpush1.bf16.msra.mxu0 %v6014_v22  ;;  %v6264_v22 = vpack.c.bf16 %v687_v14, %v681_v20  ;;  %v6281_v20 = vpack.c.bf16 %v699_v34, %v693_v49  ;;  %v717_v34 = vld [vmem:[#allocation12 + $0x320] sm:$0xff] }
  0xdd   :  { %3855 = vmatprep.subr.bf16.mxu0 %v6020_v26  ;;  %v712_v26 = vld [vmem:[#allocation12 + $0x2f8] sm:$0xff] }
  0xdf   :  { %3793 = vmatpush1.bf16.msra.mxu1 %v6248_v60 }
  0xe0   :  { %3795 = vmatprep.subr.bf16.mxu1 %v6251_v45  ;;  %3857 = vmatpush1.bf16.msra.mxu0 %v6032_v35  ;;  %v7429_v35 = vmov 0   ;;  %v724_v45 = vld [vmem:[#allocation12 + $0x358] sm:$0xff] }
  0xe1   :  { %3859 = vmatprep.subr.bf16.mxu0 %v6038_v39  ;;  %5424 = vset.pattern.permute.xlu0 %v7429_v35  ;;  %v706_v39 = vld [vmem:[#allocation12 + $0x2c8] sm:$0xff]  ;;  %v1113_v14 = vsel %vm1110_vm1, 1, %v7429_v35 }
  0xe2   :  { %5425 = vset.pattern.permute.xlu1 %v7429_v35  ;;  %1115 = vperm.xlu0 %5424, %v1113_v14   ;;  %v6284_v31 = vpack.c.bf16 %v712_v26, %v706_v39  ;;  %v723_v35 = vld [vmem:[#allocation12 + $0x350] sm:$0xff]  ;;  %v730_v26 = vld [vmem:[#allocation12 + $0x388] sm:$0xff]  ;;  %v736_v39 = vld [vmem:[#allocation12 + $0x3b8] sm:$0xff] }
  0xe3   :  { %3797 = vmatpush1.bf16.msra.mxu1 %v6256_v10  ;;  %v718_v10 = vld [vmem:[#allocation12 + $0x328] sm:$0xff] }
  0xe4   :  { %3799 = vmatprep.subr.bf16.mxu1 %v6259_v9  ;;  %3861 = vmatpush1.bf16.msra.mxu0 %v6050_v53  ;;  %v711_v9 = vld [vmem:[#allocation12 + $0x2f0] sm:$0xff]  ;;  %v6292_v49 = vpack.c.bf16 %v724_v45, %v718_v10  ;;  %v742_v10 = vld [vmem:[#allocation12 + $0x3e8] sm:$0xff]  ;;  %v748_v45 = vld [vmem:[#allocation12 + $0x418] sm:$0xff] }
  0xe5   :  { %3863 = vmatprep.subr.bf16.mxu0 %v6056_v57  ;;  %v6289_v14 = vpack.c.bf16 %v711_v9, %v705_v18  ;;  %v6300_v9 = vpack.c.bf16 %v736_v39, %v730_v26  ;;  %v729_v18 = vld [vmem:[#allocation12 + $0x380] sm:$0xff]  ;;  %v754_v26 = vld [vmem:[#allocation12 + $0x448] sm:$0xff]  ;;  %v760_v39 = vld [vmem:[#allocation12 + $0x478] sm:$0xff] }
  0xe6   :  { %v7746_v53 = vld [vmem:[#allocation85_spill] sm:$0xff] }
  0xe7   :  { %3801 = vmatpush1.bf16.msra.mxu1 %v6264_v22 }
  0xe8   :  { %3803 = vmatprep.subr.bf16.mxu1 %v6272_v62  ;;  %3865 = vmatpush1.bf16.msra.mxu0 %v6068_v5  ;;  %v6297_v5 = vpack.c.bf16 %v723_v35, %v717_v34  ;;  %v6308_v35 = vpack.c.bf16 %v748_v45, %v742_v10  ;;  %v741_v34 = vld [vmem:[#allocation12 + $0x3e0] sm:$0xff]  ;;  %v766_v10 = vld [vmem:[#allocation12 + $0x4a8] sm:$0xff]  ;;  %v772_v45 = vld [vmem:[#allocation12 + $0x4d8] sm:$0xff] }
  0xe9   :  { %3867 = vmatprep.subr.bf16.mxu0 %v6074_v12  ;;  %v735_v12 = vld [vmem:[#allocation12 + $0x3b0] sm:$0xff] }
  0xeb   :  { %3805 = vmatpush1.bf16.msra.mxu1 %v6281_v20 }
  0xec   :  { %3807 = vmatprep.subr.bf16.mxu1 %v6284_v31  ;;  %3869 = vmatpush1.bf16.msra.mxu0 %v6086_v21  ;;  %v6305_v21 = vpack.c.bf16 %v735_v12, %v729_v18  ;;  %v6316_v12 = vpack.c.bf16 %v760_v39, %v754_v26  ;;  %v753_v18 = vld [vmem:[#allocation12 + $0x440] sm:$0xff]  ;;  %v778_v26 = vld [vmem:[#allocation12 + $0x508] sm:$0xff]  ;;  %v784_v39 = vld [vmem:[#allocation12 + $0x538] sm:$0xff] }
  0xed   :  { %3871 = vmatprep.subr.bf16.mxu0 %v6092_v30  ;;  %v747_v30 = vld [vmem:[#allocation12 + $0x410] sm:$0xff] }
  0xee   :  { %7723 = vst [vmem:[#allocation95_spill] sm:$0xff] %v6316_v12 }
  0xef   :  { %3809 = vmatpush1.bf16.msra.mxu1 %v6289_v14 }
  0xf0   :  { %3811 = vmatprep.subr.bf16.mxu1 %v6292_v49  ;;  %3873 = vmatpush1.bf16.msra.mxu0 %v6104_v42  ;;  %v6313_v42 = vpack.c.bf16 %v747_v30, %v741_v34  ;;  %v6324_v30 = vpack.c.bf16 %v772_v45, %v766_v10  ;;  %v765_v34 = vld [vmem:[#allocation12 + $0x4a0] sm:$0xff]  ;;  %v790_v10 = vld [vmem:[#allocation12 + $0x568] sm:$0xff]  ;;  %v796_v45 = vld [vmem:[#allocation12 + $0x598] sm:$0xff] }
  0xf1   :  { %3875 = vmatprep.subr.bf16.mxu0 %v6110_v47  ;;  %v759_v47 = vld [vmem:[#allocation12 + $0x470] sm:$0xff] }
  0xf2   :  { %7722 = vst [vmem:[#allocation94_spill] sm:$0xff] %v6313_v42  ;;  %7725 = vst [vmem:[#allocation97_spill] sm:$0xff] %v6324_v30 }
  0xf3   :  { %3813 = vmatpush1.bf16.msra.mxu1 %v6297_v5 }
  0xf4   :  { %3815 = vmatprep.subr.bf16.mxu1 %v6300_v9  ;;  %3877 = vmatpush1.bf16.msra.mxu0 %v6124_v3  ;;  %v6321_v3 = vpack.c.bf16 %v759_v47, %v753_v18  ;;  %v6332_v47 = vpack.c.bf16 %v784_v39, %v778_v26  ;;  %v777_v18 = vld [vmem:[#allocation12 + $0x500] sm:$0xff]  ;;  %v802_v26 = vld [vmem:[#allocation12 + $0x5c8] sm:$0xff]  ;;  %v808_v39 = vld [vmem:[#allocation12 + $0x5f8] sm:$0xff] }
  0xf5   :  { %3879 = vmatprep.subr.bf16.mxu0 %v6130_v8  ;;  %v771_v8 = vld [vmem:[#allocation12 + $0x4d0] sm:$0xff] }
  0xf6   :  { %7724 = vst [vmem:[#allocation96_spill] sm:$0xff] %v6321_v3  ;;  %7727 = vst [vmem:[#allocation99_spill] sm:$0xff] %v6332_v47 }
  0xf7   :  { %3817 = vmatpush1.bf16.msra.mxu1 %v6305_v21 }
  0xf8   :  { %3819 = vmatprep.subr.bf16.mxu1 %v6308_v35  ;;  %3881 = vmatpush1.bf16.msra.mxu0 %v6138_v25  ;;  %v6329_v25 = vpack.c.bf16 %v771_v8, %v765_v34  ;;  %v6340_v8 = vpack.c.bf16 %v796_v45, %v790_v10  ;;  %v789_v34 = vld [vmem:[#allocation12 + $0x560] sm:$0xff]  ;;  %v7735_v45 = vld [vmem:[#allocation57_spill] sm:$0xff] }
  0xf9   :  { %3883 = vmatprep.subr.bf16.mxu0 %v6144_v33  ;;  %v783_v33 = vld [vmem:[#allocation12 + $0x530] sm:$0xff] }
  0xfa   :  { %7726 = vst [vmem:[#allocation98_spill] sm:$0xff] %v6329_v25  ;;  %7729 = vst [vmem:[#allocation101_spill] sm:$0xff] %v6340_v8 }
  0xfb   :  { %3821 = vmatpush1.bf16.msra.mxu1 %v6313_v42 }
  0xfc   :  { %3823 = vmatprep.subr.bf16.mxu1 %v6316_v12  ;;  %3885 = vmatpush1.bf16.msra.mxu0 %v6150_v56  ;;  %v6337_v56 = vpack.c.bf16 %v783_v33, %v777_v18  ;;  %v6348_v33 = vpack.c.bf16 %v808_v39, %v802_v26  ;;  %v801_v18 = vld [vmem:[#allocation12 + $0x5c0] sm:$0xff]  ;;  %v7737_v26 = vld [vmem:[#allocation61_spill] sm:$0xff] }
  0xfd   :  { %3887 = vmatprep.subr.bf16.mxu0 %v6156_v7  ;;  %v795_v7 = vld [vmem:[#allocation12 + $0x590] sm:$0xff]  ;;  %v7738_v39 = vld [vmem:[#allocation63_spill] sm:$0xff] }
  0xfe   :  { %7728 = vst [vmem:[#allocation100_spill] sm:$0xff] %v6337_v56  ;;  %7731 = vst [vmem:[#allocation103_spill] sm:$0xff] %v6348_v33 }
  0xff   :  { %3825 = vmatpush1.bf16.msra.mxu1 %v6321_v3 }
 0x100   :  { %3827 = vmatprep.subr.bf16.mxu1 %v6324_v30  ;;  %3889 = vmatpush1.bf16.msra.mxu0 %v6162_v32  ;;  %v6345_v32 = vpack.c.bf16 %v795_v7, %v789_v34  ;;  %v7733_v7 = vld [vmem:[#allocation53_spill] sm:$0xff]  ;;  %v7736_v34 = vld [vmem:[#allocation59_spill] sm:$0xff] }
 0x101   :  { %3891 = vmatprep.subr.bf16.mxu0 %v6168_v44  ;;  %v807_v44 = vld [vmem:[#allocation12 + $0x5f0] sm:$0xff] }
 0x102   :  { %7730 = vst [vmem:[#allocation102_spill] sm:$0xff] %v6345_v32  ;;  %v6353_v10 = vpack.c.bf16 %v807_v44, %v801_v18  ;;  %v7734_v44 = vld [vmem:[#allocation55_spill] sm:$0xff]  ;;  %v7739_v18 = vld [vmem:[#allocation65_spill] sm:$0xff] }
 0x103   :  { %3829 = vmatpush1.bf16.msra.mxu1 %v6329_v25 }
 0x104   :  { %3831 = vmatprep.subr.bf16.mxu1 %v6332_v47  ;;  %3893 = vmatpush1.bf16.msra.mxu0 %v6174_v50  ;;  %7732 = vst [vmem:[#allocation104_spill] sm:$0xff] %v6353_v10  ;;  %v174_v50 = vlaneseq }
 0x105   :  { %3895 = vmatprep.subr.bf16.mxu0 %v6180_v17  ;;  %v7745_v17 = vld [vmem:[#allocation77_spill] sm:$0xff] }
 0x106   :  { %v6391_v57 = vshrl.u32 %v174_v50, 7  ;;  %v6407_v50 = vld [vmem:[%s7364_s6] sm:$0x3f] }
 0x107   :  { %3833 = vmatpush1.bf16.msra.mxu1 %v6337_v56 }
 0x108   :  { %3835 = vmatprep.subr.bf16.mxu1 %v6340_v8  ;;  %3897 = vmatpush1.bf16.msra.mxu0 %v6186_v37  ;;  %v7744_v37 = vld [vmem:[#allocation75_spill] sm:$0xff] }
 0x109   :  { %3899 = vmatprep.subr.bf16.mxu0 %v6192_v0  ;;  %v7743_v0 = vld [vmem:[#allocation73_spill] sm:$0xff] }
 0x10b   :  { %3837 = vmatpush1.bf16.msra.mxu1 %v6345_v32  ;;  %v7747_v32 = vld [vmem:[#allocation87_spill] sm:$0xff] }
 0x10c   :  { %3839 = vmatprep.subr.bf16.mxu1 %v6348_v33  ;;  %3901 = vmatpush1.bf16.msra.mxu0 %v6198_v51  ;;  %v7742_v51 = vld [vmem:[#allocation71_spill] sm:$0xff]  ;;  %v180_v33 = vsub.s32 1, %v6391_v57 }
 0x10d   :  { %3903 = vmatprep.subr.bf16.mxu0 %v6204_v4  ;;  %v7741_v4 = vld [vmem:[#allocation69_spill] sm:$0xff] }
 0x10e   :  { %v6419_v8 = vrot.slane %v6407_v50, %v180_v33 }
 0x10f   :  { %3841 = vmatpush1.bf16.msra.mxu1 %v6353_v10  ;;  %v6399_v10 = vld [vmem:[%s7362_s4] sm:$0x3f] }
 0x110   :  { %3907 = vmatprep.subr.bf16.mxu1 %v5950_v46  ;;  %3905 = vmatpush1.bf16.msra.mxu0 %v6210_v55  ;;  %v7740_v55 = vld [vmem:[#allocation67_spill] sm:$0xff] }
 0x111   :  { %3971 = vmatprep.subr.bf16.mxu0 %v6216_v52  ;;  %v176_v52 = vsub.s32 0, %v6391_v57 }
 0x112   :  { %1059 = vmatmul.mubr.f32.vlgmr.msra.gmra.mrb[24].mxu1 %v6220_v59 }
 0x113   :  { %3909 = vmatpush1.bf16.msra.mxu1 %v5984_v61 }
 0x114   :  { %3911 = vmatprep.subr.bf16.mxu1 %v5988_v2 }
 0x117   :  { %3913 = vmatpush1.bf16.msra.mxu1 %v5998_v11 }
 0x118   :  { %3915 = vmatprep.subr.bf16.mxu1 %v6004_v15 }
 0x11b   :  { %3917 = vmatpush1.bf16.msra.mxu1 %v6016_v23 }
 0x11c   :  { %3919 = vmatprep.subr.bf16.mxu1 %v6022_v28 }
 0x11f   :  { %3921 = vmatpush1.bf16.msra.mxu1 %v6034_v36 }
 0x120   :  { %3923 = vmatprep.subr.bf16.mxu1 %v6040_v41 }
 0x123   :  { %3925 = vmatpush1.bf16.msra.mxu1 %v6052_v54 }
 0x124   :  { %3927 = vmatprep.subr.bf16.mxu1 %v6058_v58 }
 0x127   :  { %3929 = vmatpush1.bf16.msra.mxu1 %v6070_v6 }
 0x128   :  { %3931 = vmatprep.subr.bf16.mxu1 %v6076_v13 }
 0x12b   :  { %3933 = vmatpush1.bf16.msra.mxu1 %v6088_v24 }
 0x12c   :  { %3935 = vmatprep.subr.bf16.mxu1 %v7733_v7 }
 0x12f   :  { %3937 = vmatpush1.bf16.msra.mxu1 %v7734_v44 }
 0x130   :  { %3939 = vmatprep.subr.bf16.mxu1 %v7735_v45 }
 0x133   :  { %3941 = vmatpush1.bf16.msra.mxu1 %v7736_v34 }
 0x134   :  { %3943 = vmatprep.subr.bf16.mxu1 %v7737_v26 }
 0x137   :  { %3945 = vmatpush1.bf16.msra.mxu1 %v7738_v39 }
 0x138   :  { %3947 = vmatprep.subr.bf16.mxu1 %v7739_v18 }
 0x13b   :  { %3949 = vmatpush1.bf16.msra.mxu1 %v7740_v55 }
 0x13c   :  { %3951 = vmatprep.subr.bf16.mxu1 %v7741_v4 }
 0x13f   :  { %3953 = vmatpush1.bf16.msra.mxu1 %v7742_v51 }
 0x140   :  { %3955 = vmatprep.subr.bf16.mxu1 %v7743_v0 }
 0x143   :  { %3957 = vmatpush1.bf16.msra.mxu1 %v7744_v37 }
 0x144   :  { %3959 = vmatprep.subr.bf16.mxu1 %v7745_v17 }
 0x147   :  { %3961 = vmatpush1.bf16.msra.mxu1 %v6188_v38 }
 0x148   :  { %3963 = vmatprep.subr.bf16.mxu1 %v6194_v29  ;;  %v6416_v29 = vrot.slane %v6407_v50, %v176_v52 }
 0x14b   :  { %3965 = vmatpush1.bf16.msra.mxu1 %v6200_v27  ;;  %v6413_v27 = vrot.slane %v6399_v10, %v180_v33 }
 0x14c   :  { %3967 = vmatprep.subr.bf16.mxu1 %v7746_v53  ;;  %v6410_v53 = vrot.slane %v6399_v10, %v176_v52 }
 0x14f   :  { %3969 = vmatpush1.bf16.msra.mxu1 %v7747_v32 }
 0x150   :  { %4099 = vmatprep.subr.bf16.mxu1 %v5950_v46 }
 0x155   :  { %v319_v38 = vpop.f32.mrb[0].mxu1 }
 0x156   :  { %v320_v46 = vadd.f32 %v319_v38, %v6410_v53  ;;  %v321_v32 = vpop.f32.mrb[1].mxu1 }
 0x157   :  { %v322_v56 = vadd.f32 %v321_v32, %v6413_v27 }
 0x158   :  { %v6424_v17 = vadd.f32 %v6416_v29, %v320_v46 }
 0x159   :  { %v325_v37 = vpop.f32.mrb[2].mxu1  ;;  %v6427_v47 = vadd.f32 %v6419_v8, %v322_v56 }
 0x15a   :  { %7748 = vst [vmem:[#allocation105_spill] sm:$0xff] %v6424_v17  ;;  %v326_v25 = vadd.f32 %v325_v37, %v6410_v53  ;;  %v327_v52 = vpop.f32.mrb[3].mxu1 }
 0x15b   :  { %7749 = vst [vmem:[#allocation106_spill] sm:$0xff] %v6427_v47  ;;  %v328_v0 = vadd.f32 %v327_v52, %v6413_v27 }
 0x15c   :  { %v6432_v33 = vadd.f32 %v6416_v29, %v326_v25 }
 0x15d   :  { %v331_v51 = vpop.f32.mrb[4].mxu1  ;;  %v6435_v38 = vadd.f32 %v6419_v8, %v328_v0  ;;  %v7503_v0 = vsub.s32 4, %v6391_v57 }
 0x15e   :  { %7750 = vst [vmem:[#allocation107_spill] sm:$0xff] %v6432_v33  ;;  %v332_v32 = vadd.f32 %v331_v51, %v6410_v53  ;;  %v333_v46 = vpop.f32.mrb[5].mxu1 }
 0x15f   :  { %7751 = vst [vmem:[#allocation108_spill] sm:$0xff] %v6435_v38  ;;  %v334_v17 = vadd.f32 %v333_v46, %v6413_v27  ;;  %v7506_v46 = vsub.s32 5, %v6391_v57 }
 0x160   :  { %v6440_v56 = vadd.f32 %v6416_v29, %v332_v32 }
 0x161   :  { %v337_v47 = vpop.f32.mrb[6].mxu1  ;;  %v6443_v37 = vadd.f32 %v6419_v8, %v334_v17  ;;  %v6462_v17 = vrot.slane %v6399_v10, %v7503_v0 }
 0x162   :  { %7752 = vst [vmem:[#allocation109_spill] sm:$0xff] %v6440_v56  ;;  %v338_v52 = vadd.f32 %v337_v47, %v6410_v53  ;;  %v339_v25 = vpop.f32.mrb[7].mxu1  ;;  %v6467_v47 = vrot.slane %v6399_v10, %v7506_v46 }
 0x163   :  { %7753 = vst [vmem:[#allocation110_spill] sm:$0xff] %v6443_v37  ;;  %v340_v33 = vadd.f32 %v339_v25, %v6413_v27 }
 0x164   :  { %v6449_v38 = vadd.f32 %v6416_v29, %v338_v52 }
 0x165   :  { %v6451_v51 = vpop.f32.mrb[8].mxu0  ;;  %v6455_v32 = vadd.f32 %v6419_v8, %v340_v33 }
 0x166   :  { %7754 = vst [vmem:[#allocation111_spill] sm:$0xff] %v6449_v38  ;;  %v6457_v56 = vpop.f32.mrb[9].mxu0 }
 0x167   :  { %7755 = vst [vmem:[#allocation112_spill] sm:$0xff] %v6455_v32 }
 0x169   :  { %v527_v52 = vpop.f32.mrb[10].mxu0 }
 0x16a   :  { %v6470_v25 = vadd.f32 %v527_v52, %v6462_v17  ;;  %v529_v38 = vpop.f32.mrb[11].mxu0 }
 0x16b   :  { %v6473_v33 = vadd.f32 %v529_v38, %v6467_v47 }
 0x16c   :  { %7756 = vst [vmem:[#allocation113_spill] sm:$0xff] %v6470_v25 }
 0x16d   :  { %7757 = vst [vmem:[#allocation114_spill] sm:$0xff] %v6473_v33  ;;  %v533_v32 = vpop.f32.mrb[12].mxu0 }
 0x16e   :  { %v6476_v37 = vadd.f32 %v533_v32, %v6462_v17  ;;  %v535_v30 = vpop.f32.mrb[13].mxu0 }
 0x16f   :  { %v6479_v0 = vadd.f32 %v535_v30, %v6467_v47 }
 0x170   :  { %7758 = vst [vmem:[#allocation115_spill] sm:$0xff] %v6476_v37 }
 0x171   :  { %7759 = vst [vmem:[#allocation116_spill] sm:$0xff] %v6479_v0  ;;  %v539_v3 = vpop.f32.mrb[14].mxu0 }
 0x172   :  { %v6482_v46 = vadd.f32 %v539_v3, %v6462_v17  ;;  %v541_v4 = vpop.f32.mrb[15].mxu0 }
 0x173   :  { %v6485_v52 = vadd.f32 %v541_v4, %v6467_v47 }
 0x174   :  { %7760 = vst [vmem:[#allocation117_spill] sm:$0xff] %v6482_v46 }
 0x175   :  { %7761 = vst [vmem:[#allocation118_spill] sm:$0xff] %v6485_v52  ;;  %v545_v25 = vpop.f32.mrb[16].mxu0 }
 0x176   :  { %v6488_v38 = vadd.f32 %v545_v25, %v6462_v17  ;;  %v547_v33 = vpop.f32.mrb[17].mxu0 }
 0x177   :  { %v6491_v32 = vadd.f32 %v547_v33, %v6467_v47 }
 0x178   :  { %7762 = vst [vmem:[#allocation119_spill] sm:$0xff] %v6488_v38 }
 0x179   :  { %7763 = vst [vmem:[#allocation120_spill] sm:$0xff] %v6491_v32  ;;  %v551_v37 = vpop.f32.mrb[18].mxu0 }
 0x17a   :  { %v6494_v30 = vadd.f32 %v551_v37, %v6462_v17  ;;  %v553_v0 = vpop.f32.mrb[19].mxu0 }
 0x17b   :  { %v6497_v3 = vadd.f32 %v553_v0, %v6467_v47 }
 0x17c   :  { %7764 = vst [vmem:[#allocation121_spill] sm:$0xff] %v6494_v30 }
 0x17d   :  { %7765 = vst [vmem:[#allocation122_spill] sm:$0xff] %v6497_v3  ;;  %v557_v46 = vpop.f32.mrb[20].mxu0 }
 0x17e   :  { %v6500_v4 = vadd.f32 %v557_v46, %v6462_v17  ;;  %v559_v52 = vpop.f32.mrb[21].mxu0  ;;  %v7770_v46 = vmov 0  }
 0x17f   :  { %v6503_v25 = vadd.f32 %v559_v52, %v6467_v47  ;;  %v6515_v52 = vadd.f32 %v6416_v29, %v6410_v53 }
 0x180   :  { %7766 = vst [vmem:[#allocation123_spill] sm:$0xff] %v6500_v4  ;;  %v1395_v4 = vsel %vm1392_vm2, 1, %v7770_v46 }
 0x181   :  { %7767 = vst [vmem:[#allocation124_spill] sm:$0xff] %v6503_v25  ;;  %v563_v38 = vpop.f32.mrb[22].mxu0  ;;  %1397 = vperm.xlu0 %5424, %v1395_v4   ;;  %7771 = vst [vmem:[#allocation127_spill] sm:$0xff] %v6515_v52 }
 0x182   :  { %v6506_v33 = vadd.f32 %v563_v38, %v6462_v17  ;;  %v565_v32 = vpop.f32.mrb[23].mxu0  ;;  %v6519_v38 = vadd.f32 %v6419_v8, %v6413_v27 }
 0x183   :  { %v6509_v37 = vadd.f32 %v565_v32, %v6467_v47  ;;  %v184_v32 = vsub.s32 2, %v6391_v57 }
 0x184   :  { %7768 = vst [vmem:[#allocation125_spill] sm:$0xff] %v6506_v33  ;;  %7772 = vst [vmem:[#allocation128_spill] sm:$0xff] %v6519_v38  ;;  %v188_v33 = vsub.s32 3, %v6391_v57 }
 0x185   :  { %7769 = vst [vmem:[#allocation126_spill] sm:$0xff] %v6509_v37  ;;  %v185_v1 = vrot.slane %v6399_v10, %v184_v32  ;;  %v833_v4 = vrot.slane %v6407_v50, %v184_v32 }
 0x186   :  { %v189_v53 = vrot.slane %v6399_v10, %v188_v33  ;;  %v837_v29 = vrot.slane %v6407_v50, %v188_v33  ;;  %v7775_v33 = vsub.s32 4, %v6391_v57 }
 0x187   :  { %v6529_v27 = vadd.f32 %v833_v4, %v185_v1 }
 0x188   :  { %v6531_v8 = vadd.f32 %v837_v29, %v189_v53 }
 0x189   :  { %7773 = vst [vmem:[#allocation129_spill] sm:$0xff] %v6529_v27 }
 0x18a   :  { %7774 = vst [vmem:[#allocation130_spill] sm:$0xff] %v6531_v8 }
 0x1a5   :  { %v918_v30 = vpop.f32.mrb[0].mxu0  ;;  %v989_v55 = vpop.f32.mrb[8].mxu1 }
 0x1a6   :  { %v920_v0 = vpop.f32.mrb[1].mxu0  ;;  %v991_v3 = vpop.f32.mrb[9].mxu1  ;;  %v5311_v37 = vadd.f32 %v6515_v52, %v918_v30  ;;  %v5351_v30 = vadd.f32 %v6529_v27, %v989_v55  ;;  %v7777_v55 = vsub.s32 5, %v6391_v57  ;;  %v524_v57 = vadd.f32 %v6457_v56, %v6467_v47  ;;  %v7783_v47 = vld [vmem:[#allocation91_spill] sm:$0xff] }
 0x1a7   :  { %v5313_v25 = vadd.f32 %v6519_v38, %v920_v0  ;;  %v5353_v0 = vadd.f32 %v6531_v8, %v991_v3 }
 0x1a8   :  { %v3505_v46 = vmul.f32 -1.442695, %v5311_v37  ;;  %v3507_v38 = vmul.f32 -1.442695, %v5351_v30  ;;  %v6543_v3 = vrot.slane %v6407_v50, %v7777_v55 }
 0x1a9   :  { %v3506_v12 = vmul.f32 -1.442695, %v5313_v25  ;;  %v3508_v52 = vmul.f32 -1.442695, %v5353_v0  ;;  %v522_v0 = vadd.f32 %v6451_v51, %v6462_v17 }
 0x1aa   :  { %5426 = vpow2.f32 %v3505_v46  ;;  %7778 = vst [vmem:[#allocation132_spill] sm:$0xff] %v6543_v3 }
 0x1ab   :  { %5428 = vpow2.f32 %v3506_v12  ;;  %v6538_v12 = vrot.slane %v6407_v50, %v7775_v33 }
 0x1ac   :  { %5430 = vpow2.f32 %v3507_v38 }
 0x1ad   :  { %5432 = vpow2.f32 %v3508_v52  ;;  %7776 = vst [vmem:[#allocation131_spill] sm:$0xff] %v6538_v12 }
 0x1b4   :  { %v5427_v42 = vpop.eup %5426 }
 0x1b5   :  { %v5429_v32 = vpop.eup %5428  ;;  %v1073_v10 = vadd.f32 1.0, %v5427_v42 }
 0x1b6   :  { %v1074_v37 = vadd.f32 1.0, %v5429_v32  ;;  %v5431_v1 = vpop.eup %5430 }
 0x1b7   :  { %5434 = vrcp.f32 %v1073_v10  ;;  %v5433_v25 = vpop.eup %5432  ;;  %v1087_v46 = vadd.f32 1.0, %v5431_v1 }
 0x1b8   :  { %5436 = vrcp.f32 %v1074_v37  ;;  %v1088_v4 = vadd.f32 1.0, %v5433_v25 }
 0x1b9   :  { %5438 = vrcp.f32 %v1087_v46 }
 0x1ba   :  { %5440 = vrcp.f32 %v1088_v4  ;;  %v7785_v4 = vld [vmem:[#allocation94_spill] sm:$0xff] }
 0x1c1   :  { %v5435_v53 = vpop.eup %5434 }
 0x1c2   :  { %v5437_v30 = vpop.eup %5436 }
 0x1c3   :  { %v5439_v1 = vpop.eup %5438 }
 0x1c4   :  { %v5441_v25 = vpop.eup %5440  ;;  %v1099_v33 = vsub.f32 1.0, %v5439_v1  ;;  %v1103_v51 = vmul.f32 %v5439_v1, %v6220_v59  ;;  %v7781_v59 = vld [vmem:[#allocation89_spill] sm:$0xff]  ;;  %v7795_v1 = vld [vmem:[#allocation75_spill] sm:$0xff] }
 0x1c5   :  { %v1104_v46 = vmul.f32 %v5441_v25, %v6120_v63  ;;  %v7782_v63 = vld [vmem:[#allocation90_spill] sm:$0xff] }
 0x1e5   :  { %v1060_v38 = vpop.f32.mrb[24].mxu1 }
 0x1e6   :  { %v1061_v42 = vadd.f32 %v1060_v38, %v6538_v12  ;;  %v1062_v52 = vpop.f32.mrb[25].mxu1  ;;  %v1100_v38 = vsub.f32 1.0, %v5441_v25  ;;  %v7796_v25 = vld [vmem:[#allocation77_spill] sm:$0xff] }
 0x1e7   :  { %v1063_v29 = vadd.f32 %v1062_v52, %v6543_v3 }
 0x1e8   :  { %v1093_v32 = vmul.f32 %v5435_v53, %v1061_v42  ;;  %v7786_v53 = vld [vmem:[#allocation95_spill] sm:$0xff] }
 0x1e9   :  { %v1094_v50 = vmul.f32 %v5437_v30, %v1063_v29  ;;  %v7787_v29 = vld [vmem:[#allocation67_spill] sm:$0xff]  ;;  %v7788_v30 = vld [vmem:[#allocation69_spill] sm:$0xff] }
 0x1ea   :  { %v1095_v10 = vadd.f32 %v1093_v32, %v522_v0  ;;  %v7789_v0 = vld [vmem:[#allocation96_spill] sm:$0xff]  ;;  %v7790_v32 = vld [vmem:[#allocation97_spill] sm:$0xff] }
 0x1eb   :  { %v1096_v37 = vadd.f32 %v1094_v50, %v524_v57  ;;  %v7791_v57 = vld [vmem:[#allocation71_spill] sm:$0xff]  ;;  %v7792_v50 = vld [vmem:[#allocation73_spill] sm:$0xff] }
 0x1ec   :  { %5442 = vtanh.f32 %v1095_v10  ;;  %v7793_v10 = vld [vmem:[#allocation98_spill] sm:$0xff] }
 0x1ed   :  { %5444 = vtanh.f32 %v1096_v37  ;;  %v7794_v37 = vld [vmem:[#allocation99_spill] sm:$0xff] }
 0x1f6   :  { %v5443_v55 = vpop.eup %5442 }
 0x1f7   :  { %v5445_v52 = vpop.eup %5444  ;;  %v1101_v3 = vmul.f32 %v5443_v55, %v1099_v33  ;;  %v7797_v33 = vld [vmem:[#allocation100_spill] sm:$0xff]  ;;  %v7798_v55 = vld [vmem:[#allocation101_spill] sm:$0xff] }
 0x1f8   :  { %v1102_v17 = vmul.f32 %v5445_v52, %v1100_v38  ;;  %v7799_v38 = vld [vmem:[#allocation79_spill] sm:$0xff]  ;;  %v7800_v52 = vld [vmem:[#allocation81_spill] sm:$0xff] }
 0x1f9   :  { %v6553_v42 = vadd.f32 %v1103_v51, %v1101_v3  ;;  %v7784_v3 = vld [vmem:[#allocation92_spill] sm:$0xff]  ;;  %v7801_v51 = vld [vmem:[#allocation102_spill] sm:$0xff] }
 0x1fa   :  { %v6555_v56 = vadd.f32 %v1104_v46, %v1102_v17  ;;  %v7802_v17 = vld [vmem:[#allocation103_spill] sm:$0xff] }
 0x1fb   :  { %7779 = vst [vmem:[#allocation133_spill] sm:$0xff] %v6553_v42  ;;  %v7803_v46 = vld [vmem:[#allocation83_spill] sm:$0xff] }
 0x1fc   :  { %7780 = vst [vmem:[#allocation134_spill] sm:$0xff] %v6555_v56  ;;  %1198 = vmatprep.mubr.f32.mxu0 %v6555_v56  ;;  %1269 = vmatprep.mubr.f32.mxu1 %v6555_v56 }
 0x1fd   :  { %1199 = vmatmul.mubr.f32.vlgmr.msra.gmra.mrb[2].mxu0 %v6553_v42  ;;  %1270 = vmatmul.mubr.f32.vlgmr.msra.gmra.mrb[10].mxu1 %v6553_v42 }
 0x1fe   :  { %3973 = vmatpush1.bf16.msra.mxu0 %v6222_v19  ;;  %1340 = vmatprep.mubr.f32.mxu0 %v6555_v56 }
 0x1ff   :  { %3975 = vmatprep.subr.bf16.mxu0 %v7781_v59  ;;  %4101 = vmatpush1.bf16.msra.mxu1 %v5984_v61  ;;  %v7834_v61 = vld [vmem:[#allocation76_spill] sm:$0xff] }
 0x200   :  { %4103 = vmatprep.subr.bf16.mxu1 %v5988_v2  ;;  %v7833_v2 = vld [vmem:[#allocation74_spill] sm:$0xff] }
 0x202   :  { %3977 = vmatpush1.bf16.msra.mxu0 %v6231_v48 }
 0x203   :  { %3979 = vmatprep.subr.bf16.mxu0 %v6235_v43  ;;  %4105 = vmatpush1.bf16.msra.mxu1 %v5998_v11  ;;  %v7832_v11 = vld [vmem:[#allocation72_spill] sm:$0xff] }
 0x204   :  { %4107 = vmatprep.subr.bf16.mxu1 %v6004_v15  ;;  %v7831_v15 = vld [vmem:[#allocation70_spill] sm:$0xff] }
 0x206   :  { %3981 = vmatpush1.bf16.msra.mxu0 %v6240_v16 }
 0x207   :  { %3983 = vmatprep.subr.bf16.mxu0 %v6243_v40  ;;  %4109 = vmatpush1.bf16.msra.mxu1 %v6016_v23  ;;  %v7830_v23 = vld [vmem:[#allocation68_spill] sm:$0xff] }
 0x208   :  { %4111 = vmatprep.subr.bf16.mxu1 %v6022_v28  ;;  %v7829_v28 = vld [vmem:[#allocation66_spill] sm:$0xff] }
 0x20a   :  { %3985 = vmatpush1.bf16.msra.mxu0 %v6248_v60 }
 0x20b   :  { %3987 = vmatprep.subr.bf16.mxu0 %v7782_v63  ;;  %4113 = vmatpush1.bf16.msra.mxu1 %v6034_v36  ;;  %v7828_v36 = vld [vmem:[#allocation64_spill] sm:$0xff] }
 0x20c   :  { %4115 = vmatprep.subr.bf16.mxu1 %v6040_v41  ;;  %v7827_v41 = vld [vmem:[#allocation62_spill] sm:$0xff] }
 0x20e   :  { %3989 = vmatpush1.bf16.msra.mxu0 %v7783_v47 }
 0x20f   :  { %3991 = vmatprep.subr.bf16.mxu0 %v7784_v3  ;;  %4117 = vmatpush1.bf16.msra.mxu1 %v6052_v54  ;;  %v7826_v54 = vld [vmem:[#allocation60_spill] sm:$0xff] }
 0x210   :  { %4119 = vmatprep.subr.bf16.mxu1 %v6058_v58  ;;  %v7825_v58 = vld [vmem:[#allocation58_spill] sm:$0xff] }
 0x212   :  { %3993 = vmatpush1.bf16.msra.mxu0 %v6264_v22 }
 0x213   :  { %3995 = vmatprep.subr.bf16.mxu0 %v6272_v62  ;;  %4121 = vmatpush1.bf16.msra.mxu1 %v6070_v6  ;;  %v7824_v6 = vld [vmem:[#allocation56_spill] sm:$0xff] }
 0x214   :  { %4123 = vmatprep.subr.bf16.mxu1 %v6076_v13  ;;  %v7823_v13 = vld [vmem:[#allocation54_spill] sm:$0xff] }
 0x216   :  { %3997 = vmatpush1.bf16.msra.mxu0 %v6281_v20 }
 0x217   :  { %3999 = vmatprep.subr.bf16.mxu0 %v6284_v31  ;;  %4125 = vmatpush1.bf16.msra.mxu1 %v6088_v24  ;;  %v7822_v24 = vld [vmem:[#allocation52_spill] sm:$0xff] }
 0x218   :  { %4127 = vmatprep.subr.bf16.mxu1 %v7733_v7  ;;  %v7821_v7 = vld [vmem:[#allocation50_spill] sm:$0xff] }
 0x21a   :  { %4001 = vmatpush1.bf16.msra.mxu0 %v6289_v14 }
 0x21b   :  { %4003 = vmatprep.subr.bf16.mxu0 %v6292_v49  ;;  %4129 = vmatpush1.bf16.msra.mxu1 %v7734_v44  ;;  %v7820_v44 = vld [vmem:[#allocation48_spill] sm:$0xff] }
 0x21c   :  { %4131 = vmatprep.subr.bf16.mxu1 %v7735_v45  ;;  %v7819_v45 = vld [vmem:[#allocation46_spill] sm:$0xff] }
 0x21e   :  { %4005 = vmatpush1.bf16.msra.mxu0 %v6297_v5 }
 0x21f   :  { %4007 = vmatprep.subr.bf16.mxu0 %v6300_v9  ;;  %4133 = vmatpush1.bf16.msra.mxu1 %v7736_v34  ;;  %v7818_v34 = vld [vmem:[#allocation44_spill] sm:$0xff] }
 0x220   :  { %4135 = vmatprep.subr.bf16.mxu1 %v7737_v26  ;;  %v7816_v26 = vld [vmem:[#allocation40_spill] sm:$0xff] }
 0x222   :  { %4009 = vmatpush1.bf16.msra.mxu0 %v6305_v21 }
 0x223   :  { %4011 = vmatprep.subr.bf16.mxu0 %v6308_v35  ;;  %4137 = vmatpush1.bf16.msra.mxu1 %v7738_v39  ;;  %v7815_v39 = vld [vmem:[#allocation38_spill] sm:$0xff] }
 0x224   :  { %4139 = vmatprep.subr.bf16.mxu1 %v7739_v18  ;;  %v7812_v18 = vld [vmem:[#allocation32_spill] sm:$0xff] }
 0x226   :  { %4013 = vmatpush1.bf16.msra.mxu0 %v7785_v4 }
 0x227   :  { %4015 = vmatprep.subr.bf16.mxu0 %v7786_v53  ;;  %4141 = vmatpush1.bf16.msra.mxu1 %v7787_v29  ;;  %v7811_v29 = vld [vmem:[#allocation30_spill] sm:$0xff] }
 0x228   :  { %4143 = vmatprep.subr.bf16.mxu1 %v7788_v30  ;;  %v7808_v30 = vld [vmem:[#allocation88_spill] sm:$0xff] }
 0x22a   :  { %4017 = vmatpush1.bf16.msra.mxu0 %v7789_v0 }
 0x22b   :  { %4019 = vmatprep.subr.bf16.mxu0 %v7790_v32  ;;  %4145 = vmatpush1.bf16.msra.mxu1 %v7791_v57  ;;  %v7805_v57 = vld [vmem:[#allocation104_spill] sm:$0xff] }
 0x22c   :  { %4147 = vmatprep.subr.bf16.mxu1 %v7792_v50  ;;  %v7804_v50 = vld [vmem:[#allocation85_spill] sm:$0xff] }
 0x22e   :  { %4021 = vmatpush1.bf16.msra.mxu0 %v7793_v10 }
 0x22f   :  { %4023 = vmatprep.subr.bf16.mxu0 %v7794_v37  ;;  %4149 = vmatpush1.bf16.msra.mxu1 %v7795_v1  ;;  %v7806_v1 = vld [vmem:[#allocation25_spill] sm:$0xff] }
 0x230   :  { %4151 = vmatprep.subr.bf16.mxu1 %v7796_v25  ;;  %v7807_v25 = vld [vmem:[#allocation87_spill] sm:$0xff] }
 0x232   :  { %4025 = vmatpush1.bf16.msra.mxu0 %v7797_v33 }
 0x233   :  { %4027 = vmatprep.subr.bf16.mxu0 %v7798_v55  ;;  %4153 = vmatpush1.bf16.msra.mxu1 %v7799_v38  ;;  %v7809_v38 = vld [vmem:[#allocation26_spill] sm:$0xff] }
 0x234   :  { %4155 = vmatprep.subr.bf16.mxu1 %v7800_v52  ;;  %v7810_v52 = vld [vmem:[#allocation28_spill] sm:$0xff]  ;;  %v7839_v55 = vld [vmem:[#allocation86_spill] sm:$0xff] }
 0x236   :  { %4029 = vmatpush1.bf16.msra.mxu0 %v7801_v51  ;;  %v7838_v51 = vld [vmem:[#allocation84_spill] sm:$0xff] }
 0x237   :  { %4031 = vmatprep.subr.bf16.mxu0 %v7802_v17  ;;  %4157 = vmatpush1.bf16.msra.mxu1 %v7803_v46  ;;  %v7813_v46 = vld [vmem:[#allocation34_spill] sm:$0xff] }
 0x238   :  { %4159 = vmatprep.subr.bf16.mxu1 %v7804_v50  ;;  %v7814_v50 = vld [vmem:[#allocation36_spill] sm:$0xff]  ;;  %v7837_v17 = vld [vmem:[#allocation82_spill] sm:$0xff] }
 0x23a   :  { %4033 = vmatpush1.bf16.msra.mxu0 %v7805_v57  ;;  %v7836_v57 = vld [vmem:[#allocation80_spill] sm:$0xff] }
 0x23b   :  { %4035 = vmatprep.subr.bf16.mxu0 %v7806_v1  ;;  %4161 = vmatpush1.bf16.msra.mxu1 %v7807_v25  ;;  %v7817_v25 = vld [vmem:[#allocation42_spill] sm:$0xff] }
 0x23c   :  { %4163 = vmatprep.subr.bf16.mxu1 %v7808_v30  ;;  %v7835_v30 = vld [vmem:[#allocation78_spill] sm:$0xff] }
 0x23d   :  { %1341 = vmatmul.mubr.f32.vlgmr.msra.gmra.mrb[24].mxu0 %v6553_v42 }
 0x23e   :  { %4037 = vmatpush1.bf16.msra.mxu0 %v7809_v38 }
 0x23f   :  { %4039 = vmatprep.subr.bf16.mxu0 %v7810_v52 }
 0x242   :  { %4041 = vmatpush1.bf16.msra.mxu0 %v7811_v29 }
 0x243   :  { %4043 = vmatprep.subr.bf16.mxu0 %v7812_v18 }
 0x246   :  { %4045 = vmatpush1.bf16.msra.mxu0 %v7813_v46 }
 0x247   :  { %4047 = vmatprep.subr.bf16.mxu0 %v7814_v50 }
 0x24a   :  { %4049 = vmatpush1.bf16.msra.mxu0 %v7815_v39 }
 0x24b   :  { %4051 = vmatprep.subr.bf16.mxu0 %v7816_v26 }
 0x24e   :  { %4053 = vmatpush1.bf16.msra.mxu0 %v7817_v25 }
 0x24f   :  { %4055 = vmatprep.subr.bf16.mxu0 %v7818_v34 }
 0x252   :  { %4057 = vmatpush1.bf16.msra.mxu0 %v7819_v45 }
 0x253   :  { %4059 = vmatprep.subr.bf16.mxu0 %v7820_v44 }
 0x256   :  { %4061 = vmatpush1.bf16.msra.mxu0 %v7821_v7 }
 0x257   :  { %4063 = vmatprep.subr.bf16.mxu0 %v7822_v24 }
 0x25a   :  { %4065 = vmatpush1.bf16.msra.mxu0 %v7823_v13 }
 0x25b   :  { %4067 = vmatprep.subr.bf16.mxu0 %v7824_v6 }
 0x25e   :  { %4069 = vmatpush1.bf16.msra.mxu0 %v7825_v58 }
 0x25f   :  { %4071 = vmatprep.subr.bf16.mxu0 %v7826_v54 }
 0x262   :  { %4073 = vmatpush1.bf16.msra.mxu0 %v7827_v41 }
 0x263   :  { %4075 = vmatprep.subr.bf16.mxu0 %v7828_v36 }
 0x266   :  { %4077 = vmatpush1.bf16.msra.mxu0 %v7829_v28 }
 0x267   :  { %4079 = vmatprep.subr.bf16.mxu0 %v7830_v23 }
 0x26a   :  { %4081 = vmatpush1.bf16.msra.mxu0 %v7831_v15  ;;  %v7840_v15 = vld [vmem:[#allocation93_spill] sm:$0xff] }
 0x26b   :  { %4083 = vmatprep.subr.bf16.mxu0 %v7832_v11  ;;  %vm1674_vm3 = vcmp.eq.s32.totalorder %v7840_v15, 2 }
 0x26e   :  { %4085 = vmatpush1.bf16.msra.mxu0 %v7833_v2  ;;  %v7841_v2 = vmov 0  }
 0x26f   :  { %4087 = vmatprep.subr.bf16.mxu0 %v7834_v61  ;;  %v1677_v61 = vsel %vm1674_vm3, 1, %v7841_v2 }
 0x270   :  { %1679 = vperm.xlu1 %5425, %v1677_v61  }
 0x272   :  { %4089 = vmatpush1.bf16.msra.mxu0 %v7835_v30  ;;  %v7842_v30 = vld [vmem:[#allocation127_spill] sm:$0xff] }
 0x273   :  { %4091 = vmatprep.subr.bf16.mxu0 %v7836_v57  ;;  %v7843_v57 = vld [vmem:[#allocation128_spill] sm:$0xff] }
 0x276   :  { %4093 = vmatpush1.bf16.msra.mxu0 %v7837_v17 }
 0x277   :  { %4095 = vmatprep.subr.bf16.mxu0 %v7838_v51 }
 0x27a   :  { %4097 = vmatpush1.bf16.msra.mxu0 %v7839_v55 }
 0x27b   :  { %4227 = vmatprep.subr.bf16.mxu0 %v7806_v1 }
 0x2d0   :  { %v1200_v33 = vpop.f32.mrb[2].mxu0  ;;  %v1271_v37 = vpop.f32.mrb[10].mxu1 }
 0x2d1   :  { %v1202_v10 = vpop.f32.mrb[3].mxu0  ;;  %v1273_v11 = vpop.f32.mrb[11].mxu1  ;;  %v5315_v32 = vadd.f32 %v7842_v30, %v1200_v33  ;;  %v5355_v55 = vadd.f32 %v6529_v27, %v1271_v37 }
 0x2d2   :  { %v5317_v0 = vadd.f32 %v7843_v57, %v1202_v10  ;;  %v5357_v1 = vadd.f32 %v6531_v8, %v1273_v11  ;;  %v7844_v11 = vld [vmem:[#allocation132_spill] sm:$0xff] }
 0x2d3   :  { %v3509_v17 = vmul.f32 -1.442695, %v5315_v32  ;;  %v3511_v51 = vmul.f32 -1.442695, %v5355_v55 }
 0x2d4   :  { %v3510_v23 = vmul.f32 -1.442695, %v5317_v0  ;;  %v3512_v28 = vmul.f32 -1.442695, %v5357_v1 }
 0x2d5   :  { %5446 = vpow2.f32 %v3509_v17 }
 0x2d6   :  { %5448 = vpow2.f32 %v3510_v23 }
 0x2d7   :  { %5450 = vpow2.f32 %v3511_v51  ;;  %v7846_v51 = vld [vmem:[#allocation114_spill] sm:$0xff] }
 0x2d8   :  { %5452 = vpow2.f32 %v3512_v28 }
 0x2df   :  { %v5447_v53 = vpop.eup %5446 }
 0x2e0   :  { %v5449_v4 = vpop.eup %5448  ;;  %v1355_v15 = vadd.f32 1.0, %v5447_v53  ;;  %v7845_v53 = vld [vmem:[#allocation113_spill] sm:$0xff] }
 0x2e1   :  { %v1356_v61 = vadd.f32 1.0, %v5449_v4  ;;  %v5451_v33 = vpop.eup %5450 }
 0x2e2   :  { %5454 = vrcp.f32 %v1355_v15  ;;  %v5453_v10 = vpop.eup %5452  ;;  %v1369_v32 = vadd.f32 1.0, %v5451_v33 }
 0x2e3   :  { %5456 = vrcp.f32 %v1356_v61  ;;  %v1370_v0 = vadd.f32 1.0, %v5453_v10 }
 0x2e4   :  { %5458 = vrcp.f32 %v1369_v32 }
 0x2e5   :  { %5460 = vrcp.f32 %v1370_v0 }
 0x2ec   :  { %v5455_v27 = vpop.eup %5454 }
 0x2ed   :  { %v5457_v1 = vpop.eup %5456 }
 0x2ee   :  { %v5459_v61 = vpop.eup %5458 }
 0x2ef   :  { %v5461_v33 = vpop.eup %5460  ;;  %v1381_v10 = vsub.f32 1.0, %v5459_v61 }
 0x310   :  { %v1342_v17 = vpop.f32.mrb[24].mxu0 }
 0x311   :  { %v1343_v23 = vadd.f32 %v1342_v17, %v6538_v12  ;;  %v1344_v37 = vpop.f32.mrb[25].mxu0  ;;  %v1382_v17 = vsub.f32 1.0, %v5461_v33 }
 0x312   :  { %v1345_v55 = vadd.f32 %v1344_v37, %v7844_v11  ;;  %v1385_v37 = vmul.f32 %v5459_v61, %v6553_v42  ;;  %v7862_v61 = vld [vmem:[#allocation101_spill] sm:$0xff]  ;;  %v7869_v42 = vld [vmem:[#allocation104_spill] sm:$0xff] }
 0x313   :  { %v1375_v8 = vmul.f32 %v5455_v27, %v1343_v23  ;;  %v1386_v27 = vmul.f32 %v5461_v33, %v6555_v56  ;;  %v7853_v23 = vld [vmem:[#allocation96_spill] sm:$0xff]  ;;  %v7863_v33 = vld [vmem:[#allocation78_spill] sm:$0xff] }
 0x314   :  { %v1376_v28 = vmul.f32 %v5457_v1, %v1345_v55  ;;  %v7855_v55 = vld [vmem:[#allocation70_spill] sm:$0xff]  ;;  %v7856_v1 = vld [vmem:[#allocation72_spill] sm:$0xff] }
 0x315   :  { %v1377_v4 = vadd.f32 %v1375_v8, %v7845_v53  ;;  %v7849_v8 = vld [vmem:[#allocation94_spill] sm:$0xff]  ;;  %v7858_v53 = vld [vmem:[#allocation99_spill] sm:$0xff]  ;;  %v7868_v56 = vld [vmem:[#allocation84_spill] sm:$0xff] }
 0x316   :  { %v1378_v15 = vadd.f32 %v1376_v28, %v7846_v51  ;;  %v7857_v28 = vld [vmem:[#allocation98_spill] sm:$0xff]  ;;  %v7860_v51 = vld [vmem:[#allocation76_spill] sm:$0xff] }
 0x317   :  { %5462 = vtanh.f32 %v1377_v4  ;;  %v7859_v4 = vld [vmem:[#allocation74_spill] sm:$0xff] }
 0x318   :  { %5464 = vtanh.f32 %v1378_v15  ;;  %v7861_v15 = vld [vmem:[#allocation100_spill] sm:$0xff] }
 0x321   :  { %v5463_v57 = vpop.eup %5462 }
 0x322   :  { %v5465_v12 = vpop.eup %5464  ;;  %v1383_v30 = vmul.f32 %v5463_v57, %v1381_v10  ;;  %v7852_v57 = vld [vmem:[#allocation68_spill] sm:$0xff] }
 0x323   :  { %v1384_v11 = vmul.f32 %v5465_v12, %v1382_v17  ;;  %v7850_v12 = vld [vmem:[#allocation95_spill] sm:$0xff]  ;;  %v7864_v10 = vld [vmem:[#allocation80_spill] sm:$0xff]  ;;  %v7865_v17 = vld [vmem:[#allocation102_spill] sm:$0xff] }
 0x324   :  { %v6671_v32 = vadd.f32 %v1385_v37, %v1383_v30  ;;  %v7851_v30 = vld [vmem:[#allocation66_spill] sm:$0xff]  ;;  %v7866_v37 = vld [vmem:[#allocation103_spill] sm:$0xff] }
 0x325   :  { %v6673_v0 = vadd.f32 %v1386_v27, %v1384_v11  ;;  %v7854_v11 = vld [vmem:[#allocation97_spill] sm:$0xff]  ;;  %v7867_v27 = vld [vmem:[#allocation82_spill] sm:$0xff] }
 0x326   :  { %7847 = vst [vmem:[#allocation89_spill] sm:$0xff] %v6671_v32 }
 0x327   :  { %7848 = vst [vmem:[#allocation90_spill] sm:$0xff] %v6673_v0  ;;  %1480 = vmatprep.mubr.f32.mxu0 %v6673_v0  ;;  %1551 = vmatprep.mubr.f32.mxu1 %v6673_v0 }
 0x328   :  { %1481 = vmatmul.mubr.f32.vlgmr.msra.gmra.mrb[4].mxu0 %v6671_v32  ;;  %1552 = vmatmul.mubr.f32.vlgmr.msra.gmra.mrb[12].mxu1 %v6671_v32 }
 0x329   :  { %4165 = vmatpush1.bf16.msra.mxu1 %v6222_v19  ;;  %1622 = vmatprep.mubr.f32.mxu1 %v6673_v0 }
 0x32a   :  { %4167 = vmatprep.subr.bf16.mxu1 %v7781_v59  ;;  %4229 = vmatpush1.bf16.msra.mxu0 %v7809_v38  ;;  %v7900_v38 = vld [vmem:[#allocation81_spill] sm:$0xff] }
 0x32b   :  { %4231 = vmatprep.subr.bf16.mxu0 %v7810_v52  ;;  %v7899_v52 = vld [vmem:[#allocation79_spill] sm:$0xff] }
 0x32d   :  { %4169 = vmatpush1.bf16.msra.mxu1 %v6231_v48 }
 0x32e   :  { %4171 = vmatprep.subr.bf16.mxu1 %v6235_v43  ;;  %4233 = vmatpush1.bf16.msra.mxu0 %v7811_v29  ;;  %v7898_v29 = vld [vmem:[#allocation77_spill] sm:$0xff] }
 0x32f   :  { %4235 = vmatprep.subr.bf16.mxu0 %v7812_v18  ;;  %v7897_v18 = vld [vmem:[#allocation75_spill] sm:$0xff] }
 0x331   :  { %4173 = vmatpush1.bf16.msra.mxu1 %v6240_v16 }
 0x332   :  { %4175 = vmatprep.subr.bf16.mxu1 %v6243_v40  ;;  %4237 = vmatpush1.bf16.msra.mxu0 %v7813_v46  ;;  %v7896_v46 = vld [vmem:[#allocation73_spill] sm:$0xff] }
 0x333   :  { %4239 = vmatprep.subr.bf16.mxu0 %v7814_v50  ;;  %v7895_v50 = vld [vmem:[#allocation71_spill] sm:$0xff] }
 0x335   :  { %4177 = vmatpush1.bf16.msra.mxu1 %v6248_v60 }
 0x336   :  { %4179 = vmatprep.subr.bf16.mxu1 %v7782_v63  ;;  %4241 = vmatpush1.bf16.msra.mxu0 %v7815_v39  ;;  %v7894_v39 = vld [vmem:[#allocation69_spill] sm:$0xff] }
 0x337   :  { %4243 = vmatprep.subr.bf16.mxu0 %v7816_v26  ;;  %v7893_v26 = vld [vmem:[#allocation67_spill] sm:$0xff] }
 0x339   :  { %4181 = vmatpush1.bf16.msra.mxu1 %v7783_v47 }
 0x33a   :  { %4183 = vmatprep.subr.bf16.mxu1 %v7784_v3  ;;  %4245 = vmatpush1.bf16.msra.mxu0 %v7817_v25  ;;  %v7892_v25 = vld [vmem:[#allocation65_spill] sm:$0xff] }
 0x33b   :  { %4247 = vmatprep.subr.bf16.mxu0 %v7818_v34  ;;  %v7891_v34 = vld [vmem:[#allocation63_spill] sm:$0xff] }
 0x33d   :  { %4185 = vmatpush1.bf16.msra.mxu1 %v6264_v22 }
 0x33e   :  { %4187 = vmatprep.subr.bf16.mxu1 %v6272_v62  ;;  %4249 = vmatpush1.bf16.msra.mxu0 %v7819_v45  ;;  %v7890_v45 = vld [vmem:[#allocation61_spill] sm:$0xff] }
 0x33f   :  { %4251 = vmatprep.subr.bf16.mxu0 %v7820_v44  ;;  %v7889_v44 = vld [vmem:[#allocation59_spill] sm:$0xff] }
 0x341   :  { %4189 = vmatpush1.bf16.msra.mxu1 %v6281_v20 }
 0x342   :  { %4191 = vmatprep.subr.bf16.mxu1 %v6284_v31  ;;  %4253 = vmatpush1.bf16.msra.mxu0 %v7821_v7  ;;  %v7888_v7 = vld [vmem:[#allocation57_spill] sm:$0xff] }
 0x343   :  { %4255 = vmatprep.subr.bf16.mxu0 %v7822_v24  ;;  %v7887_v24 = vld [vmem:[#allocation55_spill] sm:$0xff] }
 0x345   :  { %4193 = vmatpush1.bf16.msra.mxu1 %v6289_v14 }
 0x346   :  { %4195 = vmatprep.subr.bf16.mxu1 %v6292_v49  ;;  %4257 = vmatpush1.bf16.msra.mxu0 %v7823_v13  ;;  %v7886_v13 = vld [vmem:[#allocation53_spill] sm:$0xff] }
 0x347   :  { %4259 = vmatprep.subr.bf16.mxu0 %v7824_v6  ;;  %v7885_v6 = vld [vmem:[#allocation51_spill] sm:$0xff] }
 0x349   :  { %4197 = vmatpush1.bf16.msra.mxu1 %v6297_v5 }
 0x34a   :  { %4199 = vmatprep.subr.bf16.mxu1 %v6300_v9  ;;  %4261 = vmatpush1.bf16.msra.mxu0 %v7825_v58  ;;  %v7884_v58 = vld [vmem:[#allocation49_spill] sm:$0xff] }
 0x34b   :  { %4263 = vmatprep.subr.bf16.mxu0 %v7826_v54  ;;  %v7883_v54 = vld [vmem:[#allocation47_spill] sm:$0xff] }
 0x34d   :  { %4201 = vmatpush1.bf16.msra.mxu1 %v6305_v21 }
 0x34e   :  { %4203 = vmatprep.subr.bf16.mxu1 %v6308_v35  ;;  %4265 = vmatpush1.bf16.msra.mxu0 %v7827_v41  ;;  %v7882_v41 = vld [vmem:[#allocation45_spill] sm:$0xff] }
 0x34f   :  { %4267 = vmatprep.subr.bf16.mxu0 %v7828_v36  ;;  %v7880_v36 = vld [vmem:[#allocation41_spill] sm:$0xff] }
 0x351   :  { %4205 = vmatpush1.bf16.msra.mxu1 %v7849_v8 }
 0x352   :  { %4207 = vmatprep.subr.bf16.mxu1 %v7850_v12  ;;  %4269 = vmatpush1.bf16.msra.mxu0 %v7851_v30  ;;  %v7879_v30 = vld [vmem:[#allocation39_spill] sm:$0xff] }
 0x353   :  { %4271 = vmatprep.subr.bf16.mxu0 %v7852_v57  ;;  %v7876_v57 = vld [vmem:[#allocation33_spill] sm:$0xff] }
 0x355   :  { %4209 = vmatpush1.bf16.msra.mxu1 %v7853_v23 }
 0x356   :  { %4211 = vmatprep.subr.bf16.mxu1 %v7854_v11  ;;  %4273 = vmatpush1.bf16.msra.mxu0 %v7855_v55  ;;  %v7875_v55 = vld [vmem:[#allocation31_spill] sm:$0xff] }
 0x357   :  { %4275 = vmatprep.subr.bf16.mxu0 %v7856_v1  ;;  %v7872_v1 = vld [vmem:[#allocation88_spill] sm:$0xff] }
 0x359   :  { %4213 = vmatpush1.bf16.msra.mxu1 %v7857_v28  ;;  %v7907_v28 = vld [vmem:[#allocation129_spill] sm:$0xff] }
 0x35a   :  { %4215 = vmatprep.subr.bf16.mxu1 %v7858_v53  ;;  %4277 = vmatpush1.bf16.msra.mxu0 %v7859_v4  ;;  %v7870_v4 = vld [vmem:[#allocation24_spill] sm:$0xff] }
 0x35b   :  { %4279 = vmatprep.subr.bf16.mxu0 %v7860_v51  ;;  %v7871_v51 = vld [vmem:[#allocation86_spill] sm:$0xff] }
 0x35d   :  { %4217 = vmatpush1.bf16.msra.mxu1 %v7861_v15 }
 0x35e   :  { %4219 = vmatprep.subr.bf16.mxu1 %v7862_v61  ;;  %4281 = vmatpush1.bf16.msra.mxu0 %v7863_v33  ;;  %v7873_v33 = vld [vmem:[#allocation27_spill] sm:$0xff] }
 0x35f   :  { %4283 = vmatprep.subr.bf16.mxu0 %v7864_v10  ;;  %v7874_v10 = vld [vmem:[#allocation29_spill] sm:$0xff] }
 0x361   :  { %4221 = vmatpush1.bf16.msra.mxu1 %v7865_v17 }
 0x362   :  { %4223 = vmatprep.subr.bf16.mxu1 %v7866_v37  ;;  %4285 = vmatpush1.bf16.msra.mxu0 %v7867_v27  ;;  %v7877_v27 = vld [vmem:[#allocation35_spill] sm:$0xff] }
 0x363   :  { %4287 = vmatprep.subr.bf16.mxu0 %v7868_v56  ;;  %v7878_v56 = vld [vmem:[#allocation37_spill] sm:$0xff]  ;;  %v7903_v37 = vld [vmem:[#allocation87_spill] sm:$0xff] }
 0x365   :  { %4225 = vmatpush1.bf16.msra.mxu1 %v7869_v42  ;;  %v7902_v42 = vld [vmem:[#allocation85_spill] sm:$0xff] }
 0x366   :  { %4291 = vmatprep.subr.bf16.mxu1 %v7870_v4  ;;  %4289 = vmatpush1.bf16.msra.mxu0 %v7871_v51  ;;  %v7881_v51 = vld [vmem:[#allocation43_spill] sm:$0xff] }
 0x367   :  { %4355 = vmatprep.subr.bf16.mxu0 %v7872_v1  ;;  %v7901_v1 = vld [vmem:[#allocation83_spill] sm:$0xff] }
 0x368   :  { %1623 = vmatmul.mubr.f32.vlgmr.msra.gmra.mrb[26].mxu1 %v6671_v32 }
 0x369   :  { %4293 = vmatpush1.bf16.msra.mxu1 %v7873_v33 }
 0x36a   :  { %4295 = vmatprep.subr.bf16.mxu1 %v7874_v10 }
 0x36d   :  { %4297 = vmatpush1.bf16.msra.mxu1 %v7875_v55 }
 0x36e   :  { %4299 = vmatprep.subr.bf16.mxu1 %v7876_v57 }
 0x371   :  { %4301 = vmatpush1.bf16.msra.mxu1 %v7877_v27 }
 0x372   :  { %4303 = vmatprep.subr.bf16.mxu1 %v7878_v56 }
 0x375   :  { %4305 = vmatpush1.bf16.msra.mxu1 %v7879_v30 }
 0x376   :  { %4307 = vmatprep.subr.bf16.mxu1 %v7880_v36 }
 0x379   :  { %4309 = vmatpush1.bf16.msra.mxu1 %v7881_v51 }
 0x37a   :  { %4311 = vmatprep.subr.bf16.mxu1 %v7882_v41 }
 0x37d   :  { %4313 = vmatpush1.bf16.msra.mxu1 %v7883_v54 }
 0x37e   :  { %4315 = vmatprep.subr.bf16.mxu1 %v7884_v58 }
 0x381   :  { %4317 = vmatpush1.bf16.msra.mxu1 %v7885_v6 }
 0x382   :  { %4319 = vmatprep.subr.bf16.mxu1 %v7886_v13 }
 0x385   :  { %4321 = vmatpush1.bf16.msra.mxu1 %v7887_v24 }
 0x386   :  { %4323 = vmatprep.subr.bf16.mxu1 %v7888_v7 }
 0x389   :  { %4325 = vmatpush1.bf16.msra.mxu1 %v7889_v44 }
 0x38a   :  { %4327 = vmatprep.subr.bf16.mxu1 %v7890_v45 }
 0x38d   :  { %4329 = vmatpush1.bf16.msra.mxu1 %v7891_v34 }
 0x38e   :  { %4331 = vmatprep.subr.bf16.mxu1 %v7892_v25 }
 0x391   :  { %4333 = vmatpush1.bf16.msra.mxu1 %v7893_v26 }
 0x392   :  { %4335 = vmatprep.subr.bf16.mxu1 %v7894_v39 }
 0x395   :  { %4337 = vmatpush1.bf16.msra.mxu1 %v7895_v50  ;;  %v7908_v50 = vld [vmem:[#allocation130_spill] sm:$0xff] }
 0x396   :  { %4339 = vmatprep.subr.bf16.mxu1 %v7896_v46 }
 0x399   :  { %4341 = vmatpush1.bf16.msra.mxu1 %v7897_v18 }
 0x39a   :  { %4343 = vmatprep.subr.bf16.mxu1 %v7898_v29  ;;  %v6780_v29 = vld [vmem:[%s7359_s1] sm:$0xff] }
 0x39b   :  { %7904 = vst [vmem:[#allocation91_spill] sm:$0xff] %v6780_v29  ;;  %vm1956_vm4 = vcmp.eq.s32.totalorder %v6780_v29, 3 }
 0x39d   :  { %4345 = vmatpush1.bf16.msra.mxu1 %v7899_v52  ;;  %v7906_v52 = vld [vmem:[#allocation128_spill] sm:$0xff] }
 0x39e   :  { %4347 = vmatprep.subr.bf16.mxu1 %v7900_v38  ;;  %v1959_v38 = vsel %vm1956_vm4, 1, %v7841_v2 }
 0x39f   :  { %1961 = vperm.xlu1 %5425, %v1959_v38  }
 0x3a1   :  { %4349 = vmatpush1.bf16.msra.mxu1 %v7901_v1  ;;  %v7905_v1 = vld [vmem:[#allocation127_spill] sm:$0xff] }
 0x3a2   :  { %4351 = vmatprep.subr.bf16.mxu1 %v7902_v42 }
 0x3a5   :  { %4353 = vmatpush1.bf16.msra.mxu1 %v7903_v37 }
 0x3a6   :  { %4483 = vmatprep.subr.bf16.mxu1 %v7870_v4 }
 0x3fb   :  { %v1482_v17 = vpop.f32.mrb[4].mxu0  ;;  %v1553_v61 = vpop.f32.mrb[12].mxu1 }
 0x3fc   :  { %v1484_v15 = vpop.f32.mrb[5].mxu0  ;;  %v1555_v53 = vpop.f32.mrb[13].mxu1  ;;  %v5319_v42 = vadd.f32 %v7905_v1, %v1482_v17  ;;  %v5359_v46 = vadd.f32 %v7907_v28, %v1553_v61 }
 0x3fd   :  { %v5321_v37 = vadd.f32 %v7906_v52, %v1484_v15  ;;  %v5361_v11 = vadd.f32 %v7908_v50, %v1555_v53  ;;  %v7910_v53 = vld [vmem:[#allocation132_spill] sm:$0xff] }
 0x3fe   :  { %v3513_v18 = vmul.f32 -1.442695, %v5319_v42  ;;  %v3515_v23 = vmul.f32 -1.442695, %v5359_v46 }
 0x3ff   :  { %v3514_v4 = vmul.f32 -1.442695, %v5321_v37  ;;  %v3516_v39 = vmul.f32 -1.442695, %v5361_v11 }
 0x400   :  { %5466 = vpow2.f32 %v3513_v18 }
 0x401   :  { %5468 = vpow2.f32 %v3514_v4  ;;  %v7909_v4 = vld [vmem:[#allocation131_spill] sm:$0xff] }
 0x402   :  { %5470 = vpow2.f32 %v3515_v23 }
 0x403   :  { %5472 = vpow2.f32 %v3516_v39 }
 0x40a   :  { %v5467_v26 = vpop.eup %5466 }
 0x40b   :  { %v5469_v12 = vpop.eup %5468  ;;  %v1637_v2 = vadd.f32 1.0, %v5467_v26  ;;  %v7911_v26 = vld [vmem:[#allocation115_spill] sm:$0xff] }
 0x40c   :  { %v1638_v38 = vadd.f32 1.0, %v5469_v12  ;;  %v5471_v17 = vpop.eup %5470 }
 0x40d   :  { %5474 = vrcp.f32 %v1637_v2  ;;  %v5473_v15 = vpop.eup %5472  ;;  %v1651_v42 = vadd.f32 1.0, %v5471_v17  ;;  %v7912_v2 = vld [vmem:[#allocation116_spill] sm:$0xff] }
 0x40e   :  { %5476 = vrcp.f32 %v1638_v38  ;;  %v1652_v37 = vadd.f32 1.0, %v5473_v15 }
 0x40f   :  { %5478 = vrcp.f32 %v1651_v42 }
 0x410   :  { %5480 = vrcp.f32 %v1652_v37  ;;  %v7918_v37 = vld [vmem:[#allocation96_spill] sm:$0xff] }
 0x417   :  { %v5475_v28 = vpop.eup %5474 }
 0x418   :  { %v5477_v11 = vpop.eup %5476 }
 0x419   :  { %v5479_v38 = vpop.eup %5478 }
 0x41a   :  { %v5481_v17 = vpop.eup %5480  ;;  %v1663_v15 = vsub.f32 1.0, %v5479_v38 }
 0x43b   :  { %v1624_v18 = vpop.f32.mrb[26].mxu1 }
 0x43c   :  { %v1625_v52 = vadd.f32 %v1624_v18, %v7909_v4  ;;  %v1626_v61 = vpop.f32.mrb[27].mxu1  ;;  %v1664_v18 = vsub.f32 1.0, %v5481_v17 }
 0x43d   :  { %v1627_v46 = vadd.f32 %v1626_v61, %v7910_v53  ;;  %v1667_v61 = vmul.f32 %v5479_v38, %v6671_v32  ;;  %v7928_v38 = vld [vmem:[#allocation79_spill] sm:$0xff]  ;;  %v7935_v32 = vld [vmem:[#allocation25_spill] sm:$0xff] }
 0x43e   :  { %v1657_v50 = vmul.f32 %v5475_v28, %v1625_v52  ;;  %v1668_v52 = vmul.f32 %v5481_v17, %v6673_v0  ;;  %v7929_v17 = vld [vmem:[#allocation81_spill] sm:$0xff]  ;;  %v7934_v0 = vld [vmem:[#allocation104_spill] sm:$0xff] }
 0x43f   :  { %v1658_v39 = vmul.f32 %v5477_v11, %v1627_v46  ;;  %v7921_v46 = vld [vmem:[#allocation73_spill] sm:$0xff]  ;;  %v7922_v11 = vld [vmem:[#allocation98_spill] sm:$0xff] }
 0x440   :  { %v1659_v12 = vadd.f32 %v1657_v50, %v7911_v26  ;;  %v7916_v50 = vld [vmem:[#allocation67_spill] sm:$0xff] }
 0x441   :  { %v1660_v23 = vadd.f32 %v1658_v39, %v7912_v2  ;;  %v7923_v39 = vld [vmem:[#allocation99_spill] sm:$0xff]  ;;  %v7926_v2 = vld [vmem:[#allocation100_spill] sm:$0xff] }
 0x442   :  { %5482 = vtanh.f32 %v1659_v12  ;;  %v7924_v26 = vld [vmem:[#allocation75_spill] sm:$0xff]  ;;  %v7925_v12 = vld [vmem:[#allocation77_spill] sm:$0xff] }
 0x443   :  { %5484 = vtanh.f32 %v1660_v23  ;;  %v7927_v23 = vld [vmem:[#allocation101_spill] sm:$0xff] }
 0x44c   :  { %v5483_v1 = vpop.eup %5482 }
 0x44d   :  { %v5485_v4 = vpop.eup %5484  ;;  %v1665_v29 = vmul.f32 %v5483_v1, %v1663_v15  ;;  %v7917_v1 = vld [vmem:[#allocation69_spill] sm:$0xff]  ;;  %v7930_v15 = vld [vmem:[#allocation102_spill] sm:$0xff] }
 0x44e   :  { %v1666_v53 = vmul.f32 %v5485_v4, %v1664_v18  ;;  %v7919_v4 = vld [vmem:[#allocation97_spill] sm:$0xff]  ;;  %v7931_v18 = vld [vmem:[#allocation103_spill] sm:$0xff] }
 0x44f   :  { %v6794_v28 = vadd.f32 %v1667_v61, %v1665_v29  ;;  %v7915_v29 = vld [vmem:[#allocation95_spill] sm:$0xff] }
 0x450   :  { %v6796_v42 = vadd.f32 %v1668_v52, %v1666_v53  ;;  %v7920_v53 = vld [vmem:[#allocation71_spill] sm:$0xff]  ;;  %v7933_v52 = vld [vmem:[#allocation85_spill] sm:$0xff] }
 0x451   :  { %7913 = vst [vmem:[#allocation92_spill] sm:$0xff] %v6794_v28  ;;  %v7932_v61 = vld [vmem:[#allocation83_spill] sm:$0xff] }
 0x452   :  { %7914 = vst [vmem:[#allocation93_spill] sm:$0xff] %v6796_v42  ;;  %1762 = vmatprep.mubr.f32.mxu0 %v6796_v42  ;;  %1833 = vmatprep.mubr.f32.mxu1 %v6796_v42 }
 0x453   :  { %1763 = vmatmul.mubr.f32.vlgmr.msra.gmra.mrb[6].mxu0 %v6794_v28  ;;  %1834 = vmatmul.mubr.f32.vlgmr.msra.gmra.mrb[14].mxu1 %v6794_v28 }
 0x454   :  { %4357 = vmatpush1.bf16.msra.mxu0 %v6222_v19  ;;  %1904 = vmatprep.mubr.f32.mxu0 %v6796_v42 }
 0x455   :  { %4359 = vmatprep.subr.bf16.mxu0 %v7781_v59  ;;  %4485 = vmatpush1.bf16.msra.mxu1 %v7873_v33  ;;  %v7966_v33 = vld [vmem:[#allocation82_spill] sm:$0xff] }
 0x456   :  { %4487 = vmatprep.subr.bf16.mxu1 %v7874_v10  ;;  %v7965_v10 = vld [vmem:[#allocation80_spill] sm:$0xff] }
 0x458   :  { %4361 = vmatpush1.bf16.msra.mxu0 %v6231_v48 }
 0x459   :  { %4363 = vmatprep.subr.bf16.mxu0 %v6235_v43  ;;  %4489 = vmatpush1.bf16.msra.mxu1 %v7875_v55  ;;  %v7964_v55 = vld [vmem:[#allocation78_spill] sm:$0xff] }
 0x45a   :  { %4491 = vmatprep.subr.bf16.mxu1 %v7876_v57  ;;  %v7963_v57 = vld [vmem:[#allocation76_spill] sm:$0xff] }
 0x45c   :  { %4365 = vmatpush1.bf16.msra.mxu0 %v6240_v16 }
 0x45d   :  { %4367 = vmatprep.subr.bf16.mxu0 %v6243_v40  ;;  %4493 = vmatpush1.bf16.msra.mxu1 %v7877_v27  ;;  %v7962_v27 = vld [vmem:[#allocation74_spill] sm:$0xff] }
 0x45e   :  { %4495 = vmatprep.subr.bf16.mxu1 %v7878_v56  ;;  %v7961_v56 = vld [vmem:[#allocation72_spill] sm:$0xff] }
 0x460   :  { %4369 = vmatpush1.bf16.msra.mxu0 %v6248_v60 }
 0x461   :  { %4371 = vmatprep.subr.bf16.mxu0 %v7782_v63  ;;  %4497 = vmatpush1.bf16.msra.mxu1 %v7879_v30  ;;  %v7960_v30 = vld [vmem:[#allocation70_spill] sm:$0xff] }
 0x462   :  { %4499 = vmatprep.subr.bf16.mxu1 %v7880_v36  ;;  %v7959_v36 = vld [vmem:[#allocation68_spill] sm:$0xff] }
 0x464   :  { %4373 = vmatpush1.bf16.msra.mxu0 %v7783_v47 }
 0x465   :  { %4375 = vmatprep.subr.bf16.mxu0 %v7784_v3  ;;  %4501 = vmatpush1.bf16.msra.mxu1 %v7881_v51  ;;  %v7958_v51 = vld [vmem:[#allocation66_spill] sm:$0xff] }
 0x466   :  { %4503 = vmatprep.subr.bf16.mxu1 %v7882_v41  ;;  %v7957_v41 = vld [vmem:[#allocation64_spill] sm:$0xff] }
 0x468   :  { %4377 = vmatpush1.bf16.msra.mxu0 %v6264_v22 }
 0x469   :  { %4379 = vmatprep.subr.bf16.mxu0 %v6272_v62  ;;  %4505 = vmatpush1.bf16.msra.mxu1 %v7883_v54  ;;  %v7956_v54 = vld [vmem:[#allocation62_spill] sm:$0xff] }
 0x46a   :  { %4507 = vmatprep.subr.bf16.mxu1 %v7884_v58  ;;  %v7955_v58 = vld [vmem:[#allocation60_spill] sm:$0xff] }
 0x46c   :  { %4381 = vmatpush1.bf16.msra.mxu0 %v6281_v20 }
 0x46d   :  { %4383 = vmatprep.subr.bf16.mxu0 %v6284_v31  ;;  %4509 = vmatpush1.bf16.msra.mxu1 %v7885_v6  ;;  %v7954_v6 = vld [vmem:[#allocation58_spill] sm:$0xff] }
 0x46e   :  { %4511 = vmatprep.subr.bf16.mxu1 %v7886_v13  ;;  %v7953_v13 = vld [vmem:[#allocation56_spill] sm:$0xff] }
 0x470   :  { %4385 = vmatpush1.bf16.msra.mxu0 %v6289_v14 }
 0x471   :  { %4387 = vmatprep.subr.bf16.mxu0 %v6292_v49  ;;  %4513 = vmatpush1.bf16.msra.mxu1 %v7887_v24  ;;  %v7952_v24 = vld [vmem:[#allocation54_spill] sm:$0xff] }
 0x472   :  { %4515 = vmatprep.subr.bf16.mxu1 %v7888_v7  ;;  %v7951_v7 = vld [vmem:[#allocation52_spill] sm:$0xff] }
 0x474   :  { %4389 = vmatpush1.bf16.msra.mxu0 %v6297_v5 }
 0x475   :  { %4391 = vmatprep.subr.bf16.mxu0 %v6300_v9  ;;  %4517 = vmatpush1.bf16.msra.mxu1 %v7889_v44  ;;  %v7950_v44 = vld [vmem:[#allocation50_spill] sm:$0xff] }
 0x476   :  { %4519 = vmatprep.subr.bf16.mxu1 %v7890_v45  ;;  %v7949_v45 = vld [vmem:[#allocation48_spill] sm:$0xff] }
 0x478   :  { %4393 = vmatpush1.bf16.msra.mxu0 %v6305_v21 }
 0x479   :  { %4395 = vmatprep.subr.bf16.mxu0 %v6308_v35  ;;  %4521 = vmatpush1.bf16.msra.mxu1 %v7891_v34  ;;  %v7948_v34 = vld [vmem:[#allocation46_spill] sm:$0xff] }
 0x47a   :  { %4523 = vmatprep.subr.bf16.mxu1 %v7892_v25  ;;  %v7947_v25 = vld [vmem:[#allocation44_spill] sm:$0xff] }
 0x47c   :  { %4397 = vmatpush1.bf16.msra.mxu0 %v7849_v8 }
 0x47d   :  { %4399 = vmatprep.subr.bf16.mxu0 %v7915_v29  ;;  %4525 = vmatpush1.bf16.msra.mxu1 %v7916_v50  ;;  %v7945_v50 = vld [vmem:[#allocation40_spill] sm:$0xff] }
 0x47e   :  { %4527 = vmatprep.subr.bf16.mxu1 %v7917_v1  ;;  %v7944_v1 = vld [vmem:[#allocation38_spill] sm:$0xff] }
 0x480   :  { %4401 = vmatpush1.bf16.msra.mxu0 %v7918_v37 }
 0x481   :  { %4403 = vmatprep.subr.bf16.mxu0 %v7919_v4  ;;  %4529 = vmatpush1.bf16.msra.mxu1 %v7920_v53  ;;  %v7941_v53 = vld [vmem:[#allocation32_spill] sm:$0xff] }
 0x482   :  { %4531 = vmatprep.subr.bf16.mxu1 %v7921_v46  ;;  %v7940_v46 = vld [vmem:[#allocation30_spill] sm:$0xff] }
 0x484   :  { %4405 = vmatpush1.bf16.msra.mxu0 %v7922_v11 }
 0x485   :  { %4407 = vmatprep.subr.bf16.mxu0 %v7923_v39  ;;  %4533 = vmatpush1.bf16.msra.mxu1 %v7924_v26  ;;  %v7937_v26 = vld [vmem:[#allocation88_spill] sm:$0xff]  ;;  %v7969_v39 = vld [vmem:[#allocation91_spill] sm:$0xff] }
 0x486   :  { %4535 = vmatprep.subr.bf16.mxu1 %v7925_v12  ;;  %v7936_v12 = vld [vmem:[#allocation87_spill] sm:$0xff]  ;;  %vm2238_vm5 = vcmp.eq.s32.totalorder %v7969_v39, 4 }
 0x488   :  { %4409 = vmatpush1.bf16.msra.mxu0 %v7926_v2 }
 0x489   :  { %4411 = vmatprep.subr.bf16.mxu0 %v7927_v23  ;;  %4537 = vmatpush1.bf16.msra.mxu1 %v7928_v38  ;;  %v7938_v38 = vld [vmem:[#allocation26_spill] sm:$0xff] }
 0x48a   :  { %4539 = vmatprep.subr.bf16.mxu1 %v7929_v17  ;;  %v7939_v17 = vld [vmem:[#allocation28_spill] sm:$0xff] }
 0x48c   :  { %4413 = vmatpush1.bf16.msra.mxu0 %v7930_v15 }
 0x48d   :  { %4415 = vmatprep.subr.bf16.mxu0 %v7931_v18  ;;  %4541 = vmatpush1.bf16.msra.mxu1 %v7932_v61  ;;  %v7942_v61 = vld [vmem:[#allocation34_spill] sm:$0xff] }
 0x48e   :  { %4543 = vmatprep.subr.bf16.mxu1 %v7933_v52  ;;  %v7943_v52 = vld [vmem:[#allocation36_spill] sm:$0xff] }
 0x490   :  { %4417 = vmatpush1.bf16.msra.mxu0 %v7934_v0  ;;  %v7968_v0 = vld [vmem:[#allocation86_spill] sm:$0xff] }
 0x491   :  { %4419 = vmatprep.subr.bf16.mxu0 %v7935_v32  ;;  %4545 = vmatpush1.bf16.msra.mxu1 %v7936_v12  ;;  %v7946_v12 = vld [vmem:[#allocation42_spill] sm:$0xff] }
 0x492   :  { %4547 = vmatprep.subr.bf16.mxu1 %v7937_v26  ;;  %v7967_v26 = vld [vmem:[#allocation84_spill] sm:$0xff] }
 0x493   :  { %1905 = vmatmul.mubr.f32.vlgmr.msra.gmra.mrb[26].mxu0 %v6794_v28 }
 0x494   :  { %4421 = vmatpush1.bf16.msra.mxu0 %v7938_v38 }
 0x495   :  { %4423 = vmatprep.subr.bf16.mxu0 %v7939_v17 }
 0x498   :  { %4425 = vmatpush1.bf16.msra.mxu0 %v7940_v46 }
 0x499   :  { %4427 = vmatprep.subr.bf16.mxu0 %v7941_v53 }
 0x49c   :  { %4429 = vmatpush1.bf16.msra.mxu0 %v7942_v61 }
 0x49d   :  { %4431 = vmatprep.subr.bf16.mxu0 %v7943_v52 }
 0x4a0   :  { %4433 = vmatpush1.bf16.msra.mxu0 %v7944_v1 }
 0x4a1   :  { %4435 = vmatprep.subr.bf16.mxu0 %v7945_v50 }
 0x4a4   :  { %4437 = vmatpush1.bf16.msra.mxu0 %v7946_v12 }
 0x4a5   :  { %4439 = vmatprep.subr.bf16.mxu0 %v7947_v25 }
 0x4a8   :  { %4441 = vmatpush1.bf16.msra.mxu0 %v7948_v34 }
 0x4a9   :  { %4443 = vmatprep.subr.bf16.mxu0 %v7949_v45 }
 0x4ac   :  { %4445 = vmatpush1.bf16.msra.mxu0 %v7950_v44 }
 0x4ad   :  { %4447 = vmatprep.subr.bf16.mxu0 %v7951_v7 }
 0x4b0   :  { %4449 = vmatpush1.bf16.msra.mxu0 %v7952_v24 }
 0x4b1   :  { %4451 = vmatprep.subr.bf16.mxu0 %v7953_v13 }
 0x4b4   :  { %4453 = vmatpush1.bf16.msra.mxu0 %v7954_v6 }
 0x4b5   :  { %4455 = vmatprep.subr.bf16.mxu0 %v7955_v58 }
 0x4b8   :  { %4457 = vmatpush1.bf16.msra.mxu0 %v7956_v54 }
 0x4b9   :  { %4459 = vmatprep.subr.bf16.mxu0 %v7957_v41 }
 0x4bc   :  { %4461 = vmatpush1.bf16.msra.mxu0 %v7958_v51 }
 0x4bd   :  { %4463 = vmatprep.subr.bf16.mxu0 %v7959_v36 }
 0x4c0   :  { %4465 = vmatpush1.bf16.msra.mxu0 %v7960_v30 }
 0x4c1   :  { %4467 = vmatprep.subr.bf16.mxu0 %v7961_v56 }
 0x4c4   :  { %4469 = vmatpush1.bf16.msra.mxu0 %v7962_v27  ;;  %v7970_v27 = vmov 0  }
 0x4c5   :  { %4471 = vmatprep.subr.bf16.mxu0 %v7963_v57  ;;  %v2241_v57 = vsel %vm2238_vm5, 1, %v7970_v27 }
 0x4c6   :  { %2243 = vperm.xlu0 %5424, %v2241_v57  }
 0x4c8   :  { %4473 = vmatpush1.bf16.msra.mxu0 %v7964_v55  ;;  %v7971_v55 = vld [vmem:[#allocation127_spill] sm:$0xff] }
 0x4c9   :  { %4475 = vmatprep.subr.bf16.mxu0 %v7965_v10  ;;  %v7972_v10 = vld [vmem:[#allocation128_spill] sm:$0xff] }
 0x4cc   :  { %4477 = vmatpush1.bf16.msra.mxu0 %v7966_v33 }
 0x4cd   :  { %4479 = vmatprep.subr.bf16.mxu0 %v7967_v26 }
 0x4d0   :  { %4481 = vmatpush1.bf16.msra.mxu0 %v7968_v0  ;;  %v7973_v0 = vld [vmem:[#allocation129_spill] sm:$0xff] }
 0x4d1   :  { %4611 = vmatprep.subr.bf16.mxu0 %v7935_v32  ;;  %v7974_v32 = vld [vmem:[#allocation130_spill] sm:$0xff] }
 0x526   :  { %v1764_v18 = vpop.f32.mrb[6].mxu0  ;;  %v1835_v15 = vpop.f32.mrb[14].mxu1 }
 0x527   :  { %v1766_v23 = vpop.f32.mrb[7].mxu0  ;;  %v1837_v2 = vpop.f32.mrb[15].mxu1  ;;  %v5323_v11 = vadd.f32 %v7971_v55, %v1764_v18  ;;  %v5363_v26 = vadd.f32 %v7973_v0, %v1835_v15 }
 0x528   :  { %v5325_v56 = vadd.f32 %v7972_v10, %v1766_v23  ;;  %v5365_v4 = vadd.f32 %v7974_v32, %v1837_v2  ;;  %v7976_v2 = vld [vmem:[#allocation132_spill] sm:$0xff] }
 0x529   :  { %v3517_v33 = vmul.f32 -1.442695, %v5323_v11  ;;  %v3519_v37 = vmul.f32 -1.442695, %v5363_v26 }
 0x52a   :  { %v3518_v30 = vmul.f32 -1.442695, %v5325_v56  ;;  %v3520_v36 = vmul.f32 -1.442695, %v5365_v4 }
 0x52b   :  { %5486 = vpow2.f32 %v3517_v33 }
 0x52c   :  { %5488 = vpow2.f32 %v3518_v30  ;;  %v7975_v30 = vld [vmem:[#allocation131_spill] sm:$0xff] }
 0x52d   :  { %5490 = vpow2.f32 %v3519_v37 }
 0x52e   :  { %5492 = vpow2.f32 %v3520_v36 }
 0x535   :  { %v5487_v51 = vpop.eup %5486 }
 0x536   :  { %v5489_v29 = vpop.eup %5488  ;;  %v1919_v27 = vadd.f32 1.0, %v5487_v51  ;;  %v7977_v51 = vld [vmem:[#allocation117_spill] sm:$0xff] }
 0x537   :  { %v1920_v57 = vadd.f32 1.0, %v5489_v29  ;;  %v5491_v55 = vpop.eup %5490 }
 0x538   :  { %5494 = vrcp.f32 %v1919_v27  ;;  %v5493_v10 = vpop.eup %5492  ;;  %v1933_v11 = vadd.f32 1.0, %v5491_v55  ;;  %v7978_v27 = vld [vmem:[#allocation118_spill] sm:$0xff] }
 0x539   :  { %5496 = vrcp.f32 %v1920_v57  ;;  %v1934_v56 = vadd.f32 1.0, %v5493_v10 }
 0x53a   :  { %5498 = vrcp.f32 %v1933_v11 }
 0x53b   :  { %5500 = vrcp.f32 %v1934_v56 }
 0x542   :  { %v5495_v18 = vpop.eup %5494 }
 0x543   :  { %v5497_v4 = vpop.eup %5496 }
 0x544   :  { %v5499_v57 = vpop.eup %5498 }
 0x545   :  { %v5501_v55 = vpop.eup %5500  ;;  %v1945_v10 = vsub.f32 1.0, %v5499_v57 }
 0x546   :  { %v1950_v11 = vmul.f32 %v5501_v55, %v6796_v42  ;;  %v8000_v42 = vld [vmem:[#allocation104_spill] sm:$0xff] }
 0x566   :  { %v1906_v33 = vpop.f32.mrb[26].mxu0 }
 0x567   :  { %v1907_v23 = vadd.f32 %v1906_v33, %v7975_v30  ;;  %v1908_v15 = vpop.f32.mrb[27].mxu0  ;;  %v1946_v33 = vsub.f32 1.0, %v5501_v55  ;;  %v7995_v55 = vld [vmem:[#allocation80_spill] sm:$0xff] }
 0x568   :  { %v1909_v26 = vadd.f32 %v1908_v15, %v7976_v2  ;;  %v1949_v15 = vmul.f32 %v5499_v57, %v6794_v28  ;;  %v7994_v57 = vld [vmem:[#allocation78_spill] sm:$0xff]  ;;  %v8001_v28 = vld [vmem:[#allocation24_spill] sm:$0xff] }
 0x569   :  { %v1939_v32 = vmul.f32 %v5495_v18, %v1907_v23  ;;  %v7985_v18 = vld [vmem:[#allocation97_spill] sm:$0xff] }
 0x56a   :  { %v1940_v36 = vmul.f32 %v5497_v4, %v1909_v26  ;;  %v7987_v26 = vld [vmem:[#allocation72_spill] sm:$0xff]  ;;  %v7988_v4 = vld [vmem:[#allocation98_spill] sm:$0xff] }
 0x56b   :  { %v1941_v29 = vadd.f32 %v1939_v32, %v7977_v51  ;;  %v7981_v32 = vld [vmem:[#allocation95_spill] sm:$0xff]  ;;  %v7990_v51 = vld [vmem:[#allocation74_spill] sm:$0xff] }
 0x56c   :  { %v1942_v37 = vadd.f32 %v1940_v36, %v7978_v27  ;;  %v7989_v36 = vld [vmem:[#allocation99_spill] sm:$0xff]  ;;  %v7992_v27 = vld [vmem:[#allocation100_spill] sm:$0xff] }
 0x56d   :  { %5502 = vtanh.f32 %v1941_v29  ;;  %v7991_v29 = vld [vmem:[#allocation76_spill] sm:$0xff] }
 0x56e   :  { %5504 = vtanh.f32 %v1942_v37  ;;  %v7993_v37 = vld [vmem:[#allocation101_spill] sm:$0xff] }
 0x577   :  { %v5503_v0 = vpop.eup %5502 }
 0x578   :  { %v5505_v30 = vpop.eup %5504  ;;  %v1947_v39 = vmul.f32 %v5503_v0, %v1945_v10  ;;  %v7982_v0 = vld [vmem:[#allocation66_spill] sm:$0xff] }
 0x579   :  { %v1948_v2 = vmul.f32 %v5505_v30, %v1946_v33  ;;  %v7984_v30 = vld [vmem:[#allocation96_spill] sm:$0xff]  ;;  %v7996_v10 = vld [vmem:[#allocation102_spill] sm:$0xff]  ;;  %v7997_v33 = vld [vmem:[#allocation103_spill] sm:$0xff] }
 0x57a   :  { %v6912_v56 = vadd.f32 %v1949_v15, %v1947_v39  ;;  %v7983_v39 = vld [vmem:[#allocation68_spill] sm:$0xff]  ;;  %v7998_v15 = vld [vmem:[#allocation82_spill] sm:$0xff] }
 0x57b   :  { %v6914_v23 = vadd.f32 %v1950_v11, %v1948_v2  ;;  %v7986_v2 = vld [vmem:[#allocation70_spill] sm:$0xff]  ;;  %v7999_v11 = vld [vmem:[#allocation84_spill] sm:$0xff] }
 0x57c   :  { %7979 = vst [vmem:[#allocation113_spill] sm:$0xff] %v6912_v56 }
 0x57d   :  { %7980 = vst [vmem:[#allocation114_spill] sm:$0xff] %v6914_v23  ;;  %2044 = vmatprep.mubr.f32.mxu0 %v6914_v23  ;;  %2115 = vmatprep.mubr.f32.mxu1 %v6914_v23 }
 0x57e   :  { %2045 = vmatmul.mubr.f32.vlgmr.msra.gmra.mrb[28].mxu0 %v6912_v56  ;;  %2116 = vmatmul.mubr.f32.vlgmr.msra.gmra.mrb[16].mxu1 %v6912_v56 }
 0x57f   :  { %4549 = vmatpush1.bf16.msra.mxu1 %v6222_v19  ;;  %2186 = vmatprep.mubr.f32.mxu1 %v6914_v23 }
 0x580   :  { %4551 = vmatprep.subr.bf16.mxu1 %v7781_v59  ;;  %4613 = vmatpush1.bf16.msra.mxu0 %v7938_v38  ;;  %v8032_v38 = vld [vmem:[#allocation83_spill] sm:$0xff] }
 0x581   :  { %4615 = vmatprep.subr.bf16.mxu0 %v7939_v17  ;;  %v8031_v17 = vld [vmem:[#allocation81_spill] sm:$0xff] }
 0x583   :  { %4553 = vmatpush1.bf16.msra.mxu1 %v6231_v48 }
 0x584   :  { %4555 = vmatprep.subr.bf16.mxu1 %v6235_v43  ;;  %4617 = vmatpush1.bf16.msra.mxu0 %v7940_v46  ;;  %v8030_v46 = vld [vmem:[#allocation79_spill] sm:$0xff] }
 0x585   :  { %4619 = vmatprep.subr.bf16.mxu0 %v7941_v53  ;;  %v8029_v53 = vld [vmem:[#allocation77_spill] sm:$0xff] }
 0x587   :  { %4557 = vmatpush1.bf16.msra.mxu1 %v6240_v16 }
 0x588   :  { %4559 = vmatprep.subr.bf16.mxu1 %v6243_v40  ;;  %4621 = vmatpush1.bf16.msra.mxu0 %v7942_v61  ;;  %v8028_v61 = vld [vmem:[#allocation75_spill] sm:$0xff] }
 0x589   :  { %4623 = vmatprep.subr.bf16.mxu0 %v7943_v52  ;;  %v8027_v52 = vld [vmem:[#allocation73_spill] sm:$0xff] }
 0x58b   :  { %4561 = vmatpush1.bf16.msra.mxu1 %v6248_v60 }
 0x58c   :  { %4563 = vmatprep.subr.bf16.mxu1 %v7782_v63  ;;  %4625 = vmatpush1.bf16.msra.mxu0 %v7944_v1  ;;  %v8026_v1 = vld [vmem:[#allocation71_spill] sm:$0xff] }
 0x58d   :  { %4627 = vmatprep.subr.bf16.mxu0 %v7945_v50  ;;  %v8025_v50 = vld [vmem:[#allocation69_spill] sm:$0xff] }
 0x58f   :  { %4565 = vmatpush1.bf16.msra.mxu1 %v7783_v47 }
 0x590   :  { %4567 = vmatprep.subr.bf16.mxu1 %v7784_v3  ;;  %4629 = vmatpush1.bf16.msra.mxu0 %v7946_v12  ;;  %v8024_v12 = vld [vmem:[#allocation67_spill] sm:$0xff] }
 0x591   :  { %4631 = vmatprep.subr.bf16.mxu0 %v7947_v25  ;;  %v8023_v25 = vld [vmem:[#allocation65_spill] sm:$0xff] }
 0x593   :  { %4569 = vmatpush1.bf16.msra.mxu1 %v6264_v22 }
 0x594   :  { %4571 = vmatprep.subr.bf16.mxu1 %v6272_v62  ;;  %4633 = vmatpush1.bf16.msra.mxu0 %v7948_v34  ;;  %v8022_v34 = vld [vmem:[#allocation63_spill] sm:$0xff] }
 0x595   :  { %4635 = vmatprep.subr.bf16.mxu0 %v7949_v45  ;;  %v8021_v45 = vld [vmem:[#allocation61_spill] sm:$0xff] }
 0x597   :  { %4573 = vmatpush1.bf16.msra.mxu1 %v6281_v20 }
 0x598   :  { %4575 = vmatprep.subr.bf16.mxu1 %v6284_v31  ;;  %4637 = vmatpush1.bf16.msra.mxu0 %v7950_v44  ;;  %v8020_v44 = vld [vmem:[#allocation59_spill] sm:$0xff] }
 0x599   :  { %4639 = vmatprep.subr.bf16.mxu0 %v7951_v7  ;;  %v8019_v7 = vld [vmem:[#allocation57_spill] sm:$0xff] }
 0x59b   :  { %4577 = vmatpush1.bf16.msra.mxu1 %v6289_v14 }
 0x59c   :  { %4579 = vmatprep.subr.bf16.mxu1 %v6292_v49  ;;  %4641 = vmatpush1.bf16.msra.mxu0 %v7952_v24  ;;  %v8018_v24 = vld [vmem:[#allocation55_spill] sm:$0xff] }
 0x59d   :  { %4643 = vmatprep.subr.bf16.mxu0 %v7953_v13  ;;  %v8017_v13 = vld [vmem:[#allocation53_spill] sm:$0xff] }
 0x59f   :  { %4581 = vmatpush1.bf16.msra.mxu1 %v6297_v5 }
 0x5a0   :  { %4583 = vmatprep.subr.bf16.mxu1 %v6300_v9  ;;  %4645 = vmatpush1.bf16.msra.mxu0 %v7954_v6  ;;  %v8016_v6 = vld [vmem:[#allocation51_spill] sm:$0xff] }
 0x5a1   :  { %4647 = vmatprep.subr.bf16.mxu0 %v7955_v58  ;;  %v8015_v58 = vld [vmem:[#allocation49_spill] sm:$0xff] }
 0x5a3   :  { %4585 = vmatpush1.bf16.msra.mxu1 %v6305_v21 }
 0x5a4   :  { %4587 = vmatprep.subr.bf16.mxu1 %v6308_v35  ;;  %4649 = vmatpush1.bf16.msra.mxu0 %v7956_v54  ;;  %v8014_v54 = vld [vmem:[#allocation47_spill] sm:$0xff] }
 0x5a5   :  { %4651 = vmatprep.subr.bf16.mxu0 %v7957_v41  ;;  %v8013_v41 = vld [vmem:[#allocation45_spill] sm:$0xff] }
 0x5a7   :  { %4589 = vmatpush1.bf16.msra.mxu1 %v7849_v8 }
 0x5a8   :  { %4591 = vmatprep.subr.bf16.mxu1 %v7981_v32  ;;  %4653 = vmatpush1.bf16.msra.mxu0 %v7982_v0  ;;  %v8011_v0 = vld [vmem:[#allocation41_spill] sm:$0xff] }
 0x5a9   :  { %4655 = vmatprep.subr.bf16.mxu0 %v7983_v39  ;;  %v8010_v39 = vld [vmem:[#allocation39_spill] sm:$0xff] }
 0x5ab   :  { %4593 = vmatpush1.bf16.msra.mxu1 %v7984_v30 }
 0x5ac   :  { %4595 = vmatprep.subr.bf16.mxu1 %v7985_v18  ;;  %4657 = vmatpush1.bf16.msra.mxu0 %v7986_v2  ;;  %v8007_v2 = vld [vmem:[#allocation33_spill] sm:$0xff] }
 0x5ad   :  { %4659 = vmatprep.subr.bf16.mxu0 %v7987_v26  ;;  %v8006_v26 = vld [vmem:[#allocation31_spill] sm:$0xff] }
 0x5af   :  { %4597 = vmatpush1.bf16.msra.mxu1 %v7988_v4  ;;  %v8036_v4 = vld [vmem:[#allocation106_spill] sm:$0xff] }
 0x5b0   :  { %4599 = vmatprep.subr.bf16.mxu1 %v7989_v36  ;;  %4661 = vmatpush1.bf16.msra.mxu0 %v7990_v51  ;;  %v8003_v51 = vld [vmem:[#allocation88_spill] sm:$0xff] }
 0x5b1   :  { %4663 = vmatprep.subr.bf16.mxu0 %v7991_v29  ;;  %v8002_v29 = vld [vmem:[#allocation86_spill] sm:$0xff] }
 0x5b3   :  { %4601 = vmatpush1.bf16.msra.mxu1 %v7992_v27 }
 0x5b4   :  { %4603 = vmatprep.subr.bf16.mxu1 %v7993_v37  ;;  %4665 = vmatpush1.bf16.msra.mxu0 %v7994_v57  ;;  %v8004_v57 = vld [vmem:[#allocation27_spill] sm:$0xff]  ;;  %v8035_v37 = vld [vmem:[#allocation105_spill] sm:$0xff] }
 0x5b5   :  { %4667 = vmatprep.subr.bf16.mxu0 %v7995_v55  ;;  %v8005_v55 = vld [vmem:[#allocation29_spill] sm:$0xff] }
 0x5b7   :  { %4605 = vmatpush1.bf16.msra.mxu1 %v7996_v10 }
 0x5b8   :  { %4607 = vmatprep.subr.bf16.mxu1 %v7997_v33  ;;  %4669 = vmatpush1.bf16.msra.mxu0 %v7998_v15  ;;  %v8008_v15 = vld [vmem:[#allocation35_spill] sm:$0xff] }
 0x5b9   :  { %4671 = vmatprep.subr.bf16.mxu0 %v7999_v11  ;;  %v8009_v11 = vld [vmem:[#allocation37_spill] sm:$0xff] }
 0x5bb   :  { %4609 = vmatpush1.bf16.msra.mxu1 %v8000_v42  ;;  %v8034_v42 = vld [vmem:[#allocation87_spill] sm:$0xff] }
 0x5bc   :  { %4675 = vmatprep.subr.bf16.mxu1 %v8001_v28  ;;  %4673 = vmatpush1.bf16.msra.mxu0 %v8002_v29  ;;  %v8012_v29 = vld [vmem:[#allocation43_spill] sm:$0xff] }
 0x5bd   :  { %4739 = vmatprep.subr.bf16.mxu0 %v8003_v51  ;;  %v8033_v51 = vld [vmem:[#allocation85_spill] sm:$0xff] }
 0x5be   :  { %2187 = vmatmul.mubr.f32.vlgmr.msra.gmra.mrb[28].mxu1 %v6912_v56 }
 0x5bf   :  { %4677 = vmatpush1.bf16.msra.mxu1 %v8004_v57 }
 0x5c0   :  { %4679 = vmatprep.subr.bf16.mxu1 %v8005_v55 }
 0x5c3   :  { %4681 = vmatpush1.bf16.msra.mxu1 %v8006_v26 }
 0x5c4   :  { %4683 = vmatprep.subr.bf16.mxu1 %v8007_v2 }
 0x5c7   :  { %4685 = vmatpush1.bf16.msra.mxu1 %v8008_v15 }
 0x5c8   :  { %4687 = vmatprep.subr.bf16.mxu1 %v8009_v11 }
 0x5cb   :  { %4689 = vmatpush1.bf16.msra.mxu1 %v8010_v39 }
 0x5cc   :  { %4691 = vmatprep.subr.bf16.mxu1 %v8011_v0 }
 0x5cf   :  { %4693 = vmatpush1.bf16.msra.mxu1 %v8012_v29 }
 0x5d0   :  { %4695 = vmatprep.subr.bf16.mxu1 %v8013_v41 }
 0x5d3   :  { %4697 = vmatpush1.bf16.msra.mxu1 %v8014_v54 }
 0x5d4   :  { %4699 = vmatprep.subr.bf16.mxu1 %v8015_v58 }
 0x5d7   :  { %4701 = vmatpush1.bf16.msra.mxu1 %v8016_v6 }
 0x5d8   :  { %4703 = vmatprep.subr.bf16.mxu1 %v8017_v13 }
 0x5db   :  { %4705 = vmatpush1.bf16.msra.mxu1 %v8018_v24 }
 0x5dc   :  { %4707 = vmatprep.subr.bf16.mxu1 %v8019_v7 }
 0x5df   :  { %4709 = vmatpush1.bf16.msra.mxu1 %v8020_v44 }
 0x5e0   :  { %4711 = vmatprep.subr.bf16.mxu1 %v8021_v45 }
 0x5e3   :  { %4713 = vmatpush1.bf16.msra.mxu1 %v8022_v34 }
 0x5e4   :  { %4715 = vmatprep.subr.bf16.mxu1 %v8023_v25 }
 0x5e7   :  { %4717 = vmatpush1.bf16.msra.mxu1 %v8024_v12 }
 0x5e8   :  { %4719 = vmatprep.subr.bf16.mxu1 %v8025_v50 }
 0x5eb   :  { %4721 = vmatpush1.bf16.msra.mxu1 %v8026_v1 }
 0x5ec   :  { %4723 = vmatprep.subr.bf16.mxu1 %v8027_v52  ;;  %v8037_v52 = vld [vmem:[#allocation91_spill] sm:$0xff] }
 0x5ed   :  { %vm2520_vm6 = vcmp.eq.s32.totalorder %v8037_v52, 5 }
 0x5ef   :  { %4725 = vmatpush1.bf16.msra.mxu1 %v8028_v61 }
 0x5f0   :  { %4727 = vmatprep.subr.bf16.mxu1 %v8029_v53 }
 0x5f3   :  { %4729 = vmatpush1.bf16.msra.mxu1 %v8030_v46  ;;  %v8038_v46 = vmov 0  }
 0x5f4   :  { %4731 = vmatprep.subr.bf16.mxu1 %v8031_v17  ;;  %v2523_v17 = vsel %vm2520_vm6, 1, %v8038_v46 }
 0x5f5   :  { %2525 = vperm.xlu1 %5425, %v2523_v17  }
 0x5f7   :  { %4733 = vmatpush1.bf16.msra.mxu1 %v8032_v38 }
 0x5f8   :  { %4735 = vmatprep.subr.bf16.mxu1 %v8033_v51 }
 0x5fb   :  { %4737 = vmatpush1.bf16.msra.mxu1 %v8034_v42  ;;  %v8039_v42 = vld [vmem:[#allocation129_spill] sm:$0xff] }
 0x5fc   :  { %4867 = vmatprep.subr.bf16.mxu1 %v8001_v28  ;;  %v8040_v28 = vld [vmem:[#allocation130_spill] sm:$0xff] }
 0x651   :  { %v2046_v33 = vpop.f32.mrb[28].mxu0  ;;  %v2117_v10 = vpop.f32.mrb[16].mxu1 }
 0x652   :  { %v5328_v27 = vadd.f32 %v8035_v37, %v2046_v33  ;;  %v2048_v36 = vpop.f32.mrb[29].mxu0  ;;  %v2119_v61 = vpop.f32.mrb[17].mxu1  ;;  %v5367_v51 = vadd.f32 %v8039_v42, %v2117_v10 }
 0x653   :  { %v5331_v53 = vadd.f32 %v8036_v4, %v2048_v36  ;;  %v5369_v18 = vadd.f32 %v8040_v28, %v2119_v61  ;;  %v8042_v61 = vld [vmem:[#allocation132_spill] sm:$0xff] }
 0x654   :  { %v3521_v38 = vmul.f32 -1.442695, %v5328_v27  ;;  %v3523_v30 = vmul.f32 -1.442695, %v5367_v51 }
 0x655   :  { %v3522_v1 = vmul.f32 -1.442695, %v5331_v53  ;;  %v3524_v50 = vmul.f32 -1.442695, %v5369_v18 }
 0x656   :  { %5506 = vpow2.f32 %v3521_v38 }
 0x657   :  { %5508 = vpow2.f32 %v3522_v1  ;;  %v8041_v1 = vld [vmem:[#allocation131_spill] sm:$0xff] }
 0x658   :  { %5510 = vpow2.f32 %v3523_v30  ;;  %v8043_v30 = vld [vmem:[#allocation119_spill] sm:$0xff] }
 0x659   :  { %5512 = vpow2.f32 %v3524_v50 }
 0x660   :  { %v5507_v37 = vpop.eup %5506 }
 0x661   :  { %v5509_v33 = vpop.eup %5508  ;;  %v2201_v4 = vadd.f32 1.0, %v5507_v37 }
 0x662   :  { %v2202_v36 = vadd.f32 1.0, %v5509_v33  ;;  %v5511_v46 = vpop.eup %5510  ;;  %v8044_v33 = vld [vmem:[#allocation120_spill] sm:$0xff] }
 0x663   :  { %5514 = vrcp.f32 %v2201_v4  ;;  %v5513_v17 = vpop.eup %5512  ;;  %v2215_v27 = vadd.f32 1.0, %v5511_v46 }
 0x664   :  { %5516 = vrcp.f32 %v2202_v36  ;;  %v2216_v53 = vadd.f32 1.0, %v5513_v17 }
 0x665   :  { %5518 = vrcp.f32 %v2215_v27 }
 0x666   :  { %5520 = vrcp.f32 %v2216_v53  ;;  %v8048_v53 = vld [vmem:[#allocation96_spill] sm:$0xff] }
 0x66d   :  { %v5515_v42 = vpop.eup %5514 }
 0x66e   :  { %v5517_v18 = vpop.eup %5516 }
 0x66f   :  { %v5519_v46 = vpop.eup %5518 }
 0x670   :  { %v5521_v36 = vpop.eup %5520  ;;  %v2227_v17 = vsub.f32 1.0, %v5519_v46 }
 0x691   :  { %v2188_v38 = vpop.f32.mrb[28].mxu1 }
 0x692   :  { %v2189_v52 = vadd.f32 %v2188_v38, %v8041_v1  ;;  %v2190_v10 = vpop.f32.mrb[29].mxu1  ;;  %v2228_v38 = vsub.f32 1.0, %v5521_v36 }
 0x693   :  { %v2191_v51 = vadd.f32 %v2190_v10, %v8042_v61  ;;  %v2231_v10 = vmul.f32 %v5519_v46, %v6912_v56  ;;  %v8058_v46 = vld [vmem:[#allocation79_spill] sm:$0xff]  ;;  %v8065_v56 = vld [vmem:[#allocation25_spill] sm:$0xff] }
 0x694   :  { %v2221_v28 = vmul.f32 %v5515_v42, %v2189_v52  ;;  %v2232_v42 = vmul.f32 %v5521_v36, %v6914_v23  ;;  %v8059_v36 = vld [vmem:[#allocation81_spill] sm:$0xff]  ;;  %v8064_v23 = vld [vmem:[#allocation104_spill] sm:$0xff] }
 0x695   :  { %v2222_v50 = vmul.f32 %v5517_v18, %v2191_v51  ;;  %v8051_v51 = vld [vmem:[#allocation73_spill] sm:$0xff]  ;;  %v8052_v18 = vld [vmem:[#allocation98_spill] sm:$0xff] }
 0x696   :  { %v2223_v37 = vadd.f32 %v2221_v28, %v8043_v30  ;;  %v8045_v28 = vld [vmem:[#allocation95_spill] sm:$0xff] }
 0x697   :  { %v2224_v4 = vadd.f32 %v2222_v50, %v8044_v33  ;;  %v8053_v50 = vld [vmem:[#allocation99_spill] sm:$0xff]  ;;  %v8056_v33 = vld [vmem:[#allocation100_spill] sm:$0xff] }
 0x698   :  { %5522 = vtanh.f32 %v2223_v37  ;;  %v8054_v30 = vld [vmem:[#allocation75_spill] sm:$0xff]  ;;  %v8055_v37 = vld [vmem:[#allocation77_spill] sm:$0xff] }
 0x699   :  { %5524 = vtanh.f32 %v2224_v4  ;;  %v8057_v4 = vld [vmem:[#allocation101_spill] sm:$0xff] }
 0x6a2   :  { %v5523_v12 = vpop.eup %5522 }
 0x6a3   :  { %v5525_v1 = vpop.eup %5524  ;;  %v2229_v32 = vmul.f32 %v5523_v12, %v2227_v17  ;;  %v8046_v12 = vld [vmem:[#allocation67_spill] sm:$0xff]  ;;  %v8060_v17 = vld [vmem:[#allocation102_spill] sm:$0xff] }
 0x6a4   :  { %v2230_v61 = vmul.f32 %v5525_v1, %v2228_v38  ;;  %v8049_v1 = vld [vmem:[#allocation97_spill] sm:$0xff]  ;;  %v8061_v38 = vld [vmem:[#allocation103_spill] sm:$0xff] }
 0x6a5   :  { %v7030_v52 = vadd.f32 %v2231_v10, %v2229_v32  ;;  %v8047_v32 = vld [vmem:[#allocation69_spill] sm:$0xff]  ;;  %v8062_v10 = vld [vmem:[#allocation83_spill] sm:$0xff] }
 0x6a6   :  { %v7032_v27 = vadd.f32 %v2232_v42, %v2230_v61  ;;  %v8050_v61 = vld [vmem:[#allocation71_spill] sm:$0xff]  ;;  %v8063_v42 = vld [vmem:[#allocation85_spill] sm:$0xff] }
 0x6a8   :  { %2326 = vmatprep.mubr.f32.mxu0 %v7032_v27  ;;  %2397 = vmatprep.mubr.f32.mxu1 %v7032_v27 }
 0x6a9   :  { %2327 = vmatmul.mubr.f32.vlgmr.msra.gmra.mrb[30].mxu0 %v7030_v52  ;;  %2398 = vmatmul.mubr.f32.vlgmr.msra.gmra.mrb[18].mxu1 %v7030_v52 }
 0x6aa   :  { %4741 = vmatpush1.bf16.msra.mxu0 %v6222_v19  ;;  %2468 = vmatprep.mubr.f32.mxu0 %v7032_v27 }
 0x6ab   :  { %4743 = vmatprep.subr.bf16.mxu0 %v7781_v59  ;;  %4869 = vmatpush1.bf16.msra.mxu1 %v8004_v57  ;;  %v8096_v57 = vld [vmem:[#allocation82_spill] sm:$0xff] }
 0x6ac   :  { %4871 = vmatprep.subr.bf16.mxu1 %v8005_v55  ;;  %v8095_v55 = vld [vmem:[#allocation80_spill] sm:$0xff] }
 0x6ae   :  { %4745 = vmatpush1.bf16.msra.mxu0 %v6231_v48 }
 0x6af   :  { %4747 = vmatprep.subr.bf16.mxu0 %v6235_v43  ;;  %4873 = vmatpush1.bf16.msra.mxu1 %v8006_v26  ;;  %v8094_v26 = vld [vmem:[#allocation78_spill] sm:$0xff] }
 0x6b0   :  { %4875 = vmatprep.subr.bf16.mxu1 %v8007_v2  ;;  %v8093_v2 = vld [vmem:[#allocation76_spill] sm:$0xff] }
 0x6b2   :  { %4749 = vmatpush1.bf16.msra.mxu0 %v6240_v16 }
 0x6b3   :  { %4751 = vmatprep.subr.bf16.mxu0 %v6243_v40  ;;  %4877 = vmatpush1.bf16.msra.mxu1 %v8008_v15  ;;  %v8092_v15 = vld [vmem:[#allocation74_spill] sm:$0xff] }
 0x6b4   :  { %4879 = vmatprep.subr.bf16.mxu1 %v8009_v11  ;;  %v8091_v11 = vld [vmem:[#allocation72_spill] sm:$0xff] }
 0x6b6   :  { %4753 = vmatpush1.bf16.msra.mxu0 %v6248_v60 }
 0x6b7   :  { %4755 = vmatprep.subr.bf16.mxu0 %v7782_v63  ;;  %4881 = vmatpush1.bf16.msra.mxu1 %v8010_v39  ;;  %v8090_v39 = vld [vmem:[#allocation70_spill] sm:$0xff] }
 0x6b8   :  { %4883 = vmatprep.subr.bf16.mxu1 %v8011_v0  ;;  %v8089_v0 = vld [vmem:[#allocation68_spill] sm:$0xff] }
 0x6ba   :  { %4757 = vmatpush1.bf16.msra.mxu0 %v7783_v47 }
 0x6bb   :  { %4759 = vmatprep.subr.bf16.mxu0 %v7784_v3  ;;  %4885 = vmatpush1.bf16.msra.mxu1 %v8012_v29  ;;  %v8088_v29 = vld [vmem:[#allocation66_spill] sm:$0xff] }
 0x6bc   :  { %4887 = vmatprep.subr.bf16.mxu1 %v8013_v41  ;;  %v8087_v41 = vld [vmem:[#allocation64_spill] sm:$0xff] }
 0x6be   :  { %4761 = vmatpush1.bf16.msra.mxu0 %v6264_v22 }
 0x6bf   :  { %4763 = vmatprep.subr.bf16.mxu0 %v6272_v62  ;;  %4889 = vmatpush1.bf16.msra.mxu1 %v8014_v54  ;;  %v8086_v54 = vld [vmem:[#allocation62_spill] sm:$0xff] }
 0x6c0   :  { %4891 = vmatprep.subr.bf16.mxu1 %v8015_v58  ;;  %v8085_v58 = vld [vmem:[#allocation60_spill] sm:$0xff] }
 0x6c2   :  { %4765 = vmatpush1.bf16.msra.mxu0 %v6281_v20 }
 0x6c3   :  { %4767 = vmatprep.subr.bf16.mxu0 %v6284_v31  ;;  %4893 = vmatpush1.bf16.msra.mxu1 %v8016_v6  ;;  %v8084_v6 = vld [vmem:[#allocation58_spill] sm:$0xff] }
 0x6c4   :  { %4895 = vmatprep.subr.bf16.mxu1 %v8017_v13  ;;  %v8083_v13 = vld [vmem:[#allocation56_spill] sm:$0xff] }
 0x6c6   :  { %4769 = vmatpush1.bf16.msra.mxu0 %v6289_v14 }
 0x6c7   :  { %4771 = vmatprep.subr.bf16.mxu0 %v6292_v49  ;;  %4897 = vmatpush1.bf16.msra.mxu1 %v8018_v24  ;;  %v8082_v24 = vld [vmem:[#allocation54_spill] sm:$0xff] }
 0x6c8   :  { %4899 = vmatprep.subr.bf16.mxu1 %v8019_v7  ;;  %v8081_v7 = vld [vmem:[#allocation52_spill] sm:$0xff] }
 0x6ca   :  { %4773 = vmatpush1.bf16.msra.mxu0 %v6297_v5 }
 0x6cb   :  { %4775 = vmatprep.subr.bf16.mxu0 %v6300_v9  ;;  %4901 = vmatpush1.bf16.msra.mxu1 %v8020_v44  ;;  %v8080_v44 = vld [vmem:[#allocation50_spill] sm:$0xff] }
 0x6cc   :  { %4903 = vmatprep.subr.bf16.mxu1 %v8021_v45  ;;  %v8079_v45 = vld [vmem:[#allocation48_spill] sm:$0xff] }
 0x6ce   :  { %4777 = vmatpush1.bf16.msra.mxu0 %v6305_v21 }
 0x6cf   :  { %4779 = vmatprep.subr.bf16.mxu0 %v6308_v35  ;;  %4905 = vmatpush1.bf16.msra.mxu1 %v8022_v34  ;;  %v8078_v34 = vld [vmem:[#allocation46_spill] sm:$0xff] }
 0x6d0   :  { %4907 = vmatprep.subr.bf16.mxu1 %v8023_v25  ;;  %v8077_v25 = vld [vmem:[#allocation44_spill] sm:$0xff] }
 0x6d2   :  { %4781 = vmatpush1.bf16.msra.mxu0 %v7849_v8 }
 0x6d3   :  { %4783 = vmatprep.subr.bf16.mxu0 %v8045_v28  ;;  %4909 = vmatpush1.bf16.msra.mxu1 %v8046_v12  ;;  %v8075_v12 = vld [vmem:[#allocation40_spill] sm:$0xff] }
 0x6d4   :  { %4911 = vmatprep.subr.bf16.mxu1 %v8047_v32  ;;  %v8074_v32 = vld [vmem:[#allocation38_spill] sm:$0xff] }
 0x6d6   :  { %4785 = vmatpush1.bf16.msra.mxu0 %v8048_v53 }
 0x6d7   :  { %4787 = vmatprep.subr.bf16.mxu0 %v8049_v1  ;;  %4913 = vmatpush1.bf16.msra.mxu1 %v8050_v61  ;;  %v8071_v61 = vld [vmem:[#allocation32_spill] sm:$0xff] }
 0x6d8   :  { %4915 = vmatprep.subr.bf16.mxu1 %v8051_v51  ;;  %v8070_v51 = vld [vmem:[#allocation30_spill] sm:$0xff] }
 0x6da   :  { %4789 = vmatpush1.bf16.msra.mxu0 %v8052_v18  ;;  %v8100_v18 = vld [vmem:[#allocation108_spill] sm:$0xff] }
 0x6db   :  { %4791 = vmatprep.subr.bf16.mxu0 %v8053_v50  ;;  %4917 = vmatpush1.bf16.msra.mxu1 %v8054_v30  ;;  %v8067_v30 = vld [vmem:[#allocation88_spill] sm:$0xff] }
 0x6dc   :  { %4919 = vmatprep.subr.bf16.mxu1 %v8055_v37  ;;  %v8066_v37 = vld [vmem:[#allocation87_spill] sm:$0xff] }
 0x6de   :  { %4793 = vmatpush1.bf16.msra.mxu0 %v8056_v33 }
 0x6df   :  { %4795 = vmatprep.subr.bf16.mxu0 %v8057_v4  ;;  %4921 = vmatpush1.bf16.msra.mxu1 %v8058_v46  ;;  %v8068_v46 = vld [vmem:[#allocation26_spill] sm:$0xff]  ;;  %v8099_v4 = vld [vmem:[#allocation107_spill] sm:$0xff] }
 0x6e0   :  { %4923 = vmatprep.subr.bf16.mxu1 %v8059_v36  ;;  %v8069_v36 = vld [vmem:[#allocation28_spill] sm:$0xff] }
 0x6e2   :  { %4797 = vmatpush1.bf16.msra.mxu0 %v8060_v17 }
 0x6e3   :  { %4799 = vmatprep.subr.bf16.mxu0 %v8061_v38  ;;  %4925 = vmatpush1.bf16.msra.mxu1 %v8062_v10  ;;  %v8072_v10 = vld [vmem:[#allocation34_spill] sm:$0xff] }
 0x6e4   :  { %4927 = vmatprep.subr.bf16.mxu1 %v8063_v42  ;;  %v8073_v42 = vld [vmem:[#allocation36_spill] sm:$0xff] }
 0x6e6   :  { %4801 = vmatpush1.bf16.msra.mxu0 %v8064_v23  ;;  %v8098_v23 = vld [vmem:[#allocation86_spill] sm:$0xff] }
 0x6e7   :  { %4803 = vmatprep.subr.bf16.mxu0 %v8065_v56  ;;  %4929 = vmatpush1.bf16.msra.mxu1 %v8066_v37  ;;  %v8076_v37 = vld [vmem:[#allocation42_spill] sm:$0xff] }
 0x6e8   :  { %4931 = vmatprep.subr.bf16.mxu1 %v8067_v30  ;;  %v8097_v30 = vld [vmem:[#allocation84_spill] sm:$0xff] }
 0x6e9   :  { %2469 = vmatmul.mubr.f32.vlgmr.msra.gmra.mrb[32].mxu0 %v7030_v52 }
 0x6ea   :  { %4805 = vmatpush1.bf16.msra.mxu0 %v8068_v46 }
 0x6eb   :  { %4807 = vmatprep.subr.bf16.mxu0 %v8069_v36 }
 0x6ee   :  { %4809 = vmatpush1.bf16.msra.mxu0 %v8070_v51 }
 0x6ef   :  { %4811 = vmatprep.subr.bf16.mxu0 %v8071_v61 }
 0x6f2   :  { %4813 = vmatpush1.bf16.msra.mxu0 %v8072_v10 }
 0x6f3   :  { %4815 = vmatprep.subr.bf16.mxu0 %v8073_v42 }
 0x6f6   :  { %4817 = vmatpush1.bf16.msra.mxu0 %v8074_v32 }
 0x6f7   :  { %4819 = vmatprep.subr.bf16.mxu0 %v8075_v12 }
 0x6fa   :  { %4821 = vmatpush1.bf16.msra.mxu0 %v8076_v37 }
 0x6fb   :  { %4823 = vmatprep.subr.bf16.mxu0 %v8077_v25 }
 0x6fe   :  { %4825 = vmatpush1.bf16.msra.mxu0 %v8078_v34 }
 0x6ff   :  { %4827 = vmatprep.subr.bf16.mxu0 %v8079_v45 }
 0x702   :  { %4829 = vmatpush1.bf16.msra.mxu0 %v8080_v44 }
 0x703   :  { %4831 = vmatprep.subr.bf16.mxu0 %v8081_v7 }
 0x706   :  { %4833 = vmatpush1.bf16.msra.mxu0 %v8082_v24 }
 0x707   :  { %4835 = vmatprep.subr.bf16.mxu0 %v8083_v13 }
 0x70a   :  { %4837 = vmatpush1.bf16.msra.mxu0 %v8084_v6 }
 0x70b   :  { %4839 = vmatprep.subr.bf16.mxu0 %v8085_v58 }
 0x70e   :  { %4841 = vmatpush1.bf16.msra.mxu0 %v8086_v54 }
 0x70f   :  { %4843 = vmatprep.subr.bf16.mxu0 %v8087_v41 }
 0x712   :  { %4845 = vmatpush1.bf16.msra.mxu0 %v8088_v29 }
 0x713   :  { %4847 = vmatprep.subr.bf16.mxu0 %v8089_v0 }
 0x716   :  { %4849 = vmatpush1.bf16.msra.mxu0 %v8090_v39 }
 0x717   :  { %4851 = vmatprep.subr.bf16.mxu0 %v8091_v11  ;;  %v8101_v11 = vld [vmem:[#allocation91_spill] sm:$0xff] }
 0x718   :  { %vm2802_vm7 = vcmp.eq.s32.totalorder %v8101_v11, 6 }
 0x71a   :  { %4853 = vmatpush1.bf16.msra.mxu0 %v8092_v15 }
 0x71b   :  { %4855 = vmatprep.subr.bf16.mxu0 %v8093_v2 }
 0x71e   :  { %4857 = vmatpush1.bf16.msra.mxu0 %v8094_v26  ;;  %v8102_v26 = vmov 0  }
 0x71f   :  { %4859 = vmatprep.subr.bf16.mxu0 %v8095_v55  ;;  %v2805_v55 = vsel %vm2802_vm7, 1, %v8102_v26 }
 0x720   :  { %2807 = vperm.xlu0 %5424, %v2805_v55  }
 0x722   :  { %4861 = vmatpush1.bf16.msra.mxu0 %v8096_v57 }
 0x723   :  { %4863 = vmatprep.subr.bf16.mxu0 %v8097_v30 }
 0x726   :  { %4865 = vmatpush1.bf16.msra.mxu0 %v8098_v23  ;;  %v8103_v23 = vld [vmem:[#allocation129_spill] sm:$0xff] }
 0x727   :  { %4995 = vmatprep.subr.bf16.mxu0 %v8065_v56  ;;  %v8104_v56 = vld [vmem:[#allocation130_spill] sm:$0xff] }
 0x77c   :  { %v2328_v38 = vpop.f32.mrb[30].mxu0  ;;  %v2399_v17 = vpop.f32.mrb[18].mxu1 }
 0x77d   :  { %v5334_v33 = vadd.f32 %v8099_v4, %v2328_v38  ;;  %v2330_v50 = vpop.f32.mrb[31].mxu0  ;;  %v2401_v15 = vpop.f32.mrb[19].mxu1  ;;  %v5371_v30 = vadd.f32 %v8103_v23, %v2399_v17 }
 0x77e   :  { %v5337_v2 = vadd.f32 %v8100_v18, %v2330_v50  ;;  %v5373_v1 = vadd.f32 %v8104_v56, %v2401_v15  ;;  %v8106_v15 = vld [vmem:[#allocation132_spill] sm:$0xff] }
 0x77f   :  { %v3525_v57 = vmul.f32 -1.442695, %v5334_v33  ;;  %v3527_v53 = vmul.f32 -1.442695, %v5371_v30 }
 0x780   :  { %v3526_v39 = vmul.f32 -1.442695, %v5337_v2  ;;  %v3528_v0 = vmul.f32 -1.442695, %v5373_v1 }
 0x781   :  { %5526 = vpow2.f32 %v3525_v57 }
 0x782   :  { %5528 = vpow2.f32 %v3526_v39  ;;  %v8105_v39 = vld [vmem:[#allocation131_spill] sm:$0xff] }
 0x783   :  { %5530 = vpow2.f32 %v3527_v53  ;;  %v8107_v53 = vld [vmem:[#allocation121_spill] sm:$0xff] }
 0x784   :  { %5532 = vpow2.f32 %v3528_v0 }
 0x78b   :  { %v5527_v4 = vpop.eup %5526 }
 0x78c   :  { %v5529_v38 = vpop.eup %5528  ;;  %v2483_v18 = vadd.f32 1.0, %v5527_v4 }
 0x78d   :  { %v2484_v50 = vadd.f32 1.0, %v5529_v38  ;;  %v5531_v11 = vpop.eup %5530  ;;  %v8108_v38 = vld [vmem:[#allocation122_spill] sm:$0xff] }
 0x78e   :  { %5534 = vrcp.f32 %v2483_v18  ;;  %v5533_v55 = vpop.eup %5532  ;;  %v2497_v33 = vadd.f32 1.0, %v5531_v11 }
 0x78f   :  { %5536 = vrcp.f32 %v2484_v50  ;;  %v2498_v2 = vadd.f32 1.0, %v5533_v55 }
 0x790   :  { %5538 = vrcp.f32 %v2497_v33 }
 0x791   :  { %5540 = vrcp.f32 %v2498_v2  ;;  %v8132_v2 = vld [vmem:[#allocation27_spill] sm:$0xff] }
 0x798   :  { %v5535_v23 = vpop.eup %5534 }
 0x799   :  { %v5537_v1 = vpop.eup %5536 }
 0x79a   :  { %v5539_v50 = vpop.eup %5538 }
 0x79b   :  { %v5541_v11 = vpop.eup %5540  ;;  %v2509_v55 = vsub.f32 1.0, %v5539_v50 }
 0x7bc   :  { %v2470_v57 = vpop.f32.mrb[32].mxu0 }
 0x7bd   :  { %v2471_v26 = vadd.f32 %v2470_v57, %v8105_v39  ;;  %v2472_v17 = vpop.f32.mrb[33].mxu0  ;;  %v2510_v57 = vsub.f32 1.0, %v5541_v11 }
 0x7be   :  { %v2473_v30 = vadd.f32 %v2472_v17, %v8106_v15  ;;  %v2513_v17 = vmul.f32 %v5539_v50, %v7030_v52  ;;  %v8142_v50 = vld [vmem:[#allocation47_spill] sm:$0xff] }
 0x7bf   :  { %v2503_v56 = vmul.f32 %v5535_v23, %v2471_v26  ;;  %v2514_v23 = vmul.f32 %v5541_v11, %v7032_v27  ;;  %v8143_v11 = vld [vmem:[#allocation49_spill] sm:$0xff] }
 0x7c0   :  { %v2504_v0 = vmul.f32 %v5537_v1, %v2473_v30  ;;  %v8135_v30 = vld [vmem:[#allocation33_spill] sm:$0xff]  ;;  %v8136_v1 = vld [vmem:[#allocation35_spill] sm:$0xff] }
 0x7c1   :  { %v2505_v4 = vadd.f32 %v2503_v56, %v8107_v53  ;;  %v8131_v56 = vld [vmem:[#allocation88_spill] sm:$0xff]  ;;  %v8138_v53 = vld [vmem:[#allocation39_spill] sm:$0xff] }
 0x7c2   :  { %v2506_v18 = vadd.f32 %v2504_v0, %v8108_v38  ;;  %v8137_v0 = vld [vmem:[#allocation37_spill] sm:$0xff]  ;;  %v8140_v38 = vld [vmem:[#allocation43_spill] sm:$0xff] }
 0x7c3   :  { %5542 = vtanh.f32 %v2505_v4  ;;  %v8139_v4 = vld [vmem:[#allocation41_spill] sm:$0xff] }
 0x7c4   :  { %5544 = vtanh.f32 %v2506_v18  ;;  %v8141_v18 = vld [vmem:[#allocation45_spill] sm:$0xff] }
 0x7cd   :  { %v5543_v29 = vpop.eup %5542 }
 0x7ce   :  { %v5545_v39 = vpop.eup %5544  ;;  %v2511_v28 = vmul.f32 %v5543_v29, %v2509_v55  ;;  %v8120_v29 = vld [vmem:[#allocation100_spill] sm:$0xff]  ;;  %v8144_v55 = vld [vmem:[#allocation51_spill] sm:$0xff] }
 0x7cf   :  { %v2512_v15 = vmul.f32 %v5545_v39, %v2510_v57  ;;  %v8133_v39 = vld [vmem:[#allocation29_spill] sm:$0xff] }
 0x7d0   :  { %v7148_v26 = vadd.f32 %v2513_v17, %v2511_v28  ;;  %v8121_v28 = vld [vmem:[#allocation101_spill] sm:$0xff]  ;;  %v8146_v17 = vld [vmem:[#allocation55_spill] sm:$0xff] }
 0x7d1   :  { %v7150_v33 = vadd.f32 %v2514_v23, %v2512_v15  ;;  %v8134_v15 = vld [vmem:[#allocation31_spill] sm:$0xff]  ;;  %v8145_v57 = vld [vmem:[#allocation53_spill] sm:$0xff] }
 0x7d2   :  { %v8147_v23 = vld [vmem:[#allocation57_spill] sm:$0xff] }
 0x7d3   :  { %2608 = vmatprep.mubr.f32.mxu0 %v7150_v33  ;;  %2679 = vmatprep.mubr.f32.mxu1 %v7150_v33 }
 0x7d4   :  { %2609 = vmatmul.mubr.f32.vlgmr.msra.gmra.mrb[34].mxu0 %v7148_v26  ;;  %2680 = vmatmul.mubr.f32.vlgmr.msra.gmra.mrb[20].mxu1 %v7148_v26 }
 0x7d5   :  { %4933 = vmatpush1.bf16.msra.mxu1 %v6222_v19  ;;  %2750 = vmatprep.mubr.f32.mxu1 %v7150_v33 }
 0x7d6   :  { %4935 = vmatprep.subr.bf16.mxu1 %v7781_v59  ;;  %4997 = vmatpush1.bf16.msra.mxu0 %v8068_v46  ;;  %v8127_v46 = vld [vmem:[#allocation84_spill] sm:$0xff] }
 0x7d7   :  { %4999 = vmatprep.subr.bf16.mxu0 %v8069_v36  ;;  %v8128_v36 = vld [vmem:[#allocation104_spill] sm:$0xff] }
 0x7d9   :  { %4937 = vmatpush1.bf16.msra.mxu1 %v6231_v48 }
 0x7da   :  { %4939 = vmatprep.subr.bf16.mxu1 %v6235_v43  ;;  %5001 = vmatpush1.bf16.msra.mxu0 %v8070_v51  ;;  %v8125_v51 = vld [vmem:[#allocation103_spill] sm:$0xff] }
 0x7db   :  { %5003 = vmatprep.subr.bf16.mxu0 %v8071_v61  ;;  %v8124_v61 = vld [vmem:[#allocation102_spill] sm:$0xff] }
 0x7dd   :  { %4941 = vmatpush1.bf16.msra.mxu1 %v6240_v16 }
 0x7de   :  { %4943 = vmatprep.subr.bf16.mxu1 %v6243_v40  ;;  %5005 = vmatpush1.bf16.msra.mxu0 %v8072_v10  ;;  %v8129_v10 = vld [vmem:[#allocation24_spill] sm:$0xff] }
 0x7df   :  { %5007 = vmatprep.subr.bf16.mxu0 %v8073_v42  ;;  %v8130_v42 = vld [vmem:[#allocation86_spill] sm:$0xff] }
 0x7e1   :  { %4945 = vmatpush1.bf16.msra.mxu1 %v6248_v60 }
 0x7e2   :  { %4947 = vmatprep.subr.bf16.mxu1 %v7782_v63  ;;  %5009 = vmatpush1.bf16.msra.mxu0 %v8074_v32  ;;  %v8123_v32 = vld [vmem:[#allocation80_spill] sm:$0xff] }
 0x7e3   :  { %5011 = vmatprep.subr.bf16.mxu0 %v8075_v12  ;;  %v8122_v12 = vld [vmem:[#allocation78_spill] sm:$0xff] }
 0x7e5   :  { %4949 = vmatpush1.bf16.msra.mxu1 %v7783_v47 }
 0x7e6   :  { %4951 = vmatprep.subr.bf16.mxu1 %v7784_v3  ;;  %5013 = vmatpush1.bf16.msra.mxu0 %v8076_v37  ;;  %v8126_v37 = vld [vmem:[#allocation82_spill] sm:$0xff] }
 0x7e7   :  { %5015 = vmatprep.subr.bf16.mxu0 %v8077_v25  ;;  %v8119_v25 = vld [vmem:[#allocation76_spill] sm:$0xff] }
 0x7e9   :  { %4953 = vmatpush1.bf16.msra.mxu1 %v6264_v22 }
 0x7ea   :  { %4955 = vmatprep.subr.bf16.mxu1 %v6272_v62  ;;  %5017 = vmatpush1.bf16.msra.mxu0 %v8078_v34  ;;  %v8116_v34 = vld [vmem:[#allocation98_spill] sm:$0xff] }
 0x7eb   :  { %5019 = vmatprep.subr.bf16.mxu0 %v8079_v45  ;;  %v8115_v45 = vld [vmem:[#allocation72_spill] sm:$0xff] }
 0x7ed   :  { %4957 = vmatpush1.bf16.msra.mxu1 %v6281_v20 }
 0x7ee   :  { %4959 = vmatprep.subr.bf16.mxu1 %v6284_v31  ;;  %5021 = vmatpush1.bf16.msra.mxu0 %v8080_v44  ;;  %v8112_v44 = vld [vmem:[#allocation96_spill] sm:$0xff] }
 0x7ef   :  { %5023 = vmatprep.subr.bf16.mxu0 %v8081_v7  ;;  %v8111_v7 = vld [vmem:[#allocation68_spill] sm:$0xff] }
 0x7f1   :  { %4961 = vmatpush1.bf16.msra.mxu1 %v6289_v14 }
 0x7f2   :  { %4963 = vmatprep.subr.bf16.mxu1 %v6292_v49  ;;  %5025 = vmatpush1.bf16.msra.mxu0 %v8082_v24  ;;  %v8109_v24 = vld [vmem:[#allocation95_spill] sm:$0xff] }
 0x7f3   :  { %5027 = vmatprep.subr.bf16.mxu0 %v8083_v13  ;;  %v8110_v13 = vld [vmem:[#allocation66_spill] sm:$0xff] }
 0x7f5   :  { %4965 = vmatpush1.bf16.msra.mxu1 %v6297_v5 }
 0x7f6   :  { %4967 = vmatprep.subr.bf16.mxu1 %v6300_v9  ;;  %5029 = vmatpush1.bf16.msra.mxu0 %v8084_v6  ;;  %v8113_v6 = vld [vmem:[#allocation97_spill] sm:$0xff] }
 0x7f7   :  { %5031 = vmatprep.subr.bf16.mxu0 %v8085_v58  ;;  %v8114_v58 = vld [vmem:[#allocation70_spill] sm:$0xff] }
 0x7f9   :  { %4969 = vmatpush1.bf16.msra.mxu1 %v6305_v21 }
 0x7fa   :  { %4971 = vmatprep.subr.bf16.mxu1 %v6308_v35  ;;  %5033 = vmatpush1.bf16.msra.mxu0 %v8086_v54  ;;  %v8117_v54 = vld [vmem:[#allocation99_spill] sm:$0xff] }
 0x7fb   :  { %5035 = vmatprep.subr.bf16.mxu0 %v8087_v41  ;;  %v8118_v41 = vld [vmem:[#allocation74_spill] sm:$0xff] }
 0x7fd   :  { %4973 = vmatpush1.bf16.msra.mxu1 %v7849_v8 }
 0x7fe   :  { %4975 = vmatprep.subr.bf16.mxu1 %v8109_v24  ;;  %5037 = vmatpush1.bf16.msra.mxu0 %v8110_v13  ;;  %v8148_v13 = vld [vmem:[#allocation59_spill] sm:$0xff] }
 0x7ff   :  { %5039 = vmatprep.subr.bf16.mxu0 %v8111_v7  ;;  %v8149_v7 = vld [vmem:[#allocation61_spill] sm:$0xff] }
 0x801   :  { %4977 = vmatpush1.bf16.msra.mxu1 %v8112_v44 }
 0x802   :  { %4979 = vmatprep.subr.bf16.mxu1 %v8113_v6  ;;  %5041 = vmatpush1.bf16.msra.mxu0 %v8114_v58  ;;  %v8150_v58 = vld [vmem:[#allocation63_spill] sm:$0xff] }
 0x803   :  { %5043 = vmatprep.subr.bf16.mxu0 %v8115_v45  ;;  %v8151_v45 = vld [vmem:[#allocation65_spill] sm:$0xff] }
 0x805   :  { %4981 = vmatpush1.bf16.msra.mxu1 %v8116_v34 }
 0x806   :  { %4983 = vmatprep.subr.bf16.mxu1 %v8117_v54  ;;  %5045 = vmatpush1.bf16.msra.mxu0 %v8118_v41  ;;  %v8152_v41 = vld [vmem:[#allocation67_spill] sm:$0xff] }
 0x807   :  { %5047 = vmatprep.subr.bf16.mxu0 %v8119_v25  ;;  %v8153_v25 = vld [vmem:[#allocation69_spill] sm:$0xff] }
 0x809   :  { %4985 = vmatpush1.bf16.msra.mxu1 %v8120_v29 }
 0x80a   :  { %4987 = vmatprep.subr.bf16.mxu1 %v8121_v28  ;;  %5049 = vmatpush1.bf16.msra.mxu0 %v8122_v12  ;;  %v8154_v12 = vld [vmem:[#allocation71_spill] sm:$0xff] }
 0x80b   :  { %5051 = vmatprep.subr.bf16.mxu0 %v8123_v32  ;;  %v8155_v32 = vld [vmem:[#allocation73_spill] sm:$0xff] }
 0x80d   :  { %4989 = vmatpush1.bf16.msra.mxu1 %v8124_v61 }
 0x80e   :  { %4991 = vmatprep.subr.bf16.mxu1 %v8125_v51  ;;  %5053 = vmatpush1.bf16.msra.mxu0 %v8126_v37  ;;  %v8156_v37 = vld [vmem:[#allocation75_spill] sm:$0xff] }
 0x80f   :  { %5055 = vmatprep.subr.bf16.mxu0 %v8127_v46  ;;  %v8157_v46 = vld [vmem:[#allocation77_spill] sm:$0xff] }
 0x811   :  { %4993 = vmatpush1.bf16.msra.mxu1 %v8128_v36 }
 0x812   :  { %5059 = vmatprep.subr.bf16.mxu1 %v8129_v10  ;;  %5057 = vmatpush1.bf16.msra.mxu0 %v8130_v42  ;;  %v8158_v10 = vld [vmem:[#allocation79_spill] sm:$0xff]  ;;  %v8159_v42 = vld [vmem:[#allocation81_spill] sm:$0xff] }
 0x813   :  { %5123 = vmatprep.subr.bf16.mxu0 %v8131_v56  ;;  %v8160_v56 = vld [vmem:[#allocation83_spill] sm:$0xff] }
 0x814   :  { %2751 = vmatmul.mubr.f32.vlgmr.msra.gmra.mrb[30].mxu1 %v7148_v26 }
 0x815   :  { %5061 = vmatpush1.bf16.msra.mxu1 %v8132_v2  ;;  %v8161_v2 = vld [vmem:[#allocation85_spill] sm:$0xff] }
 0x816   :  { %5063 = vmatprep.subr.bf16.mxu1 %v8133_v39  ;;  %v8162_v39 = vld [vmem:[#allocation87_spill] sm:$0xff] }
 0x819   :  { %5065 = vmatpush1.bf16.msra.mxu1 %v8134_v15 }
 0x81a   :  { %5067 = vmatprep.subr.bf16.mxu1 %v8135_v30 }
 0x81d   :  { %5069 = vmatpush1.bf16.msra.mxu1 %v8136_v1  ;;  %v8163_v1 = vld [vmem:[#allocation109_spill] sm:$0xff] }
 0x81e   :  { %5071 = vmatprep.subr.bf16.mxu1 %v8137_v0 }
 0x821   :  { %5073 = vmatpush1.bf16.msra.mxu1 %v8138_v53 }
 0x822   :  { %5075 = vmatprep.subr.bf16.mxu1 %v8139_v4 }
 0x825   :  { %5077 = vmatpush1.bf16.msra.mxu1 %v8140_v38  ;;  %v8164_v38 = vld [vmem:[#allocation110_spill] sm:$0xff] }
 0x826   :  { %5079 = vmatprep.subr.bf16.mxu1 %v8141_v18 }
 0x829   :  { %5081 = vmatpush1.bf16.msra.mxu1 %v8142_v50  ;;  %v5587_v50 = vld [vmem:[%s7359_s1] sm:$0xff] }
 0x82a   :  { %5083 = vmatprep.subr.bf16.mxu1 %v8143_v11  ;;  %vm3084_vm8 = vcmp.eq.s32.totalorder %v5587_v50, 7  ;;  %v8165_v11 = vmov 0   ;;  %v8170_v50 = vld [vmem:[#allocation123_spill] sm:$0xff] }
 0x82d   :  { %5085 = vmatpush1.bf16.msra.mxu1 %v8144_v55  ;;  %v3087_v55 = vsel %vm3084_vm8, 1, %v8165_v11 }
 0x82e   :  { %5087 = vmatprep.subr.bf16.mxu1 %v8145_v57  ;;  %3089 = vperm.xlu1 %5425, %v3087_v55   ;;  %v8171_v55 = vld [vmem:[#allocation124_spill] sm:$0xff] }
 0x831   :  { %5089 = vmatpush1.bf16.msra.mxu1 %v8146_v17 }
 0x832   :  { %5091 = vmatprep.subr.bf16.mxu1 %v8147_v23  ;;  %v8166_v23 = vld [vmem:[#allocation129_spill] sm:$0xff] }
 0x835   :  { %5093 = vmatpush1.bf16.msra.mxu1 %v8148_v13 }
 0x836   :  { %5095 = vmatprep.subr.bf16.mxu1 %v8149_v7  ;;  %v8167_v7 = vld [vmem:[#allocation130_spill] sm:$0xff] }
 0x839   :  { %5097 = vmatpush1.bf16.msra.mxu1 %v8150_v58 }
 0x83a   :  { %5099 = vmatprep.subr.bf16.mxu1 %v8151_v45 }
 0x83d   :  { %5101 = vmatpush1.bf16.msra.mxu1 %v8152_v41 }
 0x83e   :  { %5103 = vmatprep.subr.bf16.mxu1 %v8153_v25 }
 0x841   :  { %5105 = vmatpush1.bf16.msra.mxu1 %v8154_v12 }
 0x842   :  { %5107 = vmatprep.subr.bf16.mxu1 %v8155_v32 }
 0x845   :  { %5109 = vmatpush1.bf16.msra.mxu1 %v8156_v37 }
 0x846   :  { %5111 = vmatprep.subr.bf16.mxu1 %v8157_v46 }
 0x849   :  { %5113 = vmatpush1.bf16.msra.mxu1 %v8158_v10 }
 0x84a   :  { %5115 = vmatprep.subr.bf16.mxu1 %v8159_v42 }
 0x84d   :  { %5117 = vmatpush1.bf16.msra.mxu1 %v8160_v56 }
 0x84e   :  { %5119 = vmatprep.subr.bf16.mxu1 %v8161_v2 }
 0x851   :  { %5121 = vmatpush1.bf16.msra.mxu1 %v8162_v39  ;;  %v8168_v39 = vld [vmem:[#allocation131_spill] sm:$0xff] }
 0x8a7   :  { %v2610_v15 = vpop.f32.mrb[34].mxu0  ;;  %v2681_v30 = vpop.f32.mrb[20].mxu1 }
 0x8a8   :  { %v5340_v0 = vadd.f32 %v8163_v1, %v2610_v15  ;;  %v2612_v53 = vpop.f32.mrb[35].mxu0  ;;  %v2683_v4 = vpop.f32.mrb[21].mxu1  ;;  %v5375_v13 = vadd.f32 %v8166_v23, %v2681_v30 }
 0x8a9   :  { %v5343_v18 = vadd.f32 %v8164_v38, %v2612_v53  ;;  %v5377_v58 = vadd.f32 %v8167_v7, %v2683_v4 }
 0x8aa   :  { %v3529_v57 = vmul.f32 -1.442695, %v5340_v0  ;;  %v3531_v45 = vmul.f32 -1.442695, %v5375_v13  ;;  %v8169_v0 = vld [vmem:[#allocation132_spill] sm:$0xff] }
 0x8ab   :  { %v3530_v17 = vmul.f32 -1.442695, %v5343_v18  ;;  %v3532_v41 = vmul.f32 -1.442695, %v5377_v58 }
 0x8ac   :  { %5546 = vpow2.f32 %v3529_v57 }
 0x8ad   :  { %5548 = vpow2.f32 %v3530_v17 }
 0x8ae   :  { %5550 = vpow2.f32 %v3531_v45 }
 0x8af   :  { %5552 = vpow2.f32 %v3532_v41 }
 0x8b6   :  { %v5547_v25 = vpop.eup %5546 }
 0x8b7   :  { %v5549_v12 = vpop.eup %5548  ;;  %v2765_v32 = vadd.f32 1.0, %v5547_v25 }
 0x8b8   :  { %v2766_v37 = vadd.f32 1.0, %v5549_v12  ;;  %v5551_v46 = vpop.eup %5550 }
 0x8b9   :  { %5554 = vrcp.f32 %v2765_v32  ;;  %v5553_v10 = vpop.eup %5552  ;;  %v2779_v42 = vadd.f32 1.0, %v5551_v46 }
 0x8ba   :  { %5556 = vrcp.f32 %v2766_v37  ;;  %v2780_v56 = vadd.f32 1.0, %v5553_v10 }
 0x8bb   :  { %5558 = vrcp.f32 %v2779_v42 }
 0x8bc   :  { %5560 = vrcp.f32 %v2780_v56  ;;  %v1680_v56 = vpop.permute.xlu1 %1679 }
 0x8bd   :  { %vm1681_vm11 = vcmp.eq.s32.totalorder %v1680_v56, 1 }
 0x8c3   :  { %v5555_v1 = vpop.eup %5554 }
 0x8c4   :  { %v5557_v4 = vpop.eup %5556 }
 0x8c5   :  { %v5559_v17 = vpop.eup %5558 }
 0x8c6   :  { %v5561_v13 = vpop.eup %5560  ;;  %v2791_v58 = vsub.f32 1.0, %v5559_v17  ;;  %v2795_v32 = vmul.f32 %v5559_v17, %v7148_v26 }
 0x8c7   :  { %v2792_v41 = vsub.f32 1.0, %v5561_v13  ;;  %v2796_v46 = vmul.f32 %v5561_v13, %v7150_v33  ;;  %v8178_v13 = vld [vmem:[#allocation89_spill] sm:$0xff] }
 0x8e7   :  { %v2752_v2 = vpop.f32.mrb[30].mxu1 }
 0x8e8   :  { %v2753_v15 = vadd.f32 %v2752_v2, %v8168_v39  ;;  %v2754_v30 = vpop.f32.mrb[31].mxu1  ;;  %v8175_v2 = vld [vmem:[#allocation126_spill] sm:$0xff] }
 0x8e9   :  { %v2755_v53 = vadd.f32 %v2754_v30, %v8169_v0 }
 0x8ea   :  { %v2785_v38 = vmul.f32 %v5555_v1, %v2753_v15  ;;  %v1962_v1 = vpop.permute.xlu1 %1961 }
 0x8eb   :  { %v2786_v18 = vmul.f32 %v5557_v4, %v2755_v53  ;;  %v1111_v53 = vld [vmem:[#allocation4] sm:$0xff]  ;;  %v1112_v4 = vld [vmem:[#allocation4 + $0x8] sm:$0xff]  ;;  %vm1963_vm12 = vcmp.eq.s32.totalorder %v1962_v1, 1 }
 0x8ec   :  { %v2787_v11 = vadd.f32 %v2785_v38, %v8170_v50  ;;  %v8176_v50 = vld [vmem:[#allocation133_spill] sm:$0xff] }
 0x8ed   :  { %v2788_v57 = vadd.f32 %v2786_v18, %v8171_v55  ;;  %v8177_v55 = vld [vmem:[#allocation134_spill] sm:$0xff] }
 0x8ee   :  { %5562 = vtanh.f32 %v2787_v11  ;;  %v2526_v18 = vpop.permute.xlu1 %2525 }
 0x8ef   :  { %5564 = vtanh.f32 %v2788_v57  ;;  %vm2527_vm14 = vcmp.eq.s32.totalorder %v2526_v18, 1 }
 0x8f8   :  { %v5563_v45 = vpop.eup %5562 }
 0x8f9   :  { %v5565_v25 = vpop.eup %5564  ;;  %v2793_v12 = vmul.f32 %v5563_v45, %v2791_v58  ;;  %v8179_v45 = vld [vmem:[#allocation90_spill] sm:$0xff] }
 0x8fa   :  { %v2794_v37 = vmul.f32 %v5565_v25, %v2792_v41 }
 0x8fb   :  { %v7267_v10 = vadd.f32 %v2795_v32, %v2793_v12  ;;  %v8180_v32 = vld [vmem:[#allocation92_spill] sm:$0xff] }
 0x8fc   :  { %v7269_v42 = vadd.f32 %v2796_v46, %v2794_v37  ;;  %v8181_v46 = vld [vmem:[#allocation93_spill] sm:$0xff] }
 0x8fe   :  { %2890 = vmatprep.mubr.f32.mxu0 %v7269_v42  ;;  %2961 = vmatprep.mubr.f32.mxu1 %v7269_v42 }
 0x8ff   :  { %2891 = vmatmul.mubr.f32.vlgmr.msra.gmra.mrb[36].mxu0 %v7267_v10  ;;  %2962 = vmatmul.mubr.f32.vlgmr.msra.gmra.mrb[22].mxu1 %v7267_v10 }
 0x900   :  { %5125 = vmatpush1.bf16.msra.mxu0 %v6222_v19  ;;  %3032 = vmatprep.mubr.f32.mxu0 %v7269_v42  ;;  %v8173_v19 = vld [vmem:[#allocation112_spill] sm:$0xff] }
 0x901   :  { %5127 = vmatprep.subr.bf16.mxu0 %v7781_v59 }
 0x904   :  { %5129 = vmatpush1.bf16.msra.mxu0 %v6231_v48 }
 0x905   :  { %5131 = vmatprep.subr.bf16.mxu0 %v6235_v43 }
 0x908   :  { %5133 = vmatpush1.bf16.msra.mxu0 %v6240_v16 }
 0x909   :  { %5135 = vmatprep.subr.bf16.mxu0 %v6243_v40 }
 0x90c   :  { %5137 = vmatpush1.bf16.msra.mxu0 %v6248_v60 }
 0x90d   :  { %5139 = vmatprep.subr.bf16.mxu0 %v7782_v63 }
 0x910   :  { %5141 = vmatpush1.bf16.msra.mxu0 %v7783_v47 }
 0x911   :  { %5143 = vmatprep.subr.bf16.mxu0 %v7784_v3 }
 0x914   :  { %5145 = vmatpush1.bf16.msra.mxu0 %v6264_v22 }
 0x915   :  { %5147 = vmatprep.subr.bf16.mxu0 %v6272_v62 }
 0x918   :  { %5149 = vmatpush1.bf16.msra.mxu0 %v6281_v20 }
 0x919   :  { %5151 = vmatprep.subr.bf16.mxu0 %v6284_v31 }
 0x91c   :  { %5153 = vmatpush1.bf16.msra.mxu0 %v6289_v14 }
 0x91d   :  { %5155 = vmatprep.subr.bf16.mxu0 %v6292_v49 }
 0x920   :  { %5157 = vmatpush1.bf16.msra.mxu0 %v6297_v5  ;;  %v8172_v5 = vld [vmem:[#allocation111_spill] sm:$0xff] }
 0x921   :  { %5159 = vmatprep.subr.bf16.mxu0 %v6300_v9 }
 0x924   :  { %5161 = vmatpush1.bf16.msra.mxu0 %v6305_v21 }
 0x925   :  { %5163 = vmatprep.subr.bf16.mxu0 %v6308_v35 }
 0x928   :  { %5165 = vmatpush1.bf16.msra.mxu0 %v7849_v8 }
 0x929   :  { %5167 = vmatprep.subr.bf16.mxu0 %v8109_v24 }
 0x92c   :  { %5169 = vmatpush1.bf16.msra.mxu0 %v8112_v44 }
 0x92d   :  { %5171 = vmatprep.subr.bf16.mxu0 %v8113_v6 }
 0x930   :  { %5173 = vmatpush1.bf16.msra.mxu0 %v8116_v34 }
 0x931   :  { %5175 = vmatprep.subr.bf16.mxu0 %v8117_v54 }
 0x934   :  { %5177 = vmatpush1.bf16.msra.mxu0 %v8120_v29 }
 0x935   :  { %5179 = vmatprep.subr.bf16.mxu0 %v8121_v28 }
 0x938   :  { %5181 = vmatpush1.bf16.msra.mxu0 %v8124_v61  ;;  %v1116_v61 = vpop.permute.xlu0 %1115 }
 0x939   :  { %5183 = vmatprep.subr.bf16.mxu0 %v8125_v51  ;;  %vm1117_vm9 = vcmp.eq.s32.totalorder %v1116_v61, 1 }
 0x93a   :  { %v1118_v11 = vsel %vm1117_vm9, %v8176_v50, %v1111_v53  ;;  %v1119_v57 = vsel %vm1117_vm9, %v8177_v55, %v1112_v4 }
 0x93c   :  { %5185 = vmatpush1.bf16.msra.mxu0 %v8128_v36  ;;  %v1398_v30 = vpop.permute.xlu0 %1397 }
 0x93d   :  { %vm1399_vm10 = vcmp.eq.s32.totalorder %v1398_v30, 1 }
 0x93e   :  { %v1400_v58 = vsel %vm1399_vm10, %v8178_v13, %v1118_v11  ;;  %v1401_v41 = vsel %vm1399_vm10, %v8179_v45, %v1119_v57 }
 0x93f   :  { %3033 = vmatmul.mubr.f32.vlgmr.msra.gmra.mrb[38].mxu0 %v7267_v10  ;;  %v1682_v37 = vsel %vm1681_vm11, %v8180_v32, %v1400_v58 }
 0x9d2   :  { %v2892_v60 = vpop.f32.mrb[36].mxu0  ;;  %v2963_v22 = vpop.f32.mrb[22].mxu1 }
 0x9d3   :  { %v5346_v21 = vadd.f32 %v8172_v5, %v2892_v60  ;;  %v2894_v16 = vpop.f32.mrb[37].mxu0  ;;  %v2965_v48 = vpop.f32.mrb[23].mxu1  ;;  %v5379_v20 = vadd.f32 %v8166_v23, %v2963_v22  ;;  %v8174_v23 = vld [vmem:[#allocation125_spill] sm:$0xff]  ;;  %v1683_v60 = vsel %vm1681_vm11, %v8181_v46, %v1401_v41 }
 0x9d4   :  { %v5349_v43 = vadd.f32 %v8173_v19, %v2894_v16  ;;  %v5381_v31 = vadd.f32 %v8167_v7, %v2965_v48  ;;  %v3090_v19 = vpop.permute.xlu1 %3089 }
 0x9d5   :  { %v3533_v40 = vmul.f32 -1.442695, %v5346_v21  ;;  %v3535_v14 = vmul.f32 -1.442695, %v5379_v20  ;;  %v8182_v21 = vld [vmem:[#allocation113_spill] sm:$0xff]  ;;  %vm3091_vm0 = vcmp.eq.s32.totalorder %v3090_v19, 1 }
 0x9d6   :  { %v3534_v62 = vmul.f32 -1.442695, %v5349_v43  ;;  %v3536_v49 = vmul.f32 -1.442695, %v5381_v31  ;;  %v1964_v16 = vsel %vm1963_vm12, %v8182_v21, %v1682_v37 }
 0x9d7   :  { %5566 = vpow2.f32 %v3533_v40  ;;  %v8183_v40 = vld [vmem:[#allocation114_spill] sm:$0xff] }
 0x9d8   :  { %5568 = vpow2.f32 %v3534_v62  ;;  %v1965_v62 = vsel %vm1963_vm12, %v8183_v40, %v1683_v60 }
 0x9d9   :  { %5570 = vpow2.f32 %v3535_v14 }
 0x9da   :  { %5572 = vpow2.f32 %v3536_v49 }
 0x9e1   :  { %v5567_v9 = vpop.eup %5566 }
 0x9e2   :  { %v5569_v35 = vpop.eup %5568  ;;  %v3047_v59 = vadd.f32 1.0, %v5567_v9 }
 0x9e3   :  { %v3048_v63 = vadd.f32 1.0, %v5569_v35  ;;  %v5571_v47 = vpop.eup %5570 }
 0x9e4   :  { %5574 = vrcp.f32 %v3047_v59  ;;  %v5573_v3 = vpop.eup %5572  ;;  %v3061_v8 = vadd.f32 1.0, %v5571_v47 }
 0x9e5   :  { %5576 = vrcp.f32 %v3048_v63  ;;  %v3062_v24 = vadd.f32 1.0, %v5573_v3 }
 0x9e6   :  { %5578 = vrcp.f32 %v3061_v8 }
 0x9e7   :  { %5580 = vrcp.f32 %v3062_v24 }
 0x9ee   :  { %v5575_v54 = vpop.eup %5574 }
 0x9ef   :  { %v5577_v28 = vpop.eup %5576 }
 0xa12   :  { %v3034_v44 = vpop.f32.mrb[38].mxu0 }
 0xa13   :  { %v3035_v6 = vadd.f32 %v3034_v44, %v8168_v39  ;;  %v3036_v34 = vpop.f32.mrb[39].mxu0  ;;  %v2244_v39 = vpop.permute.xlu0 %2243 }
 0xa14   :  { %v3037_v29 = vadd.f32 %v3036_v34, %v8169_v0  ;;  %v5579_v0 = vpop.eup %5578  ;;  %vm2245_vm13 = vcmp.eq.s32.totalorder %v2244_v39, 1 }
 0xa15   :  { %v3067_v51 = vmul.f32 %v5575_v54, %v3035_v6  ;;  %v5581_v38 = vpop.eup %5580  ;;  %v3073_v25 = vsub.f32 1.0, %v5579_v0  ;;  %v3077_v48 = vmul.f32 %v5579_v0, %v7267_v10  ;;  %v2246_v20 = vsel %vm2245_vm13, %v7030_v52, %v1964_v16 }
 0xa16   :  { %v3068_v36 = vmul.f32 %v5577_v28, %v3037_v29  ;;  %v3074_v22 = vsub.f32 1.0, %v5581_v38  ;;  %v3078_v31 = vmul.f32 %v5581_v38, %v7269_v42  ;;  %v2247_v49 = vsel %vm2245_vm13, %v7032_v27, %v1965_v62 }
 0xa17   :  { %v3069_v7 = vadd.f32 %v3067_v51, %v8174_v23  ;;  %v2808_v17 = vpop.permute.xlu0 %2807  ;;  %v2528_v9 = vsel %vm2527_vm14, %v7148_v26, %v2246_v20  ;;  %v2529_v59 = vsel %vm2527_vm14, %v7150_v33, %v2247_v49 }
 0xa18   :  { %v3070_v15 = vadd.f32 %v3068_v36, %v8175_v2  ;;  %vm2809_vm15 = vcmp.eq.s32.totalorder %v2808_v17, 1 }
 0xa19   :  { %5582 = vtanh.f32 %v3069_v7  ;;  %v2810_v63 = vsel %vm2809_vm15, %v7267_v10, %v2528_v9  ;;  %v2811_v3 = vsel %vm2809_vm15, %v7269_v42, %v2529_v59 }
 0xa1a   :  { %5584 = vtanh.f32 %v3070_v15 }
 0xa23   :  { %v5583_v12 = vpop.eup %5582 }
 0xa24   :  { %v5585_v5 = vpop.eup %5584  ;;  %v3075_v43 = vmul.f32 %v5583_v12, %v3073_v25 }
 0xa25   :  { %v3076_v14 = vmul.f32 %v5585_v5, %v3074_v22 }
 0xa26   :  { %v3079_v35 = vadd.f32 %v3077_v48, %v3075_v43 }
 0xa27   :  { %v3080_v47 = vadd.f32 %v3078_v31, %v3076_v14 }
 0xa28   :  { %3081 = vst [vmem:[#allocation3] sm:$0xff] %v3079_v35  ;;  %v3092_v8 = vsel %vm3091_vm0, %v3079_v35, %v2810_v63 }
 0xa29   :  { %3094 = vst [vmem:[#allocation4] sm:$0xff] %v3092_v8  ;;  %3082 = vst [vmem:[#allocation3 + $0x8] sm:$0xff] %v3080_v47  ;;  %v3093_v52 = vsel %vm3091_vm0, %v3080_v47, %v2811_v3 }
 0xa2a   :  { %3095 = vst [vmem:[#allocation4 + $0x8] sm:$0xff] %v3093_v52 }
 0xa2b PF:  { %v3102_v24 = vld [vmem:[#allocation13 + $0x8] sm:$0xff]  ;;  %v3104_v27 = vld [vmem:[#allocation13 + $0x18] sm:$0xff]  ;;  %v3101_v44 = vld [vmem:[#allocation13] sm:$0xff]  ;;  %vm5768_vm1 = vmmov 0   ;;  %s5769_s28 = smov [#allocation18]  }
 0xa2c   :  { %v5186_v26 = vpack.c.bf16 %v3104_v27, %v3102_v24  ;;  %v3103_v6 = vld [vmem:[#allocation13 + $0x10] sm:$0xff]  ;;  %v3106_v34 = vld [vmem:[#allocation13 + $0x28] sm:$0xff]  ;;  %v3108_v33 = vld [vmem:[#allocation13 + $0x38] sm:$0xff]  ;;  %s3460_s29 = sshll.u32 %s5769_s28, 4  ;;  %s3461_s29 = int_to_ptr.vmem [resolvable:$true] %s3460_s29 }
 0xa2d   :  { %v5188_v54 = vpack.c.bf16 %v3103_v6, %v3101_v44  ;;  %v5190_v10 = vpack.c.bf16 %v3108_v33, %v3106_v34  ;;  %v3105_v29 = vld [vmem:[#allocation13 + $0x20] sm:$0xff]  ;;  %v3107_v28 = vld [vmem:[#allocation13 + $0x30] sm:$0xff]  ;;  %v3110_v61 = vld [vmem:[#allocation13 + $0x48] sm:$0xff]  ;;  %s5720_s30 = scalar_lea.vmem %s3461_s29, 128  ;;  %p5725_p8 = scmp.lt.s32.totalorder %s3461_s29, %s3461_s29 }
 0xa2e   :  { %5187 = vmatprep.subr.bf16.mxu0 %v5186_v26  ;;  %v3112_v42 = vld [vmem:[#allocation13 + $0x58] sm:$0xff]  ;;  %v5192_v51 = vpack.c.bf16 %v3107_v28, %v3105_v29  ;;  %v3109_v23 = vld [vmem:[#allocation13 + $0x40] sm:$0xff]  ;;  %v3111_v7 = vld [vmem:[#allocation13 + $0x50] sm:$0xff]  ;;  %p5721_p7 = scmp.ne.s32.totalorder %s3461_s29, %s5720_s30  ;;  %p5726_p9 = scmp.lt.s32.totalorder %s5720_s30, %s5720_s30 }
 0xa2f   :  { %5189 = vmatpush1.bf16.msra.mxu0 %v5188_v54  ;;  %v5194_v36 = vpack.c.bf16 %v3112_v42, %v3110_v61  ;;  %v3114_v56 = vld [vmem:[#allocation13 + $0x68] sm:$0xff]  ;;  %v3116_v2 = vld [vmem:[#allocation13 + $0x78] sm:$0xff]  ;;  %v5196_v15 = vpack.c.bf16 %v3111_v7, %v3109_v23  ;;  %v3113_v1 = vld [vmem:[#allocation13 + $0x60] sm:$0xff] }
 0xa30   :  { %5191 = vmatprep.subr.bf16.mxu0 %v5190_v10  ;;  %v5198_v30 = vpack.c.bf16 %v3116_v2, %v3114_v56  ;;  %v3115_v39 = vld [vmem:[#allocation13 + $0x70] sm:$0xff]  ;;  %v3118_v53 = vld [vmem:[#allocation13 + $0x88] sm:$0xff]  ;;  %v3120_v4 = vld [vmem:[#allocation13 + $0x98] sm:$0xff]  ;;  %p5727_p10 = por %p5726_p9, %p5725_p8 }
 0xa31   :  { %v5200_v0 = vpack.c.bf16 %v3115_v39, %v3113_v1  ;;  %v5202_v38 = vpack.c.bf16 %v3120_v4, %v3118_v53  ;;  %v3117_v18 = vld [vmem:[#allocation13 + $0x80] sm:$0xff]  ;;  %v3119_v50 = vld [vmem:[#allocation13 + $0x90] sm:$0xff]  ;;  %v3122_v11 = vld [vmem:[#allocation13 + $0xa8] sm:$0xff] }
 0xa32   :  { %v3124_v55 = vld [vmem:[#allocation13 + $0xb8] sm:$0xff]  ;;  %v5204_v57 = vpack.c.bf16 %v3119_v50, %v3117_v18  ;;  %v3121_v13 = vld [vmem:[#allocation13 + $0xa0] sm:$0xff]  ;;  %v3123_v58 = vld [vmem:[#allocation13 + $0xb0] sm:$0xff]  ;;  %p5728_p11 = pnand %p5727_p10, %p5721_p7 }
 0xa33   :  { %5193 = vmatpush1.bf16.msra.mxu0 %v5192_v51  ;;  %v5206_v17 = vpack.c.bf16 %v3124_v55, %v3122_v11  ;;  %v3126_v45 = vld [vmem:[#allocation13 + $0xc8] sm:$0xff]  ;;  %v3128_v41 = vld [vmem:[#allocation13 + $0xd8] sm:$0xff]  ;;  %v5208_v25 = vpack.c.bf16 %v3123_v58, %v3121_v13  ;;  %v3125_v12 = vld [vmem:[#allocation13 + $0xc0] sm:$0xff] }
 0xa34   :  { %5195 = vmatprep.subr.bf16.mxu0 %v5194_v36  ;;  %v3127_v32 = vld [vmem:[#allocation13 + $0xd0] sm:$0xff]  ;;  %v5210_v37 = vpack.c.bf16 %v3128_v41, %v3126_v45  ;;  %v3130_v46 = vld [vmem:[#allocation13 + $0xe8] sm:$0xff]  ;;  %v3132_v60 = vld [vmem:[#allocation13 + $0xf8] sm:$0xff] }
 0xa35   :  { %v3100_v22 = vld [vmem:[#allocation4 + $0x8] sm:$0xff]  ;;  %v3266_v5 = vld [vmem:[#allocation15 + $0x80] sm:$0xff]  ;;  %v3267_v21 = vld [vmem:[#allocation15 + $0x88] sm:$0xff]  ;;  %v5212_v62 = vpack.c.bf16 %v3127_v32, %v3125_v12  ;;  %v5214_v35 = vpack.c.bf16 %v3132_v60, %v3130_v46 }
 0xa36   :  { %3241 = vmatprep.mubr.f32.mxu0 %v3100_v22  ;;  %v3250_v16 = vld [vmem:[#allocation15] sm:$0xff]  ;;  %v5250_v48 = vpack.c.bf16 %v3267_v21, %v3266_v5  ;;  %v3251_v19 = vld [vmem:[#allocation15 + $0x8] sm:$0xff]  ;;  %v3268_v43 = vld [vmem:[#allocation15 + $0x90] sm:$0xff] }
 0xa37   :  { %5197 = vmatpush1.bf16.msra.mxu0 %v5196_v15  ;;  %v3269_v40 = vld [vmem:[#allocation15 + $0x98] sm:$0xff]  ;;  %v5252_v20 = vpack.c.bf16 %v3251_v19, %v3250_v16  ;;  %v3252_v14 = vld [vmem:[#allocation15 + $0x10] sm:$0xff]  ;;  %v3270_v9 = vld [vmem:[#allocation15 + $0xa0] sm:$0xff] }
 0xa38   :  { %5199 = vmatprep.subr.bf16.mxu0 %v5198_v30  ;;  %v5254_v31 = vpack.c.bf16 %v3269_v40, %v3268_v43  ;;  %v3253_v49 = vld [vmem:[#allocation15 + $0x18] sm:$0xff]  ;;  %v3129_v59 = vld [vmem:[#allocation13 + $0xe0] sm:$0xff]  ;;  %v3131_v63 = vld [vmem:[#allocation13 + $0xf0] sm:$0xff]  ;;  %5251 = vmatprep.subr.bf16.mxu1 %v5250_v48 }
 0xa39   :  { %v3271_v47 = vld [vmem:[#allocation15 + $0xa8] sm:$0xff]  ;;  %v3136_v8 = vld [vmem:[#allocation13 + $0x118] sm:$0xff]  ;;  %5253 = vmatpush3.bf16.msra.mxu1 %v5252_v20  ;;  %v5256_v52 = vpack.c.bf16 %v3253_v49, %v3252_v14  ;;  %v3254_v27 = vld [vmem:[#allocation15 + $0x20] sm:$0xff]  ;;  %v5216_v26 = vpack.c.bf16 %v3131_v63, %v3129_v59 }
 0xa3a   :  { %v3134_v3 = vld [vmem:[#allocation13 + $0x108] sm:$0xff]  ;;  %5255 = vmatprep.subr.bf16.mxu1 %v5254_v31  ;;  %v5258_v24 = vpack.c.bf16 %v3271_v47, %v3270_v9  ;;  %v3272_v6 = vld [vmem:[#allocation15 + $0xb0] sm:$0xff]  ;;  %v3273_v34 = vld [vmem:[#allocation15 + $0xb8] sm:$0xff] }
 0xa3b   :  { %5201 = vmatpush1.bf16.msra.mxu0 %v5200_v0  ;;  %v3255_v44 = vld [vmem:[#allocation15 + $0x28] sm:$0xff]  ;;  %v5218_v33 = vpack.c.bf16 %v3136_v8, %v3134_v3  ;;  %v3133_v54 = vld [vmem:[#allocation13 + $0x100] sm:$0xff]  ;;  %v3135_v10 = vld [vmem:[#allocation13 + $0x110] sm:$0xff]  ;;  %v5262_v42 = vpack.c.bf16 %v3273_v34, %v3272_v6 }
 0xa3c   :  { %5203 = vmatprep.subr.bf16.mxu0 %v5202_v38  ;;  %v3138_v29 = vld [vmem:[#allocation13 + $0x128] sm:$0xff]  ;;  %v3140_v28 = vld [vmem:[#allocation13 + $0x138] sm:$0xff]  ;;  %v5260_v61 = vpack.c.bf16 %v3255_v44, %v3254_v27  ;;  %v3256_v51 = vld [vmem:[#allocation15 + $0x30] sm:$0xff]  ;;  %v5220_v23 = vpack.c.bf16 %v3135_v10, %v3133_v54 }
 0xa3d   :  { %5257 = vmatpush3.bf16.msra.mxu1 %v5256_v52  ;;  %v3257_v36 = vld [vmem:[#allocation15 + $0x38] sm:$0xff]  ;;  %v3274_v7 = vld [vmem:[#allocation15 + $0xc0] sm:$0xff]  ;;  %v3275_v56 = vld [vmem:[#allocation15 + $0xc8] sm:$0xff]  ;;  %v5222_v2 = vpack.c.bf16 %v3140_v28, %v3138_v29 }
 0xa3e   :  { %5259 = vmatprep.subr.bf16.mxu1 %v5258_v24  ;;  %v3137_v15 = vld [vmem:[#allocation13 + $0x120] sm:$0xff]  ;;  %v3139_v30 = vld [vmem:[#allocation13 + $0x130] sm:$0xff]  ;;  %v3142_v1 = vld [vmem:[#allocation13 + $0x148] sm:$0xff]  ;;  %v5264_v53 = vpack.c.bf16 %v3257_v36, %v3256_v51  ;;  %v5266_v4 = vpack.c.bf16 %v3275_v56, %v3274_v7 }
 0xa3f   :  { %5205 = vmatpush1.bf16.msra.mxu0 %v5204_v57  ;;  %v3144_v39 = vld [vmem:[#allocation13 + $0x158] sm:$0xff]  ;;  %v3258_v0 = vld [vmem:[#allocation15 + $0x40] sm:$0xff]  ;;  %v3259_v38 = vld [vmem:[#allocation15 + $0x48] sm:$0xff]  ;;  %v5224_v18 = vpack.c.bf16 %v3139_v30, %v3137_v15  ;;  %v3167_v15 = vlaneseq }
 0xa40   :  { %5207 = vmatprep.subr.bf16.mxu0 %v5206_v17  ;;  %v3276_v50 = vld [vmem:[#allocation15 + $0xd0] sm:$0xff]  ;;  %v3277_v11 = vld [vmem:[#allocation15 + $0xd8] sm:$0xff]  ;;  %v5226_v55 = vpack.c.bf16 %v3144_v39, %v3142_v1  ;;  %v3141_v57 = vld [vmem:[#allocation13 + $0x140] sm:$0xff]  ;;  %v5268_v45 = vpack.c.bf16 %v3259_v38, %v3258_v0 }
 0xa41   :  { %5261 = vmatpush3.bf16.msra.mxu1 %v5260_v61  ;;  %v3143_v17 = vld [vmem:[#allocation13 + $0x150] sm:$0xff]  ;;  %v3146_v13 = vld [vmem:[#allocation13 + $0x168] sm:$0xff]  ;;  %v3148_v58 = vld [vmem:[#allocation13 + $0x178] sm:$0xff]  ;;  %v5270_v41 = vpack.c.bf16 %v3277_v11, %v3276_v50  ;;  %v3168_v30 = vshrl.u32 %v3167_v15, 7 }
 0xa42   :  { %5263 = vmatprep.subr.bf16.mxu1 %v5262_v42  ;;  %v3261_v12 = vld [vmem:[#allocation15 + $0x58] sm:$0xff]  ;;  %v5228_v32 = vpack.c.bf16 %v3143_v17, %v3141_v57  ;;  %v3279_v46 = vld [vmem:[#allocation15 + $0xe8] sm:$0xff]  ;;  %v5230_v60 = vpack.c.bf16 %v3148_v58, %v3146_v13  ;;  %v3145_v22 = vld [vmem:[#allocation13 + $0x160] sm:$0xff] }
 0xa43   :  { %5209 = vmatpush1.bf16.msra.mxu0 %v5208_v25  ;;  %v3260_v25 = vld [vmem:[#allocation15 + $0x50] sm:$0xff]  ;;  %v3150_v21 = vld [vmem:[#allocation13 + $0x188] sm:$0xff]  ;;  %v3152_v16 = vld [vmem:[#allocation13 + $0x198] sm:$0xff]  ;;  %v3169_v1 = vsub.s32 0, %v3168_v30 }
 0xa44   :  { %5211 = vmatprep.subr.bf16.mxu0 %v5210_v37  ;;  %v3278_v37 = vld [vmem:[#allocation15 + $0xe0] sm:$0xff]  ;;  %v3147_v5 = vld [vmem:[#allocation13 + $0x170] sm:$0xff]  ;;  %v5272_v48 = vpack.c.bf16 %v3261_v12, %v3260_v25  ;;  %v5234_v40 = vpack.c.bf16 %v3152_v16, %v3150_v21  ;;  %v3154_v31 = vld [vmem:[#allocation13 + $0x1a8] sm:$0xff] }
 0xa45   :  { %5265 = vmatpush3.bf16.msra.mxu1 %v5264_v53  ;;  %v5274_v19 = vpack.c.bf16 %v3279_v46, %v3278_v37  ;;  %v5232_v43 = vpack.c.bf16 %v3147_v5, %v3145_v22  ;;  %v3151_v20 = vld [vmem:[#allocation13 + $0x190] sm:$0xff]  ;;  %v3156_v14 = vld [vmem:[#allocation13 + $0x1b8] sm:$0xff]  ;;  %v3158_v63 = vld [vmem:[#allocation13 + $0x1c8] sm:$0xff]  ;;  %v3173_v53 = vsub.s32 1, %v3168_v30 }
 0xa46   :  { %5267 = vmatprep.subr.bf16.mxu1 %v5266_v4  ;;  %v5238_v9 = vpack.c.bf16 %v3156_v14, %v3154_v31  ;;  %v3155_v59 = vld [vmem:[#allocation13 + $0x1b0] sm:$0xff]  ;;  %v3160_v47 = vld [vmem:[#allocation13 + $0x1d8] sm:$0xff]  ;;  %v3157_v52 = vld [vmem:[#allocation13 + $0x1c0] sm:$0xff] }
 0xa47   :  { %5213 = vmatpush1.bf16.msra.mxu0 %v5212_v62  ;;  %v3149_v62 = vld [vmem:[#allocation13 + $0x180] sm:$0xff]  ;;  %v5242_v8 = vpack.c.bf16 %v3160_v47, %v3158_v63  ;;  %v3159_v24 = vld [vmem:[#allocation13 + $0x1d0] sm:$0xff]  ;;  %v3162_v27 = vld [vmem:[#allocation13 + $0x1e8] sm:$0xff] }
 0xa48   :  { %5215 = vmatprep.subr.bf16.mxu0 %v5214_v35  ;;  %v5236_v49 = vpack.c.bf16 %v3151_v20, %v3149_v62  ;;  %v3153_v35 = vld [vmem:[#allocation13 + $0x1a0] sm:$0xff]  ;;  %v3164_v44 = vld [vmem:[#allocation13 + $0x1f8] sm:$0xff]  ;;  %v3099_v10 = vld [vmem:[#allocation4] sm:$0xff] }
 0xa49   :  { %5269 = vmatpush3.bf16.msra.mxu1 %v5268_v45  ;;  %v5240_v3 = vpack.c.bf16 %v3155_v59, %v3153_v35  ;;  %v5246_v6 = vpack.c.bf16 %v3164_v44, %v3162_v27  ;;  %v3161_v34 = vld [vmem:[#allocation13 + $0x1e0] sm:$0xff]  ;;  %v3263_v28 = vld [vmem:[#allocation15 + $0x68] sm:$0xff]  ;;  %v3280_v42 = vld [vmem:[#allocation15 + $0xf0] sm:$0xff] }
 0xa4a   :  { %5271 = vmatprep.subr.bf16.mxu1 %v5270_v41  ;;  %v3262_v29 = vld [vmem:[#allocation15 + $0x60] sm:$0xff]  ;;  %v3281_v51 = vld [vmem:[#allocation15 + $0xf8] sm:$0xff]  ;;  %v3362_v45 = vld [vmem:[#allocation16 + $0x10] sm:$0xff] }
 0xa4b   :  { %5217 = vmatpush1.bf16.msra.mxu0 %v5216_v26  ;;  %v5244_v26 = vpack.c.bf16 %v3159_v24, %v3157_v52  ;;  %v5276_v61 = vpack.c.bf16 %v3263_v28, %v3262_v29  ;;  %v5278_v36 = vpack.c.bf16 %v3281_v51, %v3280_v42  ;;  %v3265_v7 = vld [vmem:[#allocation15 + $0x78] sm:$0xff]  ;;  %v3165_v39 = vld [vmem:[%s7366_s8] sm:$0x3]  ;;  %v3366_v46 = vld [vmem:[#allocation16 + $0x30] sm:$0xff] }
 0xa4c   :  { %5219 = vmatprep.subr.bf16.mxu0 %v5218_v33  ;;  %v3163_v33 = vld [vmem:[#allocation13 + $0x1f0] sm:$0xff]  ;;  %v3170_v4 = vrot.slane %v3165_v39, %v3169_v1  ;;  %v3174_v0 = vrot.slane %v3165_v39, %v3173_v53  ;;  %v3360_v11 = vld [vmem:[#allocation16] sm:$0xff]  ;;  %v3363_v41 = vld [vmem:[#allocation16 + $0x18] sm:$0xff] }
 0xa4d   :  { %5273 = vmatpush3.bf16.msra.mxu1 %v5272_v48  ;;  %v5248_v54 = vpack.c.bf16 %v3163_v33, %v3161_v34  ;;  %v5286_v25 = vpack.c.bf16 %v3363_v41, %v3362_v45  ;;  %v3364_v12 = vld [vmem:[#allocation16 + $0x20] sm:$0xff]  ;;  %v3369_v21 = vld [vmem:[#allocation16 + $0x48] sm:$0xff]  ;;  %v3370_v48 = vld [vmem:[#allocation16 + $0x50] sm:$0xff] }
 0xa4e   :  { %5275 = vmatprep.subr.bf16.mxu1 %v5274_v19  ;;  %v3368_v5 = vld [vmem:[#allocation16 + $0x40] sm:$0xff]  ;;  %v3371_v19 = vld [vmem:[#allocation16 + $0x58] sm:$0xff]  ;;  %v3373_v62 = vld [vmem:[#allocation16 + $0x68] sm:$0xff] }
 0xa4f   :  { %5221 = vmatpush1.bf16.msra.mxu0 %v5220_v23  ;;  %v3264_v23 = vld [vmem:[#allocation15 + $0x70] sm:$0xff]  ;;  %v5295_v16 = vpack.c.bf16 %v3369_v21, %v3368_v5  ;;  %v3375_v14 = vld [vmem:[#allocation16 + $0x78] sm:$0xff]  ;;  %v3537_v59 = vld [vmem:[%s7368_s10] ss:$0 sm:$0xff] }
 0xa50   :  { %5223 = vmatprep.subr.bf16.mxu0 %v5222_v2  ;;  %v5280_v56 = vpack.c.bf16 %v3265_v7, %v3264_v23  ;;  %v5767_v2 = vmov 0.0|0.0   ;;  %v3374_v31 = vld [vmem:[#allocation16 + $0x70] sm:$0xff]  ;;  %v3538_v52 = vld [vmem:[%s7370_s12] ss:$0 sm:$0xff] }
 0xa51   :  { %5277 = vmatpush3.bf16.msra.mxu1 %v5276_v61 }
 0xa52   :  { %5279 = vmatprep.subr.bf16.mxu1 %v5278_v36 }
 0xa53   :  { %5225 = vmatpush1.bf16.msra.mxu0 %v5224_v18 }
 0xa54   :  { %5227 = vmatprep.subr.bf16.mxu0 %v5226_v55  ;;  %v3361_v55 = vld [vmem:[#allocation16 + $0x8] sm:$0xff] }
 0xa55   :  { %5281 = vmatpush3.bf16.msra.mxu1 %v5280_v56  ;;  %v5283_v13 = vpack.c.bf16 %v3361_v55, %v3360_v11 }
 0xa56   :  { %5282 = vmatprep.subr.bf16.mxu1 %v5767_v2 }
 0xa57   :  { %5229 = vmatpush1.bf16.msra.mxu0 %v5228_v32  ;;  %v3365_v32 = vld [vmem:[#allocation16 + $0x28] sm:$0xff] }
 0xa58   :  { %5231 = vmatprep.subr.bf16.mxu0 %v5230_v60  ;;  %v5289_v37 = vpack.c.bf16 %v3365_v32, %v3364_v12  ;;  %v3367_v60 = vld [vmem:[#allocation16 + $0x38] sm:$0xff] }
 0xa59   :  { %v5292_v22 = vpack.c.bf16 %v3367_v60, %v3366_v46 }
 0xa5b   :  { %5233 = vmatpush1.bf16.msra.mxu0 %v5232_v43  ;;  %v5298_v43 = vpack.c.bf16 %v3371_v19, %v3370_v48 }
 0xa5c   :  { %5235 = vmatprep.subr.bf16.mxu0 %v5234_v40  ;;  %v3372_v40 = vld [vmem:[#allocation16 + $0x60] sm:$0xff] }
 0xa5d   :  { %v5301_v20 = vpack.c.bf16 %v3373_v62, %v3372_v40 }
 0xa5f   :  { %5237 = vmatpush1.bf16.msra.mxu0 %v5236_v49  ;;  %v5304_v49 = vpack.c.bf16 %v3375_v14, %v3374_v31 }
 0xa60   :  { %5239 = vmatprep.subr.bf16.mxu0 %v5238_v9  ;;  %v8184_v9 = vmov 0.0  }
 0xa63   :  { %5241 = vmatpush1.bf16.msra.mxu0 %v5240_v3 }
 0xa64   :  { %5243 = vmatprep.subr.bf16.mxu0 %v5242_v8 }
 0xa67   :  { %5245 = vmatpush1.bf16.msra.mxu0 %v5244_v26 }
 0xa68   :  { %5247 = vmatprep.subr.bf16.mxu0 %v5246_v6 }
 0xa6b   :  { %5249 = vmatpush1.bf16.msra.mxu0 %v5248_v54 }
 0xa6e   :  { %3242 = vmatmul.mubr.f32.vlgmr.msra.gmra.mrb[0].mxu0 %v3099_v10 }
 0xb41   :  { %v3243_v38 = vpop.f32.mrb[0].mxu0 }
 0xb42   :  { %v3244_v18 = vadd.f32 %v3243_v38, %v3170_v4  ;;  %v3245_v50 = vpop.f32.mrb[1].mxu0 }
 0xb43   :  { %v3246_v57 = vadd.f32 %v3245_v50, %v3174_v0 }
 0xb44   :  { %v3248_v58 = vmax.f32 %v3244_v18, 0.0 }
 0xb45   :  { %v3249_v17 = vmax.f32 %v3246_v57, 0.0 }
 0xb47   :  { %3353 = vmatprep.mubr.f32.mxu1 %v3249_v17 }
 0xb48   :  { %3354 = vmatmul.mubr.f32.vlgmr.msra.gmra.mrb[0].mxu1 %v3248_v58 }
 0xb49   :  { %5284 = vmatpush3.bf16.msra.mxu1 %v5283_v13  ;;  %3623 = vmatprep.mubr.msk.f32.mxu1 %vm5768_vm1, %v8184_v9 }
 0xb4a   :  { %5285 = vmatprep.subr.bf16.mxu1 %v5767_v2 }
 0xb4d   :  { %5287 = vmatpush3.bf16.msra.mxu1 %v5286_v25 }
 0xb4e   :  { %5288 = vmatprep.subr.bf16.mxu1 %v5767_v2 }
 0xb51   :  { %5290 = vmatpush3.bf16.msra.mxu1 %v5289_v37 }
 0xb52   :  { %5291 = vmatprep.subr.bf16.mxu1 %v5767_v2 }
 0xb55   :  { %5293 = vmatpush3.bf16.msra.mxu1 %v5292_v22 }
 0xb56   :  { %5294 = vmatprep.subr.bf16.mxu1 %v5767_v2 }
 0xb59   :  { %5296 = vmatpush3.bf16.msra.mxu1 %v5295_v16 }
 0xb5a   :  { %5297 = vmatprep.subr.bf16.mxu1 %v5767_v2 }
 0xb5d   :  { %5299 = vmatpush3.bf16.msra.mxu1 %v5298_v43 }
 0xb5e   :  { %5300 = vmatprep.subr.bf16.mxu1 %v5767_v2 }
 0xb61   :  { %5302 = vmatpush3.bf16.msra.mxu1 %v5301_v20 }
 0xb62   :  { %5303 = vmatprep.subr.bf16.mxu1 %v5767_v2 }
 0xb65   :  { %5305 = vmatpush3.bf16.msra.mxu1 %v5304_v49 }
 0xc1b   :  { %v3571_v35 = vpop.f32.mrb[0].mxu1 }
 0xc1c   :  { %v3572_v63 = vpop.f32.mrb[1].mxu1 }
 0xc1d   :  { %v3573_v47 = vadd.f32 %v3572_v63, %v3571_v35 }
 0xc1f   :  { %v3356_v3 = vadd.f32 %v3573_v47, %v3537_v59 }
 0xc21   :  { %v3359_v8 = vmax.f32 %v3356_v3, 0.0 }
 0xc23   :  { %3624 = vmatmul.mubr.f32.vlgmr.msra.gmra.mrb[2].mxu1 %v3359_v8 }
 0xcf6   :  { %v3449_v24 = vpop.f32.mrb[2].mxu1 }
 0xcf7   :  { %v3450_v27 = vadd.f32 %v3538_v52, %v3449_v24  ;;  %v3625_v44 = vpop.f32.mrb[3].mxu1 }
 0xcf9   :  { %3453 = vst [vmem:[#allocation18] sm:$0xff] %v3450_v27 }
 0xcfa   :  { %5731 = shalt.err (!%p5728_p11)
}
 0xcfb   :  { %s5732_s21 = scalar_lea.hbm %s7371_s13, 128 }
 0xcfc   :  { %p5733_p12 = scmp.ne.s32.totalorder %s7371_s13, %s5732_s21  ;;  %p5736_p13 = scmp.lt.u32.totalorder %s5732_s21, %s7371_s13 }
 0xcfe   :  { %p5738_p0 = pnand %p5736_p13, %p5733_p12 }
 0xd00   :  { %5741 = shalt.err (!%p5738_p0)
}
 0xd01   :  { %3463 = dma.vmem_to_hbm [thread:$0]  %s3461_s29, 128, %s7371_s13, [#allocation9]  }
 0xd02   :  { %5750 = dma.done.wait [#allocation9], 128  }
 0xd03   :  { %5751 = vsyncadd [#allocation9], 4294967168 }
 0xd04   :  { %3467 = vsyncpa [#allocation8], 1 }
 0xd05   :  { %3468 = vsyncpa [#allocation11], 1 }
 0xd06   :  { %3469 = vsyncpa [#allocation14], 1 }
 0xd07   :  { %3470 = vsyncpa [#allocation17], 1 }
 0xd08   :  { %3471 = vsyncpa [#allocation9], 1 }

</bundles_post_ra>
